<compile_context>
chip_gen: v7x
topology: tpu7x:2x2x1
jax: 0.10.0
libtpu: 0.0.40
codegen_flags: <defaults>
</compile_context>

<pallas_src>
import functools

import jax
import jax.numpy as jnp
from jax.experimental import pallas as pl
from jax.experimental.pallas import tpu as pltpu

LANE = 128
BN_EPS = 1e-5
_ROW_BLOCK_TARGET = 512                 # ~rows per output tile (>=85% HBM roofline)
_VMEM_LIMIT_BYTES = 48 * 1024 * 1024    # explicit scoped-VMEM budget (fits v7x 64MiB)


# ----------------------------------------------------------------------------
# helpers
# ----------------------------------------------------------------------------
def _round_up(x, m):
    return (x + m - 1) // m * m


def _pad_axis(a, axis, new_size):
    pad = new_size - a.shape[axis]
    if pad == 0:
        return a
    widths = [(0, 0)] * a.ndim
    widths[axis] = (0, pad)
    return jnp.pad(a, widths)


def _choose_tm(m, cap=512):
    """Largest row tile (multiple of 8, <= cap) without forcing an M split."""
    nblk = max(1, -(-m // cap))
    return min(_round_up(-(-m // nblk), 8), _round_up(m, 8))


def fold_bn(gamma, beta, mean, var):
    scale = gamma / jnp.sqrt(var + BN_EPS)
    bias = beta - mean * scale
    return scale, bias


# ----------------------------------------------------------------------------
# Feature probe: single-buffered grid-invariant operands (pl.Buffered(1)).
# Falls back to default double-buffering if the installed JAX rejects it.
# ----------------------------------------------------------------------------
def _copy_probe_kernel(x_ref, o_ref):
    o_ref[...] = x_ref[...]


def _probe_buffered_one():
    try:
        fn = pl.pallas_call(
            _copy_probe_kernel,
            out_shape=jax.ShapeDtypeStruct((16, LANE), jnp.float32),
            grid=(2,),
            in_specs=[pl.BlockSpec((8, LANE), lambda i: (0, 0),
                                   pipeline_mode=pl.Buffered(1))],
            out_specs=pl.BlockSpec((8, LANE), lambda i: (i, 0)),
        )
        jax.block_until_ready(fn(jnp.ones((8, LANE), jnp.float32)))
        return True
    except Exception:  # any failure => use default buffering
        return False


_BUFFERED_ONE_OK = _probe_buffered_one()


def _inv_spec(block_shape, index_map):
    """BlockSpec for grid-invariant operands (weights/biases)."""
    if _BUFFERED_ONE_OK:
        return pl.BlockSpec(block_shape, index_map, pipeline_mode=pl.Buffered(1))
    return pl.BlockSpec(block_shape, index_map)


# ----------------------------------------------------------------------------
# Pallas kernels
# ----------------------------------------------------------------------------
def _mm_bias_relu_kernel(x_ref, w_ref, b_ref, o_ref):
    """relu(x @ w + b): conv1 (1x1) with BN folded.  bf16 in, f32 accumulate."""
    y = jnp.dot(x_ref[...], w_ref[...], preferred_element_type=jnp.float32)
    y = jnp.maximum(y + b_ref[...], 0.0)
    o_ref[...] = y.astype(o_ref.dtype)


def _fused_conv2_tail_kernel(x_ref, w2_ref, b2_ref, w3_ref, b3_ref, sc_ref, *rest,
                             th, wo_p, stride, proj):
    """conv2(3x3,pad=1,stride) + bn2 + relu + conv3(1x1) + bn3 + shortcut
    + residual + relu, for one (image, output-row-block).

    x_ref : (Hpad, Wq, S*Cin)  padded (and, for stride=2, width space-to-depth)
                               image, resident in VMEM for the whole image.
    w2_ref: (3, 3*Cin, Cin)    per-kh weight slab, kw-major along the K axis.
    sc_ref: (th*wo_p, Csc)     shortcut rows (x strided/flattened for the block).
    o_ref : (th*wo_p, Cout)
    """
    if proj:
        ws_ref, o_ref = rest
    else:
        (o_ref,) = rest

    r = pl.program_id(1)
    cin = w2_ref.shape[-1]                  # conv2 planes (lane-padded)
    row0 = stride * th * r

    # (W offset, channel group) of each kw tap; all unit-stride slices.
    taps = ((0, 0), (1, 0), (2, 0)) if stride == 1 else ((0, 0), (0, 1), (1, 0))

    acc = jnp.zeros((th * wo_p, cin), jnp.float32)
    for kh in range(3):
        if stride == 1:
            slab = x_ref[pl.ds(row0 + kh, th), :, :]
        else:
            # strided only along the outer (untiled) H axis.
            slab = x_ref[pl.ds(row0 + kh, th, stride=stride), :, :]
        parts = [slab[:, woff:woff + wo_p, cg * cin:(cg + 1) * cin]
                 for woff, cg in taps]
        patch = jnp.concatenate(parts, axis=-1).reshape(th * wo_p, 3 * cin)
        acc = acc + jnp.dot(patch, w2_ref[kh],
                            preferred_element_type=jnp.float32)

    h2 = jnp.maximum(acc + b2_ref[...], 0.0).astype(jnp.bfloat16)
    y = jnp.dot(h2, w3_ref[...], preferred_element_type=jnp.float32) + b3_ref[...]
    if proj:
        y = y + jnp.dot(sc_ref[...], ws_ref[...],
                        preferred_element_type=jnp.float32)
    else:
        y = y + sc_ref[...].astype(jnp.float32)
    o_ref[...] = jnp.maximum(y, 0.0).astype(o_ref.dtype)


# ----------------------------------------------------------------------------
# pallas_call wrappers
# ----------------------------------------------------------------------------
def matmul_bias_relu(x2d, w, bias):
    """Row-tiled relu(x @ w + b); bf16 operands, bf16 output."""
    m, k = x2d.shape
    n = w.shape[1]
    tm = _choose_tm(m)
    mp = _round_up(m, tm)
    xp = _pad_axis(x2d, 0, mp)
    out = pl.pallas_call(
        _mm_bias_relu_kernel,
        out_shape=jax.ShapeDtypeStruct((mp, n), jnp.bfloat16),
        grid=(mp // tm,),
        in_specs=[pl.BlockSpec((tm, k), lambda i: (i, 0)),
                  _inv_spec((k, n), lambda i: (0, 0)),
                  _inv_spec((1, n), lambda i: (0, 0))],
        out_specs=pl.BlockSpec((tm, n), lambda i: (i, 0)),
        compiler_params=pltpu.CompilerParams(
            dimension_semantics=("parallel",),
            vmem_limit_bytes=_VMEM_LIMIT_BYTES),
    )(xp, w, bias)
    return out[:m] if mp != m else out


def fused_conv2_conv3_shortcut(ximg, w2, b2, w3, b3, sc, ws, *,
                               stride, th, wo_p, nrb):
    """One kernel for conv2+bn2+relu+conv3+bn3+shortcut+residual+relu."""
    n, hpad, wq, gc = ximg.shape
    cin2 = w2.shape[-1]
    out_p = w3.shape[-1]
    csc = sc.shape[-1]
    m = sc.shape[0]
    proj = ws is not None

    in_specs = [
        # Whole padded image per grid step (varies with i, invariant in r):
        # kept double-buffered so the next image's DMA overlaps compute.
        pl.BlockSpec((None, hpad, wq, gc), lambda i, r: (i, 0, 0, 0)),
        _inv_spec((3, 3 * cin2, cin2), lambda i, r: (0, 0, 0)),
        _inv_spec((1, cin2), lambda i, r: (0, 0)),
        _inv_spec((cin2, out_p), lambda i, r: (0, 0)),
        _inv_spec((1, out_p), lambda i, r: (0, 0)),
        pl.BlockSpec((th * wo_p, csc), lambda i, r: (i * nrb + r, 0)),
    ]
    operands = [ximg, w2, b2, w3, b3, sc]
    if proj:
        in_specs.append(_inv_spec((csc, out_p), lambda i, r: (0, 0)))
        operands.append(ws)

    return pl.pallas_call(
        functools.partial(_fused_conv2_tail_kernel, th=th, wo_p=wo_p,
                          stride=stride, proj=proj),
        out_shape=jax.ShapeDtypeStruct((m, out_p), jnp.float32),
        grid=(n, nrb),
        in_specs=in_specs,
        out_specs=pl.BlockSpec((th * wo_p, out_p), lambda i, r: (i * nrb + r, 0)),
        compiler_params=pltpu.CompilerParams(
            dimension_semantics=("parallel", "parallel"),
            vmem_limit_bytes=_VMEM_LIMIT_BYTES),
    )(*operands)


# ----------------------------------------------------------------------------
# Bottleneck forward
# ----------------------------------------------------------------------------
def bottleneck_forward(x_nchw, params, stride):
    assert stride in (1, 2), "only stride 1/2 supported (ResNet bottlenecks)"
    expansion = 4
    x = jnp.transpose(x_nchw, (0, 2, 3, 1))          # NCHW -> NHWC
    n, h, w, cin = x.shape
    planes = params["w1"].shape[-1]
    cout = expansion * planes

    cin_p = _round_up(cin, LANE)
    pln_p = _round_up(planes, LANE)
    out_p = _round_up(cout, LANE)

    # ---- fold BN into weights/bias, pad channels to lane multiples, cast bf16
    s1, b1 = fold_bn(*params["bn1"])
    w1 = _pad_axis(_pad_axis(params["w1"] * s1, 0, cin_p), 1, pln_p)
    w1 = w1.astype(jnp.bfloat16)
    b1 = _pad_axis(b1, 0, pln_p).reshape(1, pln_p)           # f32 bias

    s2, b2 = fold_bn(*params["bn2"])
    w2 = _pad_axis(_pad_axis(params["w2"] * s2, 2, pln_p), 3, pln_p)
    w2 = w2.reshape(3, 3 * pln_p, pln_p).astype(jnp.bfloat16)  # kw-major K axis
    b2 = _pad_axis(b2, 0, pln_p).reshape(1, pln_p)

    s3, b3 = fold_bn(*params["bn3"])
    w3 = _pad_axis(_pad_axis(params["w3"] * s3, 0, pln_p), 1, out_p)
    w3 = w3.astype(jnp.bfloat16)

    use_proj = (stride != 1) or (cin != cout)
    ws = None
    if use_proj:
        ss, bs = fold_bn(*params["bns"])
        ws = _pad_axis(_pad_axis(params["ws"] * ss, 0, cin_p), 1, out_p)
        ws = ws.astype(jnp.bfloat16)
        b3 = b3 + bs                                          # combined tail bias
    else:
        assert stride == 1 and cin_p == out_p, \
            "identity shortcut requires stride==1 and matching channel count"
    b3 = _pad_axis(b3, 0, out_p).reshape(1, out_p)

    # activations: pad channels, cast bf16
    xp = _pad_axis(x, 3, cin_p).astype(jnp.bfloat16)

    # ---- conv1 (1x1) + bn1 + relu --------------------------------------------
    h1 = matmul_bias_relu(xp.reshape(-1, cin_p), w1, b1)      # (n*h*w, pln_p) bf16
    h1 = h1.reshape(n, h, w, pln_p)

    # ---- conv2/conv3/shortcut geometry ---------------------------------------
    ho = (h - 1) // stride + 1
    wo = (w - 1) // stride + 1
    wo_p = _round_up(wo, 8)                      # lane/sublane-friendly width
    th = max(1, min(ho, _ROW_BLOCK_TARGET // wo_p))
    ho_p = _round_up(ho, th)
    nrb = ho_p // th

    hpad = stride * (ho_p - 1) + 3
    wneed = stride * (wo_p - 1) + 3
    if stride == 2:
        wneed = _round_up(wneed, 2)
    bot = hpad - 1 - h
    right = wneed - 1 - w
    assert bot >= 0 and right >= 0

    x2 = jnp.pad(h1, ((0, 0), (1, bot), (1, right), (0, 0)))  # zero pad (conv pad=1)
    if stride == 2:
        # Width space-to-depth: even/odd columns interleaved into channels so
        # every in-kernel W slice is unit-stride.
        x2 = x2.reshape(n, hpad, wneed // 2, 2 * pln_p)

    # Shortcut rows aligned to the (padded) output grid, flattened.
    sc = xp[:, ::stride, ::stride, :]                          # (n, ho, wo, cin_p)
    sc = jnp.pad(sc, ((0, 0), (0, ho_p - ho), (0, wo_p - wo), (0, 0)))
    sc = sc.reshape(n * ho_p * wo_p, cin_p)

    # ---- conv2 (3x3) + bn2 + relu + conv3 (1x1) + bn3 + shortcut + relu ------
    out2d = fused_conv2_conv3_shortcut(
        x2, w2, b2, w3, b3, sc, ws, stride=stride, th=th, wo_p=wo_p, nrb=nrb)

    out = out2d.reshape(n, ho_p, wo_p, out_p)[:, :ho, :wo, :cout]
    return jnp.transpose(out, (0, 3, 1, 2))                   # NHWC -> NCHW


# ----------------------------------------------------------------------------
# Pure-JAX reference (lax.conv, f32) for the correctness check.
# ----------------------------------------------------------------------------
def reference_forward(x_nchw, params, stride):
    expansion = 4
    x = jnp.transpose(x_nchw, (0, 2, 3, 1))
    planes = params["w1"].shape[-1]
    dn = ("NHWC", "HWIO", "NHWC")

    def conv(inp, w, stride, pad):
        return jax.lax.conv_general_dilated(inp, w, (stride, stride), pad,
                                            dimension_numbers=dn)

    def bn(inp, p):
        s, b = fold_bn(*p)
        return inp * s + b

    out = jax.nn.relu(bn(conv(x, params["w1"].reshape(1, 1, -1, planes), 1, "VALID"),
                         params["bn1"]))
    out = jax.nn.relu(bn(conv(out, params["w2"], stride, ((1, 1), (1, 1))),
                         params["bn2"]))
    out = bn(conv(out, params["w3"].reshape(1, 1, planes, expansion * planes), 1,
                  "VALID"), params["bn3"])
    cin = x.shape[-1]
    if stride != 1 or cin != expansion * planes:
        sc = bn(conv(x, params["ws"].reshape(1, 1, cin, expansion * planes), stride,
                     "VALID"), params["bns"])
    else:
        sc = x
    out = jax.nn.relu(out + sc)
    return jnp.transpose(out, (0, 3, 1, 2))


# ----------------------------------------------------------------------------
# Deterministic parameter construction.
# ----------------------------------------------------------------------------
def make_params(key, in_planes, planes, stride):
    expansion = 4
    ks = iter(jax.random.split(key, 16))

    def bn_params(k, c):
        k1, k2, k3, k4 = jax.random.split(k, 4)
        gamma = 1.0 + 0.1 * jax.random.normal(k1, (c,), jnp.float32)
        beta = 0.1 * jax.random.normal(k2, (c,), jnp.float32)
        mean = 0.1 * jax.random.normal(k3, (c,), jnp.float32)
        var = 0.5 + jax.random.uniform(k4, (c,), jnp.float32)
        return (gamma, beta, mean, var)

    params = {
        # 1x1 conv weights stored as (Cin, Cout); 3x3 as (kh, kw, Cin, Cout)
        "w1": 0.2 * jax.random.normal(next(ks), (in_planes, planes), jnp.float32),
        "bn1": bn_params(next(ks), planes),
        "w2": 0.2 * jax.random.normal(next(ks), (3, 3, planes, planes), jnp.float32),
        "bn2": bn_params(next(ks), planes),
        "w3": 0.2 * jax.random.normal(next(ks), (planes, expansion * planes),
                                      jnp.float32),
        "bn3": bn_params(next(ks), expansion * planes),
    }
    if stride != 1 or in_planes != expansion * planes:
        params["ws"] = 0.2 * jax.random.normal(
            next(ks), (in_planes, expansion * planes), jnp.float32)
        params["bns"] = bn_params(next(ks), expansion * planes)
    return params


if __name__ == "__main__":
    # (name, batch, in_planes, planes, spatial, stride)
    cases = [
        ("proj_stride1", 2, 4, 4, 16, 1),      # projection shortcut
        ("identity", 2, 16, 4, 16, 1),         # identity shortcut
        ("proj_stride2_odd", 1, 8, 4, 9, 2),   # stride-2 space-to-depth, 8|Wo pad
    ]
    key = jax.random.PRNGKey(0)
    for idx, (name, batch, in_planes, planes, spatial, stride) in enumerate(cases):
        k_x, k_p = jax.random.split(jax.random.fold_in(key, idx))
        x = jax.random.normal(k_x, (batch, in_planes, spatial, spatial), jnp.float32)
        params = make_params(k_p, in_planes, planes, stride)

        fwd = jax.jit(functools.partial(bottleneck_forward, stride=stride))
        out = jax.block_until_ready(fwd(x, params))
        ref = jax.block_until_ready(reference_forward(x, params, stride))

        ho = (spatial - 1) // stride + 1
        assert out.shape == (batch, 4 * planes, ho, ho), (name, out.shape)
        # bf16 MXU operands -> compare with a relative/absolute tolerance.
        err = float(jnp.max(jnp.abs(out - ref) / (1.0 + jnp.abs(ref))))
        assert err < 3e-2, (name, err)
    print("KERNEL_OK")
</pallas_src>

<mosaic_0001>
module attributes {stable_mosaic.version = 11 : i64} {
  func.func @_copy_probe_kernel(%arg0: i32, %arg1: memref<8x128xf32, #tpu.memory_space<vmem>>, %arg2: memref<8x128xf32, #tpu.memory_space<vmem>>) attributes {dimension_semantics = [#tpu.dimension_semantics<arbitrary>], iteration_bounds = array<i64: 2>, scalar_prefetch = 0 : i64, scratch_operands = 0 : i64, tpu.core_type = #tpu.core_type<tc>, window_params = [{pipeline_mode = #tpu.pipeline_mode<synchronous>, transform_indices = @transform_0, window_bounds = array<i64: 8, 128>}, {transform_indices = @transform_1, window_bounds = array<i64: 8, 128>}]} {
    %c0 = arith.constant 0 : index
    %c0_0 = arith.constant 0 : index
    %0 = vector.load %arg1[%c0, %c0_0] : memref<8x128xf32, #tpu.memory_space<vmem>>, vector<8x128xf32>
    %c0_1 = arith.constant 0 : index
    %c0_2 = arith.constant 0 : index
    %1 = vector.load %arg2[%c0_1, %c0_2] : memref<8x128xf32, #tpu.memory_space<vmem>>, vector<8x128xf32>
    tpu.vector_store %arg2[%c0_1, %c0_2], %0 {strides = array<i32>} : memref<8x128xf32, #tpu.memory_space<vmem>>, vector<8x128xf32>,
    return
  }
  func.func @transform_0(%arg0: i32) -> (i32, i32) {
    %c0_i32 = arith.constant 0 : i32
    %c0_i32_0 = arith.constant 0 : i32
    %c0_i32_1 = arith.constant 0 : i32
    return %c0_i32, %c0_i32_0 : i32, i32
  }
  func.func @transform_1(%arg0: i32) -> (i32, i32) {
    %c0_i32 = arith.constant 0 : i32
    %c0_i32_0 = arith.constant 0 : i32
    return %arg0, %c0_i32 : i32, i32
  }
}

module attributes {stable_mosaic.version = 11 : i64} {
  func.func @_mm_bias_relu_kernel(%arg0: i32, %arg1: memref<512x128xbf16, #tpu.memory_space<vmem>>, %arg2: memref<128x128xbf16, #tpu.memory_space<vmem>>, %arg3: memref<1x128xf32, #tpu.memory_space<vmem>>, %arg4: memref<512x128xbf16, #tpu.memory_space<vmem>>) attributes {dimension_semantics = [#tpu.dimension_semantics<parallel>], iteration_bounds = array<i64: 1>, scalar_prefetch = 0 : i64, scratch_operands = 0 : i64, tpu.core_type = #tpu.core_type<tc>, window_params = [{transform_indices = @transform_0, window_bounds = array<i64: 512, 128>}, {pipeline_mode = #tpu.pipeline_mode<synchronous>, transform_indices = @transform_1, window_bounds = array<i64: 128, 128>}, {pipeline_mode = #tpu.pipeline_mode<synchronous>, transform_indices = @transform_2, window_bounds = array<i64: 1, 128>}, {transform_indices = @transform_3, window_bounds = array<i64: 512, 128>}]} {
    %c0 = arith.constant 0 : index
    %c0_0 = arith.constant 0 : index
    %0 = vector.load %arg1[%c0, %c0_0] : memref<512x128xbf16, #tpu.memory_space<vmem>>, vector<512x128xbf16>
    %c0_1 = arith.constant 0 : index
    %c0_2 = arith.constant 0 : index
    %1 = vector.load %arg2[%c0_1, %c0_2] : memref<128x128xbf16, #tpu.memory_space<vmem>>, vector<128x128xbf16>
    %cst = arith.constant dense<0.000000e+00> : vector<512x128xf32>
    %2 = tpu.matmul %0, %1, %cst {dimension_numbers = #tpu.dot_dimension_numbers<[1], [0], [0], [1], [0, 0, 1, 1], [], []>} : vector<512x128xbf16>, vector<128x128xbf16>, vector<512x128xf32> -> vector<512x128xf32>
    %c0_3 = arith.constant 0 : index
    %c0_4 = arith.constant 0 : index
    %3 = vector.load %arg3[%c0_3, %c0_4] : memref<1x128xf32, #tpu.memory_space<vmem>>, vector<1x128xf32>
    %4 = vector.broadcast %3 : vector<1x128xf32> to vector<512x128xf32>
    %5 = arith.addf %2, %4 : vector<512x128xf32>
    %cst_5 = arith.constant 0.000000e+00 : f32
    %6 = vector.broadcast %cst_5 : f32 to vector<512x128xf32>
    %7 = arith.maximumf %5, %6 : vector<512x128xf32>
    %8 = arith.truncf %7 : vector<512x128xf32> to vector<512x128xbf16>
    %c0_6 = arith.constant 0 : index
    %c0_7 = arith.constant 0 : index
    %9 = vector.load %arg4[%c0_6, %c0_7] : memref<512x128xbf16, #tpu.memory_space<vmem>>, vector<512x128xbf16>
    tpu.vector_store %arg4[%c0_6, %c0_7], %8 {strides = array<i32>} : memref<512x128xbf16, #tpu.memory_space<vmem>>, vector<512x128xbf16>,
    return
  }
  func.func @transform_0(%arg0: i32) -> (i32, i32) {
    %c0_i32 = arith.constant 0 : i32
    %c0_i32_0 = arith.constant 0 : i32
    return %arg0, %c0_i32 : i32, i32
  }
  func.func @transform_1(%arg0: i32) -> (i32, i32) {
    %c0_i32 = arith.constant 0 : i32
    %c0_i32_0 = arith.constant 0 : i32
    %c0_i32_1 = arith.constant 0 : i32
    return %c0_i32, %c0_i32_0 : i32, i32
  }
  func.func @transform_2(%arg0: i32) -> (i32, i32) {
    %c0_i32 = arith.constant 0 : i32
    %c0_i32_0 = arith.constant 0 : i32
    %c0_i32_1 = arith.constant 0 : i32
    return %c0_i32, %c0_i32_0 : i32, i32
  }
  func.func @transform_3(%arg0: i32) -> (i32, i32) {
    %c0_i32 = arith.constant 0 : i32
    %c0_i32_0 = arith.constant 0 : i32
    return %arg0, %c0_i32 : i32, i32
  }
}

module attributes {stable_mosaic.version = 11 : i64} {
  func.func @_fused_conv2_tail_kernel(%arg0: i32, %arg1: i32, %arg2: memref<1x18x18x128xbf16, #tpu.memory_space<vmem>>, %arg3: memref<3x384x128xbf16, #tpu.memory_space<vmem>>, %arg4: memref<1x128xf32, #tpu.memory_space<vmem>>, %arg5: memref<128x128xbf16, #tpu.memory_space<vmem>>, %arg6: memref<1x128xf32, #tpu.memory_space<vmem>>, %arg7: memref<256x128xbf16, #tpu.memory_space<vmem>>, %arg8: memref<128x128xbf16, #tpu.memory_space<vmem>>, %arg9: memref<256x128xf32, #tpu.memory_space<vmem>>) attributes {dimension_semantics = [#tpu.dimension_semantics<parallel>, #tpu.dimension_semantics<parallel>], iteration_bounds = array<i64: 2, 1>, scalar_prefetch = 0 : i64, scratch_operands = 0 : i64, tpu.core_type = #tpu.core_type<tc>, window_params = [{transform_indices = @transform_0, window_bounds = array<i64: 1, 18, 18, 128>}, {pipeline_mode = #tpu.pipeline_mode<synchronous>, transform_indices = @transform_1, window_bounds = array<i64: 3, 384, 128>}, {pipeline_mode = #tpu.pipeline_mode<synchronous>, transform_indices = @transform_2, window_bounds = array<i64: 1, 128>}, {pipeline_mode = #tpu.pipeline_mode<synchronous>, transform_indices = @transform_3, window_bounds = array<i64: 128, 128>}, {pipeline_mode = #tpu.pipeline_mode<synchronous>, transform_indices = @transform_4, window_bounds = array<i64: 1, 128>}, {transform_indices = @transform_5, window_bounds = array<i64: 256, 128>}, {pipeline_mode = #tpu.pipeline_mode<synchronous>, transform_indices = @transform_6, window_bounds = array<i64: 128, 128>}, {transform_indices = @transform_7, window_bounds = array<i64: 256, 128>}]} {
    %c16_i32 = arith.constant 16 : i32
    %0 = arith.muli %c16_i32, %arg1 : i32
    %cst = arith.constant 0.000000e+00 : f32
    %1 = vector.broadcast %cst : f32 to vector<256x128xf32>
    %c0_i32 = arith.constant 0 : i32
    %2 = arith.addi %0, %c0_i32 : i32
    %c0 = arith.constant 0 : index
    %3 = arith.index_cast %2 : i32 to index
    %c0_0 = arith.constant 0 : index
    %c0_1 = arith.constant 0 : index
    %4 = vector.load %arg2[%c0, %3, %c0_0, %c0_1] : memref<1x18x18x128xbf16, #tpu.memory_space<vmem>>, vector<1x16x18x128xbf16>
    %5 = vector.shape_cast %4 : vector<1x16x18x128xbf16> to vector<16x18x128xbf16>
    %6 = vector.extract_strided_slice %5 {offsets = [0, 0, 0], sizes = [16, 16, 128], strides = [1, 1, 1]} : vector<16x18x128xbf16> to vector<16x16x128xbf16>
    %7 = vector.extract_strided_slice %5 {offsets = [0, 1, 0], sizes = [16, 16, 128], strides = [1, 1, 1]} : vector<16x18x128xbf16> to vector<16x16x128xbf16>
    %8 = vector.extract_strided_slice %5 {offsets = [0, 2, 0], sizes = [16, 16, 128], strides = [1, 1, 1]} : vector<16x18x128xbf16> to vector<16x16x128xbf16>
    %9 = tpu.concatenate %6, %7, %8 in 2 : vector<16x16x128xbf16>, vector<16x16x128xbf16>, vector<16x16x128xbf16> -> vector<16x16x384xbf16>
    %10 = vector.shape_cast %9 : vector<16x16x384xbf16> to vector<256x384xbf16>
    %c0_2 = arith.constant 0 : index
    %c0_3 = arith.constant 0 : index
    %c0_4 = arith.constant 0 : index
    %11 = vector.load %arg3[%c0_2, %c0_3, %c0_4] : memref<3x384x128xbf16, #tpu.memory_space<vmem>>, vector<1x384x128xbf16>
    %12 = vector.shape_cast %11 : vector<1x384x128xbf16> to vector<384x128xbf16>
    %cst_5 = arith.constant dense<0.000000e+00> : vector<256x128xf32>
    %13 = tpu.matmul %10, %12, %cst_5 {dimension_numbers = #tpu.dot_dimension_numbers<[1], [0], [0], [1], [0, 0, 1, 1], [], []>} : vector<256x384xbf16>, vector<384x128xbf16>, vector<256x128xf32> -> vector<256x128xf32>
    %14 = arith.addf %1, %13 : vector<256x128xf32>
    %c1_i32 = arith.constant 1 : i32
    %15 = arith.addi %0, %c1_i32 : i32
    %c0_6 = arith.constant 0 : index
    %16 = arith.index_cast %15 : i32 to index
    %c0_7 = arith.constant 0 : index
    %c0_8 = arith.constant 0 : index
    %17 = vector.load %arg2[%c0_6, %16, %c0_7, %c0_8] : memref<1x18x18x128xbf16, #tpu.memory_space<vmem>>, vector<1x16x18x128xbf16>
    %18 = vector.shape_cast %17 : vector<1x16x18x128xbf16> to vector<16x18x128xbf16>
    %19 = vector.extract_strided_slice %18 {offsets = [0, 0, 0], sizes = [16, 16, 128], strides = [1, 1, 1]} : vector<16x18x128xbf16> to vector<16x16x128xbf16>
    %20 = vector.extract_strided_slice %18 {offsets = [0, 1, 0], sizes = [16, 16, 128], strides = [1, 1, 1]} : vector<16x18x128xbf16> to vector<16x16x128xbf16>
    %21 = vector.extract_strided_slice %18 {offsets = [0, 2, 0], sizes = [16, 16, 128], strides = [1, 1, 1]} : vector<16x18x128xbf16> to vector<16x16x128xbf16>
    %22 = tpu.concatenate %19, %20, %21 in 2 : vector<16x16x128xbf16>, vector<16x16x128xbf16>, vector<16x16x128xbf16> -> vector<16x16x384xbf16>
    %23 = vector.shape_cast %22 : vector<16x16x384xbf16> to vector<256x384xbf16>
    %c1 = arith.constant 1 : index
    %c0_9 = arith.constant 0 : index
    %c0_10 = arith.constant 0 : index
    %24 = vector.load %arg3[%c1, %c0_9, %c0_10] : memref<3x384x128xbf16, #tpu.memory_space<vmem>>, vector<1x384x128xbf16>
    %25 = vector.shape_cast %24 : vector<1x384x128xbf16> to vector<384x128xbf16>
    %cst_11 = arith.constant dense<0.000000e+00> : vector<256x128xf32>
    %26 = tpu.matmul %23, %25, %cst_11 {dimension_numbers = #tpu.dot_dimension_numbers<[1], [0], [0], [1], [0, 0, 1, 1], [], []>} : vector<256x384xbf16>, vector<384x128xbf16>, vector<256x128xf32> -> vector<256x128xf32>
    %27 = arith.addf %14, %26 : vector<256x128xf32>
    %c2_i32 = arith.constant 2 : i32
    %28 = arith.addi %0, %c2_i32 : i32
    %c0_12 = arith.constant 0 : index
    %29 = arith.index_cast %28 : i32 to index
    %c0_13 = arith.constant 0 : index
    %c0_14 = arith.constant 0 : index
    %30 = vector.load %arg2[%c0_12, %29, %c0_13, %c0_14] : memref<1x18x18x128xbf16, #tpu.memory_space<vmem>>, vector<1x16x18x128xbf16>
    %31 = vector.shape_cast %30 : vector<1x16x18x128xbf16> to vector<16x18x128xbf16>
    %32 = vector.extract_strided_slice %31 {offsets = [0, 0, 0], sizes = [16, 16, 128], strides = [1, 1, 1]} : vector<16x18x128xbf16> to vector<16x16x128xbf16>
    %33 = vector.extract_strided_slice %31 {offsets = [0, 1, 0], sizes = [16, 16, 128], strides = [1, 1, 1]} : vector<16x18x128xbf16> to vector<16x16x128xbf16>
    %34 = vector.extract_strided_slice %31 {offsets = [0, 2, 0], sizes = [16, 16, 128], strides = [1, 1, 1]} : vector<16x18x128xbf16> to vector<16x16x128xbf16>
    %35 = tpu.concatenate %32, %33, %34 in 2 : vector<16x16x128xbf16>, vector<16x16x128xbf16>, vector<16x16x128xbf16> -> vector<16x16x384xbf16>
    %36 = vector.shape_cast %35 : vector<16x16x384xbf16> to vector<256x384xbf16>
    %c2 = arith.constant 2 : index
    %c0_15 = arith.constant 0 : index
    %c0_16 = arith.constant 0 : index
    %37 = vector.load %arg3[%c2, %c0_15, %c0_16] : memref<3x384x128xbf16, #tpu.memory_space<vmem>>, vector<1x384x128xbf16>
    %38 = vector.shape_cast %37 : vector<1x384x128xbf16> to vector<384x128xbf16>
    %cst_17 = arith.constant dense<0.000000e+00> : vector<256x128xf32>
    %39 = tpu.matmul %36, %38, %cst_17 {dimension_numbers = #tpu.dot_dimension_numbers<[1], [0], [0], [1], [0, 0, 1, 1], [], []>} : vector<256x384xbf16>, vector<384x128xbf16>, vector<256x128xf32> -> vector<256x128xf32>
    %40 = arith.addf %27, %39 : vector<256x128xf32>
    %c0_18 = arith.constant 0 : index
    %c0_19 = arith.constant 0 : index
    %41 = vector.load %arg4[%c0_18, %c0_19] : memref<1x128xf32, #tpu.memory_space<vmem>>, vector<1x128xf32>
    %42 = vector.broadcast %41 : vector<1x128xf32> to vector<256x128xf32>
    %43 = arith.addf %40, %42 : vector<256x128xf32>
    %cst_20 = arith.constant 0.000000e+00 : f32
    %44 = vector.broadcast %cst_20 : f32 to vector<256x128xf32>
    %45 = arith.maximumf %43, %44 : vector<256x128xf32>
    %46 = arith.truncf %45 : vector<256x128xf32> to vector<256x128xbf16>
    %c0_21 = arith.constant 0 : index
    %c0_22 = arith.constant 0 : index
    %47 = vector.load %arg5[%c0_21, %c0_22] : memref<128x128xbf16, #tpu.memory_space<vmem>>, vector<128x128xbf16>
    %cst_23 = arith.constant dense<0.000000e+00> : vector<256x128xf32>
    %48 = tpu.matmul %46, %47, %cst_23 {dimension_numbers = #tpu.dot_dimension_numbers<[1], [0], [0], [1], [0, 0, 1, 1], [], []>} : vector<256x128xbf16>, vector<128x128xbf16>, vector<256x128xf32> -> vector<256x128xf32>
    %c0_24 = arith.constant 0 : index
    %c0_25 = arith.constant 0 : index
    %49 = vector.load %arg6[%c0_24, %c0_25] : memref<1x128xf32, #tpu.memory_space<vmem>>, vector<1x128xf32>
    %50 = vector.broadcast %49 : vector<1x128xf32> to vector<256x128xf32>
    %51 = arith.addf %48, %50 : vector<256x128xf32>
    %c0_26 = arith.constant 0 : index
    %c0_27 = arith.constant 0 : index
    %52 = vector.load %arg7[%c0_26, %c0_27] : memref<256x128xbf16, #tpu.memory_space<vmem>>, vector<256x128xbf16>
    %c0_28 = arith.constant 0 : index
    %c0_29 = arith.constant 0 : index
    %53 = vector.load %arg8[%c0_28, %c0_29] : memref<128x128xbf16, #tpu.memory_space<vmem>>, vector<128x128xbf16>
    %cst_30 = arith.constant dense<0.000000e+00> : vector<256x128xf32>
    %54 = tpu.matmul %52, %53, %cst_30 {dimension_numbers = #tpu.dot_dimension_numbers<[1], [0], [0], [1], [0, 0, 1, 1], [], []>} : vector<256x128xbf16>, vector<128x128xbf16>, vector<256x128xf32> -> vector<256x128xf32>
    %55 = arith.addf %51, %54 : vector<256x128xf32>
    %cst_31 = arith.constant 0.000000e+00 : f32
    %56 = vector.broadcast %cst_31 : f32 to vector<256x128xf32>
    %57 = arith.maximumf %55, %56 : vector<256x128xf32>
    %c0_32 = arith.constant 0 : index
    %c0_33 = arith.constant 0 : index
    %58 = vector.load %arg9[%c0_32, %c0_33] : memref<256x128xf32, #tpu.memory_space<vmem>>, vector<256x128xf32>
    tpu.vector_store %arg9[%c0_32, %c0_33], %57 {strides = array<i32>} : memref<256x128xf32, #tpu.memory_space<vmem>>, vector<256x128xf32>,
    return
  }
  func.func @transform_0(%arg0: i32, %arg1: i32) -> (i32, i32, i32, i32) {
    %c0_i32 = arith.constant 0 : i32
    %c0_i32_0 = arith.constant 0 : i32
    %c0_i32_1 = arith.constant 0 : i32
    %c0_i32_2 = arith.constant 0 : i32
    return %arg0, %c0_i32, %c0_i32_0, %c0_i32_1 : i32, i32, i32, i32
  }
  func.func @transform_1(%arg0: i32, %arg1: i32) -> (i32, i32, i32) {
    %c0_i32 = arith.constant 0 : i32
    %c0_i32_0 = arith.constant 0 : i32
    %c0_i32_1 = arith.constant 0 : i32
    %c0_i32_2 = arith.constant 0 : i32
    return %c0_i32, %c0_i32_0, %c0_i32_1 : i32, i32, i32
  }
  func.func @transform_2(%arg0: i32, %arg1: i32) -> (i32, i32) {
    %c0_i32 = arith.constant 0 : i32
    %c0_i32_0 = arith.constant 0 : i32
    %c0_i32_1 = arith.constant 0 : i32
    return %c0_i32, %c0_i32_0 : i32, i32
  }
  func.func @transform_3(%arg0: i32, %arg1: i32) -> (i32, i32) {
    %c0_i32 = arith.constant 0 : i32
    %c0_i32_0 = arith.constant 0 : i32
    %c0_i32_1 = arith.constant 0 : i32
    return %c0_i32, %c0_i32_0 : i32, i32
  }
  func.func @transform_4(%arg0: i32, %arg1: i32) -> (i32, i32) {
    %c0_i32 = arith.constant 0 : i32
    %c0_i32_0 = arith.constant 0 : i32
    %c0_i32_1 = arith.constant 0 : i32
    return %c0_i32, %c0_i32_0 : i32, i32
  }
  func.func @transform_5(%arg0: i32, %arg1: i32) -> (i32, i32) {
    %c1_i32 = arith.constant 1 : i32
    %0 = arith.muli %arg0, %c1_i32 : i32
    %1 = arith.addi %0, %arg1 : i32
    %c0_i32 = arith.constant 0 : i32
    %c0_i32_0 = arith.constant 0 : i32
    return %1, %c0_i32 : i32, i32
  }
  func.func @transform_6(%arg0: i32, %arg1: i32) -> (i32, i32) {
    %c0_i32 = arith.constant 0 : i32
    %c0_i32_0 = arith.constant 0 : i32
    %c0_i32_1 = arith.constant 0 : i32
    return %c0_i32, %c0_i32_0 : i32, i32
  }
  func.func @transform_7(%arg0: i32, %arg1: i32) -> (i32, i32) {
    %c1_i32 = arith.constant 1 : i32
    %0 = arith.muli %arg0, %c1_i32 : i32
    %1 = arith.addi %0, %arg1 : i32
    %c0_i32 = arith.constant 0 : i32
    %c0_i32_0 = arith.constant 0 : i32
    return %1, %c0_i32 : i32, i32
  }
}

</mosaic_0001>

<bundles_post_ra>
// kernel: tpu_custom_call.1
= control target key start
LH: loop header
LB: loop body
LE: loop exit
PB: predicated region body
PF: predicated region fallthrough
CT: control target
= control target key end

     0   :  { %6 = vsyncpa [#allocation3], 0  ;;  %s481_s0 = inlined_call_operand.hbm [shape: f32[8,128], index: 0, kind: input, shape index: {}]   ;;  %s482_s1 = inlined_call_operand.hbm [shape: f32[16,128], index: 1, kind: output, shape index: {}]  }
   0x1   :  { %7 = vsyncpa [#allocation4], 0 }
   0x2   :  { %9 = vsyncpa [#allocation4 + $0x1], 0  ;;  %s351_s6 = smov 0   ;;  %s353_s7 = smov 0  }
   0x3   :  { %s355_s8 = smov 0   ;;  %s357_s9 = smov 0  }
   0x4 LB: > { %s372_s10 = sadd.s32 4294967295, %s337_s9   ;;  %s183_s11 = sadd.s32 4294967294, %s337_s9   ;;  %s337_s9 = sphi %s357_s9, %s498_s9   ;;  %s333_s8 = sphi %s355_s8, %s497_s8   ;;  %s329_s7 = sphi %s353_s7, %s496_s7   ;;  %s325_s6 = sphi %s351_s6, %s495_s6  }
   0x5   : > { %s376_s12 = sadd.s32 1, %s337_s9   ;;  %s43_s13 = sadd.s32 1, %s333_s8 }
   0x6   : > { %s40_s14 = ssub.s32 %s337_s9, %s376_s12  ;;  %p53_p0 = scmp.ne.s32.totalorder %s333_s8, %s329_s7 }
   0x7   : > { %p41_p1 = scmp.eq.s32.totalorder %s40_s14, 0  ;;  %p54_p2 = scmp.eq.s32.totalorder %s372_s10, 1 }
   0x8   : > { %p59_p3 = scmp.ne.s32.totalorder %s329_s7, %s325_s6  ;;  %p60_p4 = scmp.eq.s32.totalorder %s183_s11, 1 }
   0x9   : > { %s387_s15 = scalar_select %p41_p1, %s333_s8, %s43_s13  }
   0xa   : > { %p389_p5 = por %p54_p2, %p53_p0  ;;  %p393_p6 = por %p60_p4, %p59_p3 }
   0xb   : > { %p184_p7 = scmp.ge.s32.totalorder %s337_s9, 1  ;;  %p67_p8 = scmp.lt.s32.totalorder %s337_s9, 3 }
   0xc   : > { %s486_s16 = scalar_select %p389_p5, 1, 0 }
   0xd   : > { %s487_s17 = scalar_select %p393_p6, 1, 0 }
   0xe   : > { %p483_p9 = scmp.eq.s32.totalorder %s372_s10, 0  ;;  %p400_p10 = pnand %p184_p7, %p67_p8 }
   0xf   : > { %s339_s19 = smov [#allocation2]   ;;  %s243_s24 = scalar_lea.hbm %s481_s0, 128 }
  0x10   : > { %s488_s18 = scalar_select %p400_p10, 1, 0 }
  0x11   : > { %s80_s20 = sshll.u32 %s339_s19, 4  ;;  %p199_p11 = pneg %p400_p10  ;;  %s81_s20 = int_to_ptr.vmem [resolvable:$true] %s80_s20 }
  0x12   : > { %p244_p13 = scmp.ne.s32.totalorder %s481_s0, %s243_s24  ;;  %p250_p3 = scmp.lt.u32.totalorder %s243_s24, %s481_s0 }
  0x13   : > { %p408_p12 = pnand %p483_p9, %p199_p11 }
  0x15   : > { %p245_p0 = pneg %p408_p12 }
  0x17   : > { %p246_p1 = pnand %p245_p0, %p244_p13 }
  0x19   : > { %p247_p2 = pneg %p246_p1 }
  0x1b   : > { %p252_p4 = pnand %p250_p3, %p247_p2 }
  0x1d   : > { %255 = shalt.err (!%p252_p4)
}
  0x1e   : > { %s256_s29 = scalar_lea.vmem %s81_s20, 128  ;;  %p264_p9 = scmp.lt.s32.totalorder %s81_s20, %s81_s20 }
  0x1f   : > { %p257_p7 = scmp.ne.s32.totalorder %s81_s20, %s256_s29  ;;  %p265_p6 = scmp.lt.s32.totalorder %s256_s29, %s256_s29 }
  0x21   : > { %p259_p8 = pnand %p257_p7, %p245_p0  ;;  %p266_p5 = por %p265_p6, %p264_p9 }
  0x23   : > { %p260_p11 = pneg %p259_p8 }
  0x25   : > { %p267_p10 = pnand %p266_p5, %p260_p11 }
  0x27   : > { %270 = shalt.err (!%p267_p10)
}
  0x28   : > { %202 = dma.hbm_to_vmem [thread:$0]  (!%p408_p12), %s481_s0, 128, %s81_s20, [#allocation3]  }
  0x29   : > { %p490_p13 = scmp.ne.s32.totalorder %s488_s18, 0 }
  0x2a   : > { %p491_p1 = scmp.eq.s32.totalorder (!%p490_p13), %s372_s10, 0 }
  0x2b   : > { %93 = sbr.rel (%p490_p13) target bundleno = 77 (0x4d), region = 24 }
  0x32   : > { %316 = dma.done.wait (%p491_p1), [#allocation3], 128   ;;  %p492_p0 = pmov %p491_p1 }
  0x33   : > { %s105_s3 = sand.u32 1, %s329_s7   ;;  %s190_s13 = sshll.u32 %s372_s10, 7  ;;  %v108_v0 = vld [vmem:[#allocation2] sm:$0xff] }
  0x34   : > { %318 = vsyncadd (%p492_p0), [#allocation3], 4294967168  ;;  %s188_s4 = sshll.u32 %s105_s3, 3  ;;  %s441_s18 = scalar_lea.hbm %s482_s1, %s190_s13 }
  0x35   : > { %s107_s5 = scalar_lea.vmem [#allocation5], %s188_s4  ;;  %s111_s20 = scalar_lea.sflag [#allocation4], %s105_s3 }
  0x36   : > { %s124_s11 = sshll.u32 %s107_s5, 4  ;;  %109 = vst [vmem:[%s107_s5] sm:$0xff] %v108_v0  ;;  %p493_p6 = scmp.ne.s32.totalorder %s486_s16, 0  ;;  %s436_s11 = int_to_ptr.vmem [resolvable:$true] %s124_s11 }
  0x37   : > { %s271_s21 = scalar_lea.vmem %s436_s11, 128  ;;  %s340_s22 = smov [#allocation5]  }
  0x38   : > { %p272_p5 = scmp.ne.s32.totalorder %s436_s11, %s271_s21  ;;  %s275_s10 = sshll.u32 %s340_s22, 4  ;;  %s276_s10 = int_to_ptr.vmem [resolvable:$false] %s275_s10 }
  0x39   : > { %s277_s23 = scalar_lea.vmem %s276_s10, 256  ;;  %p278_p12 = scmp.lt.s32.totalorder %s436_s11, %s276_s10 }
  0x3a   : > { %p273_p9 = pnand %p272_p5, %p493_p6  ;;  %p279_p2 = scmp.lt.s32.totalorder %s277_s23, %s271_s21 }
  0x3c   : > { %p274_p10 = pneg %p273_p9  ;;  %p280_p3 = por %p279_p2, %p278_p12 }
  0x3e   : > { %p281_p4 = pnand %p280_p3, %p274_p10 }
  0x40   : > { %284 = shalt.err (!%p281_p4)
}
  0x41   : > { %s285_s24 = scalar_lea.hbm %s441_s18, 128  ;;  %s289_s27 = scalar_lea.hbm %s482_s1, 256 }
  0x42   : > { %p286_p7 = scmp.ne.s32.totalorder %s441_s18, %s285_s24  ;;  %p290_p13 = scmp.lt.u32.totalorder %s441_s18, %s482_s1 }
  0x43   : > { %p291_p1 = scmp.lt.u32.totalorder %s289_s27, %s285_s24  ;;  %p293_p5 = scmp.lt.u32.totalorder %s285_s24, %s441_s18 }
  0x44   : > { %p287_p8 = pnand %p286_p7, %p493_p6 }
  0x45   : > { %p292_p0 = por %p291_p1, %p290_p13 }
  0x46   : > { %p288_p11 = pneg %p287_p8 }
  0x47   : > { %p294_p9 = por %p293_p5, %p292_p0 }
  0x49   : > { %p295_p10 = pnand %p294_p9, %p288_p11 }
  0x4b   : > { %298 = shalt.err (!%p295_p10)
}
  0x4c   : > { %197 = dma.vmem_to_hbm [thread:$0]  (%p493_p6), %s436_s11, 128, %s441_s18, %s111_s20  }
  0x4d PF: > { %p209_p12 = scmp.ge.s32.totalorder %s337_s9, 2  ;;  %s136_s30 = sand.u32 1, %s325_s6  }
  0x4e   : > { %p494_p2 = scmp.ne.s32.totalorder %s487_s17, 0  ;;  %s137_s2 = scalar_lea.sflag [#allocation4], %s136_s30 }
  0x50   : > { %p204_p3 = pnand %p209_p12, %p494_p2 }
  0x52   : > { %320 = dma.done.wait (!%p204_p3), %s137_s2, 128  }
  0x53   : > { %322 = vsyncadd (!%p204_p3), %s137_s2, 4294967168  ;;  %p12_p4 = scmp.ge.s32.totalorder %s376_s12, 4   ;;  %s495_s6 = smov %s329_s7 }
  0x54   : > { %s496_s7 = smov %s333_s8  ;;  %s497_s8 = smov %s387_s15 }
  0x55   : > { %s498_s9 = smov %s376_s12  ;;  %14 = sbr.rel (!%p12_p4) target bundleno = 4 (0x4), region = 61 }
  0x5c   :  { %142 = vsyncpa [#allocation3], 1 }
  0x5d   :  { %144 = vsyncpa [#allocation3 + $0x1], 1 }
  0x5e   :  { %145 = vsyncpa [#allocation4], 1 }
  0x5f   :  { %147 = vsyncpa [#allocation4 + $0x1], 1 }

// kernel: bottleneck_forward.2
= control target key start
LH: loop header
LB: loop body
LE: loop exit
PB: predicated region body
PF: predicated region fallthrough
CT: control target
= control target key end

     0   :  { %s1860_s1 = inlined_call_operand.vmem [shape: bf16[128,128], index: 1, kind: input, shape index: {}]   ;;  %s1861_s0 = inlined_call_operand.vmem [shape: bf16[512,128], index: 0, kind: input, shape index: {}]   ;;  %s1862_s2 = inlined_call_operand.vmem [shape: f32[1,128], index: 2, kind: input, shape index: {}]   ;;  %s1863_s3 = inlined_call_operand.vmem [shape: bf16[512,128], index: 3, kind: output, shape index: {}]  }
   0x1   :  { %v1515_v0 = vld [vmem:[%s1860_s1] sm:$0xff]   ;;  %v1516_v1 = vld [vmem:[%s1860_s1 + $0x8] sm:$0xff]   ;;  %v1517_v2 = vld [vmem:[%s1860_s1 + $0x10] sm:$0xff]  }
   0x2   :  { %1419 = vmatprep.subr.bf16.mxu0 %v1515_v0  ;;  %1499 = vmatprep.subr.bf16.mxu1 %v1515_v0  ;;  %v1518_v3 = vld [vmem:[%s1860_s1 + $0x18] sm:$0xff]   ;;  %v1523_v4 = vld [vmem:[%s1861_s0] sm:$0xff]   ;;  %v1520_v7 = vld [vmem:[%s1860_s1 + $0x28] sm:$0xff]  }
   0x3   :  { %1420 = vmatpush3.bf16.msra.mxu0 %v1515_v0  ;;  %1507 = vmatpush3.bf16.msra.mxu1 %v1515_v0  ;;  %v1524_v5 = vld [vmem:[%s1861_s0 + $0x80] sm:$0xff]   ;;  %v1521_v8 = vld [vmem:[%s1860_s1 + $0x30] sm:$0xff]   ;;  %v1522_v9 = vld [vmem:[%s1860_s1 + $0x38] sm:$0xff]  }
   0x4   :  { %1421 = vmatprep.subr.bf16.mxu0 %v1516_v1  ;;  %1500 = vmatprep.subr.bf16.mxu1 %v1516_v1  ;;  %v1519_v6 = vld [vmem:[%s1860_s1 + $0x20] sm:$0xff]   ;;  %v1525_v10 = vld [vmem:[%s1861_s0 + $0x8] sm:$0xff]   ;;  %v1527_v12 = vld [vmem:[%s1861_s0 + $0x10] sm:$0xff]  }
   0x5   :  { %1435 = vmatprep.mubr.bf16.mxu0 %v1523_v4  ;;  %1467 = vmatprep.mubr.bf16.mxu1 %v1524_v5  ;;  %v1526_v11 = vld [vmem:[%s1861_s0 + $0x88] sm:$0xff]   ;;  %v1528_v13 = vld [vmem:[%s1861_s0 + $0x90] sm:$0xff]   ;;  %v1529_v14 = vld [vmem:[%s1861_s0 + $0x18] sm:$0xff]  }
   0x6   :  { %v1530_v15 = vld [vmem:[%s1861_s0 + $0x98] sm:$0xff]   ;;  %v1531_v16 = vld [vmem:[%s1861_s0 + $0x20] sm:$0xff]   ;;  %v1533_v18 = vld [vmem:[%s1861_s0 + $0x28] sm:$0xff]  }
   0x7   :  { %1422 = vmatpush3.bf16.msra.mxu0 %v1516_v1  ;;  %1508 = vmatpush3.bf16.msra.mxu1 %v1516_v1  ;;  %v1532_v17 = vld [vmem:[%s1861_s0 + $0xa0] sm:$0xff]   ;;  %v1534_v19 = vld [vmem:[%s1861_s0 + $0xa8] sm:$0xff]   ;;  %v1535_v20 = vld [vmem:[%s1861_s0 + $0x30] sm:$0xff]  }
   0x8   :  { %1423 = vmatprep.subr.bf16.mxu0 %v1517_v2  ;;  %1501 = vmatprep.subr.bf16.mxu1 %v1517_v2  ;;  %v1536_v21 = vld [vmem:[%s1861_s0 + $0xb0] sm:$0xff]   ;;  %v1537_v22 = vld [vmem:[%s1861_s0 + $0x38] sm:$0xff]   ;;  %v1539_v24 = vld [vmem:[%s1861_s0 + $0x40] sm:$0xff]  }
   0x9   :  { %v1538_v23 = vld [vmem:[%s1861_s0 + $0xb8] sm:$0xff]   ;;  %v1540_v25 = vld [vmem:[%s1861_s0 + $0xc0] sm:$0xff]   ;;  %v1541_v26 = vld [vmem:[%s1861_s0 + $0x48] sm:$0xff]  }
   0xa   :  { %v1542_v27 = vld [vmem:[%s1861_s0 + $0xc8] sm:$0xff]   ;;  %v1543_v28 = vld [vmem:[%s1861_s0 + $0x50] sm:$0xff]   ;;  %v1545_v30 = vld [vmem:[%s1861_s0 + $0x58] sm:$0xff]  }
   0xb   :  { %1424 = vmatpush3.bf16.msra.mxu0 %v1517_v2  ;;  %1509 = vmatpush3.bf16.msra.mxu1 %v1517_v2  ;;  %v1544_v29 = vld [vmem:[%s1861_s0 + $0xd0] sm:$0xff]   ;;  %v1546_v31 = vld [vmem:[%s1861_s0 + $0xd8] sm:$0xff]   ;;  %v1547_v32 = vld [vmem:[%s1861_s0 + $0x60] sm:$0xff]  }
   0xc   :  { %1425 = vmatprep.subr.bf16.mxu0 %v1518_v3  ;;  %1502 = vmatprep.subr.bf16.mxu1 %v1518_v3  ;;  %v1548_v33 = vld [vmem:[%s1861_s0 + $0xe0] sm:$0xff]   ;;  %v1549_v34 = vld [vmem:[%s1861_s0 + $0x68] sm:$0xff]   ;;  %v1551_v36 = vld [vmem:[%s1861_s0 + $0x70] sm:$0xff]  }
   0xd   :  { %v1550_v35 = vld [vmem:[%s1861_s0 + $0xe8] sm:$0xff]   ;;  %v1552_v37 = vld [vmem:[%s1861_s0 + $0xf0] sm:$0xff]   ;;  %v1553_v38 = vld [vmem:[%s1861_s0 + $0x78] sm:$0xff]  }
   0xe   :  { %v1554_v39 = vld [vmem:[%s1861_s0 + $0xf8] sm:$0xff]   ;;  %v1698_v40 = vld [vmem:[%s1862_s2] ss:$0 sm:$0xff] }
   0xf   :  { %1426 = vmatpush3.bf16.msra.mxu0 %v1518_v3  ;;  %1510 = vmatpush3.bf16.msra.mxu1 %v1518_v3 }
  0x10   :  { %1427 = vmatprep.subr.bf16.mxu0 %v1519_v6  ;;  %1503 = vmatprep.subr.bf16.mxu1 %v1519_v6 }
  0x13   :  { %1428 = vmatpush3.bf16.msra.mxu0 %v1519_v6  ;;  %1511 = vmatpush3.bf16.msra.mxu1 %v1519_v6 }
  0x14   :  { %1429 = vmatprep.subr.bf16.mxu0 %v1520_v7  ;;  %1504 = vmatprep.subr.bf16.mxu1 %v1520_v7 }
  0x17   :  { %1430 = vmatpush3.bf16.msra.mxu0 %v1520_v7  ;;  %1512 = vmatpush3.bf16.msra.mxu1 %v1520_v7 }
  0x18   :  { %1431 = vmatprep.subr.bf16.mxu0 %v1521_v8  ;;  %1505 = vmatprep.subr.bf16.mxu1 %v1521_v8 }
  0x1b   :  { %1432 = vmatpush3.bf16.msra.mxu0 %v1521_v8  ;;  %1513 = vmatpush3.bf16.msra.mxu1 %v1521_v8 }
  0x1c   :  { %1433 = vmatprep.subr.bf16.mxu0 %v1522_v9  ;;  %1506 = vmatprep.subr.bf16.mxu1 %v1522_v9 }
  0x1f   :  { %1434 = vmatpush3.bf16.msra.mxu0 %v1522_v9  ;;  %1514 = vmatpush3.bf16.msra.mxu1 %v1522_v9 }
  0x22   :  { %1436 = vmatmul.mubr.bf16.vlgmr.msra.gmra.mrb[0].mxu0 %v1525_v10  ;;  %1468 = vmatmul.mubr.bf16.vlgmr.msra.gmra.mrb[0].mxu1 %v1526_v11 }
  0x23   :  { %1439 = vmatprep.mubr.bf16.mxu0 %v1527_v12  ;;  %1471 = vmatprep.mubr.bf16.mxu1 %v1528_v13 }
  0x2a   :  { %1440 = vmatmul.mubr.bf16.gmra.mrb[4].mxu0 %v1529_v14  ;;  %1472 = vmatmul.mubr.bf16.gmra.mrb[4].mxu1 %v1530_v15 }
  0x2b   :  { %1443 = vmatprep.mubr.bf16.mxu0 %v1531_v16  ;;  %1475 = vmatprep.mubr.bf16.mxu1 %v1532_v17 }
  0x32   :  { %1444 = vmatmul.mubr.bf16.gmra.mrb[8].mxu0 %v1533_v18  ;;  %1476 = vmatmul.mubr.bf16.gmra.mrb[8].mxu1 %v1534_v19 }
  0x33   :  { %1447 = vmatprep.mubr.bf16.mxu0 %v1535_v20  ;;  %1479 = vmatprep.mubr.bf16.mxu1 %v1536_v21 }
  0x3a   :  { %1448 = vmatmul.mubr.bf16.gmra.mrb[12].mxu0 %v1537_v22  ;;  %1480 = vmatmul.mubr.bf16.gmra.mrb[12].mxu1 %v1538_v23 }
  0x3b   :  { %1451 = vmatprep.mubr.bf16.mxu0 %v1539_v24  ;;  %1483 = vmatprep.mubr.bf16.mxu1 %v1540_v25 }
  0x42   :  { %1452 = vmatmul.mubr.bf16.gmra.mrb[16].mxu0 %v1541_v26  ;;  %1484 = vmatmul.mubr.bf16.gmra.mrb[16].mxu1 %v1542_v27 }
  0x43   :  { %1455 = vmatprep.mubr.bf16.mxu0 %v1543_v28  ;;  %1487 = vmatprep.mubr.bf16.mxu1 %v1544_v29 }
  0x4a   :  { %1456 = vmatmul.mubr.bf16.gmra.mrb[20].mxu0 %v1545_v30  ;;  %1488 = vmatmul.mubr.bf16.gmra.mrb[20].mxu1 %v1546_v31 }
  0x4b   :  { %1459 = vmatprep.mubr.bf16.mxu0 %v1547_v32  ;;  %1491 = vmatprep.mubr.bf16.mxu1 %v1548_v33 }
  0x52   :  { %1460 = vmatmul.mubr.bf16.gmra.mrb[24].mxu0 %v1549_v34  ;;  %1492 = vmatmul.mubr.bf16.gmra.mrb[24].mxu1 %v1550_v35 }
  0x53   :  { %1463 = vmatprep.mubr.bf16.mxu0 %v1551_v36  ;;  %1495 = vmatprep.mubr.bf16.mxu1 %v1552_v37 }
  0x5a   :  { %1464 = vmatmul.mubr.bf16.gmra.mrb[28].mxu0 %v1553_v38  ;;  %1496 = vmatmul.mubr.bf16.gmra.mrb[28].mxu1 %v1554_v39 }
  0xf5   :  { %v1437_v41 = vpop.f32.mrb[0].mxu0  ;;  %v1469_v42 = vpop.f32.mrb[0].mxu1 }
  0xf6   :  { %v385_v43 = vadd.f32 %v1437_v41, %v1698_v40  ;;  %v513_v44 = vadd.f32 %v1469_v42, %v1698_v40  ;;  %v376_v45 = vpop.f32.mrb[1].mxu0  ;;  %v504_v46 = vpop.f32.mrb[1].mxu1 }
  0xf7   :  { %v377_v47 = vadd.f32 %v1698_v40, %v376_v45  ;;  %v505_v48 = vadd.f32 %v1698_v40, %v504_v46  ;;  %v1438_v49 = vpop.f32.mrb[2].mxu0  ;;  %v1470_v50 = vpop.f32.mrb[2].mxu1 }
  0xf8   :  { %v388_v51 = vadd.f32 %v1438_v49, %v1698_v40  ;;  %v516_v52 = vadd.f32 %v1470_v50, %v1698_v40  ;;  %v379_v53 = vpop.f32.mrb[3].mxu0  ;;  %v507_v54 = vpop.f32.mrb[3].mxu1  ;;  %v633_v57 = vmax.f32 %v385_v43, 0.0  ;;  %v665_v58 = vmax.f32 %v513_v44, 0.0 }
  0xf9   :  { %v380_v55 = vadd.f32 %v1698_v40, %v379_v53  ;;  %v508_v56 = vadd.f32 %v1698_v40, %v507_v54  ;;  %v631_v61 = vmax.f32 %v377_v47, 0.0  ;;  %v663_v62 = vmax.f32 %v505_v48, 0.0 }
  0xfa   :  { %v634_v59 = vmax.f32 %v388_v51, 0.0  ;;  %v666_v60 = vmax.f32 %v516_v52, 0.0 }
  0xfb   :  { %v632_v63 = vmax.f32 %v380_v55, 0.0  ;;  %v664_v0 = vmax.f32 %v508_v56, 0.0 }
  0xfc   :  { %v1196_v1 = vpack.c.bf16 %v634_v59, %v633_v57  ;;  %v1276_v2 = vpack.c.bf16 %v666_v60, %v665_v58 }
  0xfd   :  { %v1191_v3 = vpack.c.bf16 %v632_v63, %v631_v61  ;;  %v1271_v4 = vpack.c.bf16 %v664_v0, %v663_v62  ;;  %v1441_v5 = vpop.f32.mrb[4].mxu0  ;;  %v1473_v6 = vpop.f32.mrb[4].mxu1 }
  0xfe   :  { %1348 = vst [vmem:[%s1863_s3 + $0x8] sm:$0xff] %v1196_v1   ;;  %1364 = vst [vmem:[%s1863_s3 + $0x88] sm:$0xff] %v1276_v2   ;;  %v401_v7 = vadd.f32 %v1441_v5, %v1698_v40  ;;  %v529_v8 = vadd.f32 %v1473_v6, %v1698_v40  ;;  %v392_v9 = vpop.f32.mrb[5].mxu0  ;;  %v520_v10 = vpop.f32.mrb[5].mxu1 }
  0xff   :  { %1192 = vst [vmem:[%s1863_s3] sm:$0xff] %v1191_v3   ;;  %1363 = vst [vmem:[%s1863_s3 + $0x80] sm:$0xff] %v1271_v4   ;;  %v393_v11 = vadd.f32 %v1698_v40, %v392_v9  ;;  %v521_v12 = vadd.f32 %v1698_v40, %v520_v10  ;;  %v1442_v13 = vpop.f32.mrb[6].mxu0  ;;  %v1474_v14 = vpop.f32.mrb[6].mxu1 }
 0x100   :  { %v404_v15 = vadd.f32 %v1442_v13, %v1698_v40  ;;  %v532_v16 = vadd.f32 %v1474_v14, %v1698_v40  ;;  %v395_v17 = vpop.f32.mrb[7].mxu0  ;;  %v523_v18 = vpop.f32.mrb[7].mxu1  ;;  %v637_v21 = vmax.f32 %v401_v7, 0.0  ;;  %v669_v22 = vmax.f32 %v529_v8, 0.0 }
 0x101   :  { %v396_v19 = vadd.f32 %v1698_v40, %v395_v17  ;;  %v524_v20 = vadd.f32 %v1698_v40, %v523_v18  ;;  %v635_v25 = vmax.f32 %v393_v11, 0.0  ;;  %v667_v26 = vmax.f32 %v521_v12, 0.0 }
 0x102   :  { %v638_v23 = vmax.f32 %v404_v15, 0.0  ;;  %v670_v24 = vmax.f32 %v532_v16, 0.0 }
 0x103   :  { %v636_v27 = vmax.f32 %v396_v19, 0.0  ;;  %v668_v28 = vmax.f32 %v524_v20, 0.0 }
 0x104   :  { %v1206_v29 = vpack.c.bf16 %v638_v23, %v637_v21  ;;  %v1286_v30 = vpack.c.bf16 %v670_v24, %v669_v22 }
 0x105   :  { %v1201_v31 = vpack.c.bf16 %v636_v27, %v635_v25  ;;  %v1281_v32 = vpack.c.bf16 %v668_v28, %v667_v26  ;;  %v1445_v33 = vpop.f32.mrb[8].mxu0  ;;  %v1477_v34 = vpop.f32.mrb[8].mxu1 }
 0x106   :  { %1350 = vst [vmem:[%s1863_s3 + $0x18] sm:$0xff] %v1206_v29   ;;  %1366 = vst [vmem:[%s1863_s3 + $0x98] sm:$0xff] %v1286_v30   ;;  %v417_v35 = vadd.f32 %v1445_v33, %v1698_v40  ;;  %v545_v36 = vadd.f32 %v1477_v34, %v1698_v40  ;;  %v408_v37 = vpop.f32.mrb[9].mxu0  ;;  %v536_v38 = vpop.f32.mrb[9].mxu1 }
 0x107   :  { %1349 = vst [vmem:[%s1863_s3 + $0x10] sm:$0xff] %v1201_v31   ;;  %1365 = vst [vmem:[%s1863_s3 + $0x90] sm:$0xff] %v1281_v32   ;;  %v409_v39 = vadd.f32 %v1698_v40, %v408_v37  ;;  %v537_v41 = vadd.f32 %v1698_v40, %v536_v38  ;;  %v1446_v42 = vpop.f32.mrb[10].mxu0  ;;  %v1478_v43 = vpop.f32.mrb[10].mxu1 }
 0x108   :  { %v420_v44 = vadd.f32 %v1446_v42, %v1698_v40  ;;  %v548_v45 = vadd.f32 %v1478_v43, %v1698_v40  ;;  %v411_v46 = vpop.f32.mrb[11].mxu0  ;;  %v539_v47 = vpop.f32.mrb[11].mxu1  ;;  %v641_v50 = vmax.f32 %v417_v35, 0.0  ;;  %v673_v51 = vmax.f32 %v545_v36, 0.0 }
 0x109   :  { %v412_v48 = vadd.f32 %v1698_v40, %v411_v46  ;;  %v540_v49 = vadd.f32 %v1698_v40, %v539_v47  ;;  %v639_v54 = vmax.f32 %v409_v39, 0.0  ;;  %v671_v55 = vmax.f32 %v537_v41, 0.0 }
 0x10a   :  { %v642_v52 = vmax.f32 %v420_v44, 0.0  ;;  %v674_v53 = vmax.f32 %v548_v45, 0.0 }
 0x10b   :  { %v640_v56 = vmax.f32 %v412_v48, 0.0  ;;  %v672_v57 = vmax.f32 %v540_v49, 0.0 }
 0x10c   :  { %v1216_v58 = vpack.c.bf16 %v642_v52, %v641_v50  ;;  %v1296_v59 = vpack.c.bf16 %v674_v53, %v673_v51 }
 0x10d   :  { %v1211_v60 = vpack.c.bf16 %v640_v56, %v639_v54  ;;  %v1291_v61 = vpack.c.bf16 %v672_v57, %v671_v55  ;;  %v1449_v62 = vpop.f32.mrb[12].mxu0  ;;  %v1481_v63 = vpop.f32.mrb[12].mxu1 }
 0x10e   :  { %1352 = vst [vmem:[%s1863_s3 + $0x28] sm:$0xff] %v1216_v58   ;;  %1368 = vst [vmem:[%s1863_s3 + $0xa8] sm:$0xff] %v1296_v59   ;;  %v433_v0 = vadd.f32 %v1449_v62, %v1698_v40  ;;  %v561_v1 = vadd.f32 %v1481_v63, %v1698_v40  ;;  %v424_v2 = vpop.f32.mrb[13].mxu0  ;;  %v552_v3 = vpop.f32.mrb[13].mxu1 }
 0x10f   :  { %1351 = vst [vmem:[%s1863_s3 + $0x20] sm:$0xff] %v1211_v60   ;;  %1367 = vst [vmem:[%s1863_s3 + $0xa0] sm:$0xff] %v1291_v61   ;;  %v425_v4 = vadd.f32 %v1698_v40, %v424_v2  ;;  %v553_v5 = vadd.f32 %v1698_v40, %v552_v3  ;;  %v1450_v6 = vpop.f32.mrb[14].mxu0  ;;  %v1482_v7 = vpop.f32.mrb[14].mxu1 }
 0x110   :  { %v436_v8 = vadd.f32 %v1450_v6, %v1698_v40  ;;  %v564_v9 = vadd.f32 %v1482_v7, %v1698_v40  ;;  %v427_v10 = vpop.f32.mrb[15].mxu0  ;;  %v555_v11 = vpop.f32.mrb[15].mxu1  ;;  %v645_v14 = vmax.f32 %v433_v0, 0.0  ;;  %v677_v15 = vmax.f32 %v561_v1, 0.0 }
 0x111   :  { %v428_v12 = vadd.f32 %v1698_v40, %v427_v10  ;;  %v556_v13 = vadd.f32 %v1698_v40, %v555_v11  ;;  %v643_v18 = vmax.f32 %v425_v4, 0.0  ;;  %v675_v19 = vmax.f32 %v553_v5, 0.0 }
 0x112   :  { %v646_v16 = vmax.f32 %v436_v8, 0.0  ;;  %v678_v17 = vmax.f32 %v564_v9, 0.0 }
 0x113   :  { %v644_v20 = vmax.f32 %v428_v12, 0.0  ;;  %v676_v21 = vmax.f32 %v556_v13, 0.0 }
 0x114   :  { %v1226_v22 = vpack.c.bf16 %v646_v16, %v645_v14  ;;  %v1306_v23 = vpack.c.bf16 %v678_v17, %v677_v15 }
 0x115   :  { %v1221_v24 = vpack.c.bf16 %v644_v20, %v643_v18  ;;  %v1301_v25 = vpack.c.bf16 %v676_v21, %v675_v19  ;;  %v1453_v26 = vpop.f32.mrb[16].mxu0  ;;  %v1485_v27 = vpop.f32.mrb[16].mxu1 }
 0x116   :  { %1354 = vst [vmem:[%s1863_s3 + $0x38] sm:$0xff] %v1226_v22   ;;  %1370 = vst [vmem:[%s1863_s3 + $0xb8] sm:$0xff] %v1306_v23   ;;  %v449_v28 = vadd.f32 %v1453_v26, %v1698_v40  ;;  %v577_v29 = vadd.f32 %v1485_v27, %v1698_v40  ;;  %v440_v30 = vpop.f32.mrb[17].mxu0  ;;  %v568_v31 = vpop.f32.mrb[17].mxu1 }
 0x117   :  { %1353 = vst [vmem:[%s1863_s3 + $0x30] sm:$0xff] %v1221_v24   ;;  %1369 = vst [vmem:[%s1863_s3 + $0xb0] sm:$0xff] %v1301_v25   ;;  %v441_v32 = vadd.f32 %v1698_v40, %v440_v30  ;;  %v569_v33 = vadd.f32 %v1698_v40, %v568_v31  ;;  %v1454_v34 = vpop.f32.mrb[18].mxu0  ;;  %v1486_v35 = vpop.f32.mrb[18].mxu1 }
 0x118   :  { %v452_v36 = vadd.f32 %v1454_v34, %v1698_v40  ;;  %v580_v37 = vadd.f32 %v1486_v35, %v1698_v40  ;;  %v443_v38 = vpop.f32.mrb[19].mxu0  ;;  %v571_v39 = vpop.f32.mrb[19].mxu1  ;;  %v649_v43 = vmax.f32 %v449_v28, 0.0  ;;  %v681_v44 = vmax.f32 %v577_v29, 0.0 }
 0x119   :  { %v444_v41 = vadd.f32 %v1698_v40, %v443_v38  ;;  %v572_v42 = vadd.f32 %v1698_v40, %v571_v39  ;;  %v647_v47 = vmax.f32 %v441_v32, 0.0  ;;  %v679_v48 = vmax.f32 %v569_v33, 0.0 }
 0x11a   :  { %v650_v45 = vmax.f32 %v452_v36, 0.0  ;;  %v682_v46 = vmax.f32 %v580_v37, 0.0 }
 0x11b   :  { %v648_v49 = vmax.f32 %v444_v41, 0.0  ;;  %v680_v50 = vmax.f32 %v572_v42, 0.0 }
 0x11c   :  { %v1236_v51 = vpack.c.bf16 %v650_v45, %v649_v43  ;;  %v1316_v52 = vpack.c.bf16 %v682_v46, %v681_v44 }
 0x11d   :  { %v1231_v53 = vpack.c.bf16 %v648_v49, %v647_v47  ;;  %v1311_v54 = vpack.c.bf16 %v680_v50, %v679_v48  ;;  %v1457_v55 = vpop.f32.mrb[20].mxu0  ;;  %v1489_v56 = vpop.f32.mrb[20].mxu1 }
 0x11e   :  { %1356 = vst [vmem:[%s1863_s3 + $0x48] sm:$0xff] %v1236_v51   ;;  %1372 = vst [vmem:[%s1863_s3 + $0xc8] sm:$0xff] %v1316_v52   ;;  %v465_v57 = vadd.f32 %v1457_v55, %v1698_v40  ;;  %v593_v58 = vadd.f32 %v1489_v56, %v1698_v40  ;;  %v456_v59 = vpop.f32.mrb[21].mxu0  ;;  %v584_v60 = vpop.f32.mrb[21].mxu1 }
 0x11f   :  { %1355 = vst [vmem:[%s1863_s3 + $0x40] sm:$0xff] %v1231_v53   ;;  %1371 = vst [vmem:[%s1863_s3 + $0xc0] sm:$0xff] %v1311_v54   ;;  %v457_v61 = vadd.f32 %v1698_v40, %v456_v59  ;;  %v585_v62 = vadd.f32 %v1698_v40, %v584_v60  ;;  %v1458_v63 = vpop.f32.mrb[22].mxu0  ;;  %v1490_v0 = vpop.f32.mrb[22].mxu1 }
 0x120   :  { %v468_v1 = vadd.f32 %v1458_v63, %v1698_v40  ;;  %v596_v2 = vadd.f32 %v1490_v0, %v1698_v40  ;;  %v459_v3 = vpop.f32.mrb[23].mxu0  ;;  %v587_v4 = vpop.f32.mrb[23].mxu1  ;;  %v653_v7 = vmax.f32 %v465_v57, 0.0  ;;  %v685_v8 = vmax.f32 %v593_v58, 0.0 }
 0x121   :  { %v460_v5 = vadd.f32 %v1698_v40, %v459_v3  ;;  %v588_v6 = vadd.f32 %v1698_v40, %v587_v4  ;;  %v651_v11 = vmax.f32 %v457_v61, 0.0  ;;  %v683_v12 = vmax.f32 %v585_v62, 0.0 }
 0x122   :  { %v654_v9 = vmax.f32 %v468_v1, 0.0  ;;  %v686_v10 = vmax.f32 %v596_v2, 0.0 }
 0x123   :  { %v652_v13 = vmax.f32 %v460_v5, 0.0  ;;  %v684_v14 = vmax.f32 %v588_v6, 0.0 }
 0x124   :  { %v1246_v15 = vpack.c.bf16 %v654_v9, %v653_v7  ;;  %v1326_v16 = vpack.c.bf16 %v686_v10, %v685_v8 }
 0x125   :  { %v1241_v17 = vpack.c.bf16 %v652_v13, %v651_v11  ;;  %v1321_v18 = vpack.c.bf16 %v684_v14, %v683_v12  ;;  %v1461_v19 = vpop.f32.mrb[24].mxu0  ;;  %v1493_v20 = vpop.f32.mrb[24].mxu1 }
 0x126   :  { %1358 = vst [vmem:[%s1863_s3 + $0x58] sm:$0xff] %v1246_v15   ;;  %1374 = vst [vmem:[%s1863_s3 + $0xd8] sm:$0xff] %v1326_v16   ;;  %v481_v21 = vadd.f32 %v1461_v19, %v1698_v40  ;;  %v609_v22 = vadd.f32 %v1493_v20, %v1698_v40  ;;  %v472_v23 = vpop.f32.mrb[25].mxu0  ;;  %v600_v24 = vpop.f32.mrb[25].mxu1 }
 0x127   :  { %1357 = vst [vmem:[%s1863_s3 + $0x50] sm:$0xff] %v1241_v17   ;;  %1373 = vst [vmem:[%s1863_s3 + $0xd0] sm:$0xff] %v1321_v18   ;;  %v473_v25 = vadd.f32 %v1698_v40, %v472_v23  ;;  %v601_v26 = vadd.f32 %v1698_v40, %v600_v24  ;;  %v1462_v27 = vpop.f32.mrb[26].mxu0  ;;  %v1494_v28 = vpop.f32.mrb[26].mxu1 }
 0x128   :  { %v484_v29 = vadd.f32 %v1462_v27, %v1698_v40  ;;  %v612_v30 = vadd.f32 %v1494_v28, %v1698_v40  ;;  %v475_v31 = vpop.f32.mrb[27].mxu0  ;;  %v603_v32 = vpop.f32.mrb[27].mxu1  ;;  %v657_v35 = vmax.f32 %v481_v21, 0.0  ;;  %v689_v36 = vmax.f32 %v609_v22, 0.0 }
 0x129   :  { %v476_v33 = vadd.f32 %v1698_v40, %v475_v31  ;;  %v604_v34 = vadd.f32 %v1698_v40, %v603_v32  ;;  %v655_v39 = vmax.f32 %v473_v25, 0.0  ;;  %v687_v41 = vmax.f32 %v601_v26, 0.0 }
 0x12a   :  { %v658_v37 = vmax.f32 %v484_v29, 0.0  ;;  %v690_v38 = vmax.f32 %v612_v30, 0.0 }
 0x12b   :  { %v656_v42 = vmax.f32 %v476_v33, 0.0  ;;  %v688_v43 = vmax.f32 %v604_v34, 0.0 }
 0x12c   :  { %v1256_v44 = vpack.c.bf16 %v658_v37, %v657_v35  ;;  %v1336_v45 = vpack.c.bf16 %v690_v38, %v689_v36 }
 0x12d   :  { %v1251_v46 = vpack.c.bf16 %v656_v42, %v655_v39  ;;  %v1331_v47 = vpack.c.bf16 %v688_v43, %v687_v41  ;;  %v1465_v48 = vpop.f32.mrb[28].mxu0  ;;  %v1497_v49 = vpop.f32.mrb[28].mxu1 }
 0x12e   :  { %1360 = vst [vmem:[%s1863_s3 + $0x68] sm:$0xff] %v1256_v44   ;;  %1376 = vst [vmem:[%s1863_s3 + $0xe8] sm:$0xff] %v1336_v45   ;;  %v497_v50 = vadd.f32 %v1465_v48, %v1698_v40  ;;  %v625_v51 = vadd.f32 %v1497_v49, %v1698_v40  ;;  %v488_v52 = vpop.f32.mrb[29].mxu0  ;;  %v616_v53 = vpop.f32.mrb[29].mxu1 }
 0x12f   :  { %1359 = vst [vmem:[%s1863_s3 + $0x60] sm:$0xff] %v1251_v46   ;;  %1375 = vst [vmem:[%s1863_s3 + $0xe0] sm:$0xff] %v1331_v47   ;;  %v489_v54 = vadd.f32 %v1698_v40, %v488_v52  ;;  %v617_v55 = vadd.f32 %v1698_v40, %v616_v53  ;;  %v1466_v56 = vpop.f32.mrb[30].mxu0  ;;  %v1498_v57 = vpop.f32.mrb[30].mxu1 }
 0x130   :  { %v500_v58 = vadd.f32 %v1466_v56, %v1698_v40  ;;  %v628_v59 = vadd.f32 %v1498_v57, %v1698_v40  ;;  %v491_v60 = vpop.f32.mrb[31].mxu0  ;;  %v619_v61 = vpop.f32.mrb[31].mxu1  ;;  %v661_v0 = vmax.f32 %v497_v50, 0.0  ;;  %v693_v1 = vmax.f32 %v625_v51, 0.0 }
 0x131   :  { %v492_v62 = vadd.f32 %v1698_v40, %v491_v60  ;;  %v620_v63 = vadd.f32 %v1698_v40, %v619_v61  ;;  %v659_v4 = vmax.f32 %v489_v54, 0.0  ;;  %v691_v5 = vmax.f32 %v617_v55, 0.0 }
 0x132   :  { %v662_v2 = vmax.f32 %v500_v58, 0.0  ;;  %v694_v3 = vmax.f32 %v628_v59, 0.0 }
 0x133   :  { %v660_v6 = vmax.f32 %v492_v62, 0.0  ;;  %v692_v7 = vmax.f32 %v620_v63, 0.0 }
 0x134   :  { %v1266_v8 = vpack.c.bf16 %v662_v2, %v661_v0  ;;  %v1346_v9 = vpack.c.bf16 %v694_v3, %v693_v1 }
 0x135   :  { %v1261_v10 = vpack.c.bf16 %v660_v6, %v659_v4  ;;  %v1341_v11 = vpack.c.bf16 %v692_v7, %v691_v5 }
 0x136   :  { %1362 = vst [vmem:[%s1863_s3 + $0x78] sm:$0xff] %v1266_v8   ;;  %1378 = vst [vmem:[%s1863_s3 + $0xf8] sm:$0xff] %v1346_v9  }
 0x137   :  { %1361 = vst [vmem:[%s1863_s3 + $0x70] sm:$0xff] %v1261_v10   ;;  %1377 = vst [vmem:[%s1863_s3 + $0xf0] sm:$0xff] %v1341_v11  }

// kernel: bottleneck_forward.3
= control target key start
LH: loop header
LB: loop body
LE: loop exit
PB: predicated region body
PF: predicated region fallthrough
CT: control target
= control target key end

     0   :  { %s5818_s24 = smov 0   ;;  %s5820_s25 = smov 0   ;;  %s7120_s0 = inlined_call_operand.vmem [shape: bf16[2,18,18,128], index: 0, kind: input, shape index: {}]   ;;  %s7121_s1 = inlined_call_operand.vmem [shape: bf16[3,384,128], index: 1, kind: input, shape index: {}]   ;;  %s7122_s2 = inlined_call_operand.vmem [shape: f32[1,128], index: 2, kind: input, shape index: {}]   ;;  %s7123_s3 = inlined_call_operand.vmem [shape: bf16[128,128], index: 3, kind: input, shape index: {}]   ;;  %s7124_s4 = inlined_call_operand.vmem [shape: f32[1,128], index: 4, kind: input, shape index: {}]   ;;  %s7125_s5 = inlined_call_operand.vmem [shape: bf16[512,128], index: 5, kind: input, shape index: {}]   ;;  %s7126_s6 = inlined_call_operand.vmem [shape: bf16[128,128], index: 6, kind: input, shape index: {}]   ;;  %s7127_s7 = inlined_call_operand.vmem [shape: f32[512,128], index: 7, kind: output, shape index: {}]  }
   0x1   :  { %s5822_s26 = smov 0  }
   0x2 LB: > { %s29_s27 = sadd.s32 1, %s5772_s25  ;;  %p4171_p0 = scmp.ge.s32.totalorder %s5776_s26, 1  ;;  %s5776_s26 = sphi %s5822_s26, %s17_s26   ;;  %s5772_s25 = sphi %s5820_s25, %s7137_s25   ;;  %s5768_s24 = sphi %s5818_s24, %s7136_s24  }
   0x3   : > { %p31_p1 = scmp.ge.s32.totalorder %s29_s27, 2  ;;  %p266_p2 = scmp.lt.s32.totalorder %s5776_s26, 3 }
   0x5   : > { %s7139_s27 = smov (%p31_p1, %s29_s27), 0  ;;  %p267_p3 = pnand %p4171_p0, %p266_p2 }
   0x7   : > { %270 = sbr.rel (%p267_p3) target bundleno = 899 (0x383), region = 48 }
   0xe   : > { %v5534_v0 = vld [vmem:[%s7121_s1 + $0x100] sm:$0xff]   ;;  %v5536_v2 = vld [vmem:[%s7121_s1 + $0x108] sm:$0xff]   ;;  %p305_p4 = scmp.lt.s32.totalorder %s5768_s24, 1  ;;  %v5538_v4 = vld [vmem:[%s7121_s1 + $0x110] sm:$0xff]   ;;  %vm523_vm0 = vsmask.f32 7424 }
   0xf   : > { %v5535_v1 = vld [vmem:[%s7121_s1 + $0xc0] sm:$0xff]   ;;  %5269 = vmatprep.subr.bf16.mxu1 %v5534_v0  ;;  %4573 = vmatprep.subr.bf16.mxu0 %v5534_v0  ;;  %v5537_v3 = vld [vmem:[%s7121_s1 + $0xc8] sm:$0xff]   ;;  %v5539_v5 = vld [vmem:[%s7121_s1 + $0xd0] sm:$0xff]   ;;  %vm732_vm1 = vcmask 1046528   ;;  %s4173_s30 = sshll.u32 %s5768_s24, 5 }
  0x10   : > { %5277 = vmatpush3.bf16.msra.mxu1 %v5535_v1  ;;  %4574 = vmatpush3.bf16.msra.mxu0 %v5535_v1  ;;  %s306_s15 = scalar_select %p305_p4, %s5768_s24, 1  ;;  %v5540_v6 = vld [vmem:[%s7121_s1 + $0x118] sm:$0xff]   ;;  %v5542_v8 = vld [vmem:[%s7121_s1 + $0x120] sm:$0xff]   ;;  %v5544_v10 = vld [vmem:[%s7121_s1 + $0x128] sm:$0xff]  }
  0x11   : > { %5270 = vmatprep.subr.bf16.mxu1 %v5536_v2  ;;  %4575 = vmatprep.subr.bf16.mxu0 %v5536_v2  ;;  %v5541_v7 = vld [vmem:[%s7121_s1 + $0xd8] sm:$0xff]   ;;  %v5543_v9 = vld [vmem:[%s7121_s1 + $0xe0] sm:$0xff]   ;;  %v5545_v11 = vld [vmem:[%s7121_s1 + $0xe8] sm:$0xff]   ;;  %p312_p5 = scmp.lt.s32.totalorder %s4173_s30, 63 }
  0x12   : > { %s5509_s20 = smul.u32 216, %s306_s15  ;;  %v5546_v14 = vld [vmem:[%s7121_s1 + $0x130] sm:$0xff]   ;;  %v5548_v23 = vld [vmem:[%s7121_s1 + $0x138] sm:$0xff]   ;;  %v5552_v41 = vld [vmem:[%s7121_s1 + $0x140] sm:$0xff]  }
  0x13   : > { %v5547_v19 = vld [vmem:[%s7121_s1 + $0xf0] sm:$0xff]   ;;  %v5549_v31 = vld [vmem:[%s7121_s1 + $0xf8] sm:$0xff]   ;;  %v5555_v49 = vld [vmem:[%s7121_s1 + $0x148] sm:$0xff]   ;;  %s7141_s30 = smov (!%p312_p5, %s4173_s30), 63 }
  0x14   : > { %5278 = vmatpush3.bf16.msra.mxu1 %v5537_v3  ;;  %4576 = vmatpush3.bf16.msra.mxu0 %v5537_v3  ;;  %s5870_s8 = scalar_lea.vmem %s7120_s0, %s5509_s20  ;;  %v5558_v62 = vld [vmem:[%s7121_s1 + $0x150] sm:$0xff]   ;;  %s4174_s9 = sshll.u32 %s7141_s30, 2 }
  0x15   : > { %5271 = vmatprep.subr.bf16.mxu1 %v5538_v4  ;;  %4577 = vmatprep.subr.bf16.mxu0 %v5538_v4  ;;  %v5882_v12 = vld [vmem:[%s5870_s8 + $0x9c] sm:$0xff]   ;;  %v5885_v13 = vld [vmem:[%s5870_s8 + $0xa4] ss:$0 sps:$4 sm:$0x11]   ;;  %v5894_v18 = vld [vmem:[%s5870_s8 + $0xc] sm:$0xff]   ;;  %s6927_s12 = scalar_lea.vmem %s7125_s5, %s4174_s9  ;;  %s4176_s13 = sshll.u32 %s7141_s30, 3 }
  0x16   : > { %v1186_v15 = vshrl.u32 %v5882_v12, 16  ;;  %v1188_v16 = vshll.u32 %v5882_v12, 16  ;;  %v1193_v17 = vshll.u32 %v5885_v13, 16  ;;  %v5900_v22 = vld [vmem:[%s5870_s8 + $0x14] ss:$0 sps:$4 sm:$0x11]   ;;  %s7046_s15 = scalar_lea.vmem %s7127_s7, %s4176_s13 }
  0x17   : > { %v1042_v24 = vshrl.u32 %v5894_v18, 16  ;;  %v1044_v25 = vshll.u32 %v5894_v18, 16  ;;  %v1049_v27 = vshll.u32 %v5900_v22, 16  ;;  %v5909_v28 = vld [vmem:[%s5870_s8 + $0xa8] sm:$0xff]   ;;  %v5922_v38 = vld [vmem:[%s5870_s8 + $0x18] sm:$0xff]   ;;  %v5963_v4 = vld [vmem:[%s5870_s8 + $0xc0] sm:$0xff]  }
  0x18   : > { %5279 = vmatpush3.bf16.msra.mxu1 %v5539_v5  ;;  %4578 = vmatpush3.bf16.msra.mxu0 %v5539_v5  ;;  %v1190_v20 = vrot.slane %v1188_v16, 1  ;;  %v1195_v21 = vrot.slane %v1193_v17, 1  ;;  %v5912_v30 = vld [vmem:[%s5870_s8 + $0xb0] ss:$0 sps:$4 sm:$0x11]   ;;  %v1198_v34 = vshrl.u32 %v5909_v28, 16 }
  0x19   : > { %5272 = vmatprep.subr.bf16.mxu1 %v5540_v6  ;;  %4579 = vmatprep.subr.bf16.mxu0 %v5540_v6  ;;  %v1046_v29 = vrot.slane %v1044_v25, 1  ;;  %v1051_v33 = vrot.slane %v1049_v27, 1  ;;  %v1200_v35 = vshll.u32 %v5909_v28, 16  ;;  %v1205_v37 = vshll.u32 %v5912_v30, 16  ;;  %v5935_v48 = vld [vmem:[%s5870_s8 + $0xb4] sm:$0xff]   ;;  %v5951_v60 = vld [vmem:[%s5870_s8 + $0x24] sm:$0xff]  }
  0x1a   : > { %v1191_v26 = vor.u32 %v1190_v20, %v1186_v15  ;;  %v5925_v40 = vld [vmem:[%s5870_s8 + $0x20] ss:$0 sps:$4 sm:$0x11]   ;;  %v1054_v44 = vshrl.u32 %v5922_v38, 16  ;;  %v1056_v45 = vshll.u32 %v5922_v38, 16  ;;  %v1210_v53 = vshrl.u32 %v5935_v48, 16 }
  0x1b   : > { %v1047_v36 = vor.u32 %v1046_v29, %v1042_v24  ;;  %v1202_v39 = vrot.slane %v1200_v35, 1  ;;  %v1207_v43 = vrot.slane %v1205_v37, 1  ;;  %v1061_v47 = vshll.u32 %v5925_v40, 16  ;;  %v5941_v52 = vld [vmem:[%s5870_s8 + $0xbc] ss:$0 sps:$4 sm:$0x11]  }
  0x1c   : > { %5280 = vmatpush3.bf16.msra.mxu1 %v5541_v7  ;;  %4580 = vmatpush3.bf16.msra.mxu0 %v5541_v7  ;;  %v1196_v32 = vsel %vm523_vm0, %v1191_v26, %v1195_v21  ;;  %v1058_v50 = vrot.slane %v1056_v45, 1  ;;  %v1212_v54 = vshll.u32 %v5935_v48, 16  ;;  %v1217_v58 = vshll.u32 %v5941_v52, 16  ;;  %v5954_v61 = vld [vmem:[%s5870_s8 + $0x2c] ss:$0 sps:$4 sm:$0x11]  }
  0x1d   : > { %5273 = vmatprep.subr.bf16.mxu1 %v5542_v8  ;;  %4581 = vmatprep.subr.bf16.mxu0 %v5542_v8  ;;  %v1052_v42 = vsel %vm523_vm0, %v1047_v36, %v1051_v33  ;;  %v1203_v46 = vor.u32 %v1202_v39, %v1198_v34  ;;  %v1063_v51 = vrot.slane %v1061_v47, 1  ;;  %v1066_v1 = vshrl.u32 %v5951_v60, 16  ;;  %v5966_v5 = vld [vmem:[%s5870_s8 + $0xc8] ss:$0 sps:$4 sm:$0x11]   ;;  %v5561_v6 = vld [vmem:[%s7121_s1 + $0x158] sm:$0xff]  }
  0x1e   : > { %1634 = vmatprep.mubr.bf16.mxu1 %v1196_v32  ;;  %1538 = vmatprep.mubr.bf16.mxu0 %v1052_v42  ;;  %v1059_v56 = vor.u32 %v1058_v50, %v1054_v44  ;;  %v1214_v57 = vrot.slane %v1212_v54, 1  ;;  %v1219_v63 = vrot.slane %v1217_v58, 1  ;;  %v1068_v2 = vshll.u32 %v5951_v60, 16  ;;  %v5564_v26 = vld [vmem:[%s7121_s1 + $0x160] sm:$0xff]   ;;  %v5567_v36 = vld [vmem:[%s7121_s1 + $0x168] sm:$0xff]   ;;  %v5570_v45 = vld [vmem:[%s7121_s1 + $0x170] sm:$0xff]  }
  0x1f   : > { %v1208_v55 = vsel %vm523_vm0, %v1203_v46, %v1207_v43  ;;  %v1073_v3 = vshll.u32 %v5954_v61, 16  ;;  %v1229_v17 = vshll.u32 %v5966_v5, 16  ;;  %v5991_v33 = vld [vmem:[%s5870_s8 + $0x3c] sm:$0xff]   ;;  %v5994_v34 = vld [vmem:[%s5870_s8 + $0x44] ss:$0 sps:$4 sm:$0x11]  }
  0x20   : > { %5281 = vmatpush3.bf16.msra.mxu1 %v5543_v9  ;;  %4582 = vmatpush3.bf16.msra.mxu0 %v5543_v9  ;;  %v1064_v59 = vsel %vm523_vm0, %v1059_v56, %v1063_v51  ;;  %v1215_v0 = vor.u32 %v1214_v57, %v1210_v53  ;;  %v1070_v7 = vrot.slane %v1068_v2, 1  ;;  %v1224_v9 = vshll.u32 %v5963_v4, 16  ;;  %v6005_v44 = vld [vmem:[%s5870_s8 + $0x48] sm:$0xff]   ;;  %v6015_v51 = vld [vmem:[%s5870_s8 + $0x50] ss:$0 sps:$4 sm:$0x11]  }
  0x21   : > { %5274 = vmatprep.subr.bf16.mxu1 %v5544_v10  ;;  %4583 = vmatprep.subr.bf16.mxu0 %v5544_v10  ;;  %v1075_v8 = vrot.slane %v1073_v3, 1  ;;  %v1222_v10 = vshrl.u32 %v5963_v4, 16  ;;  %v1231_v29 = vrot.slane %v1229_v17, 1  ;;  %v1092_v35 = vshll.u32 %v5991_v33, 16  ;;  %v5573_v54 = vld [vmem:[%s7121_s1 + $0x178] sm:$0xff]  }
  0x22   : > { %v1071_v15 = vor.u32 %v1070_v7, %v1066_v1  ;;  %v1226_v16 = vrot.slane %v1224_v9, 1  ;;  %v1090_v39 = vshrl.u32 %v5991_v33, 16  ;;  %v1249_v46 = vrot.slane %v5894_v18, 1  ;;  %v6023_v56 = vld [vmem:[%s5870_s8 + $0x54] sm:$0xff]   ;;  %v6047_v9 = vld [vmem:[%s5870_s8 + $0x60] sm:$0xff]  }
  0x23   : > { %v1094_v43 = vrot.slane %v1092_v35, 1  ;;  %v1250_v47 = vrot.slane %v5900_v22, 1  ;;  %v1104_v53 = vshll.u32 %v6005_v44, 16  ;;  %v1102_v22 = vshrl.u32 %v6005_v44, 16  ;;  %v5597_v35 = vld [vmem:[%s7121_s1 + $0x180] sm:$0xff]  }
  0x24   : > { %5282 = vmatpush3.bf16.msra.mxu1 %v5545_v11  ;;  %4584 = vmatpush3.bf16.msra.mxu0 %v5545_v11  ;;  %v5974_v11 = vld [vmem:[%s5870_s8 + $0x30] sm:$0xff]   ;;  %v1227_v27 = vor.u32 %v1226_v16, %v1222_v10  ;;  %v1109_v58 = vshll.u32 %v6015_v51, 16  ;;  %v1255_v1 = vrot.slane %v5951_v60, 1  ;;  %v1256_v2 = vrot.slane %v5954_v61, 1  ;;  %v5578_v10 = vld [vmem:[%s7121_s1 + $0x48] sm:$0xff]  }
  0x25   : > { %5275 = vmatprep.subr.bf16.mxu1 %v5546_v14  ;;  %4585 = vmatprep.subr.bf16.mxu0 %v5546_v14  ;;  %v1220_v14 = vsel %vm523_vm0, %v1215_v0, %v1219_v63  ;;  %v1078_v20 = vshrl.u32 %v5974_v11, 16  ;;  %v1080_v21 = vshll.u32 %v5974_v11, 16  ;;  %v1095_v50 = vor.u32 %v1094_v43, %v1090_v39  ;;  %v6033_v63 = vld [vmem:[%s5870_s8 + $0x5c] ss:$0 sps:$4 sm:$0x11]   ;;  %v5574_v0 = vld [vmem:[%s7121_s1 + $0x40] sm:$0xff]  }
  0x26   : > { %v1232_v37 = vsel %vm523_vm0, %v1227_v27, %v1231_v29  ;;  %v1106_v57 = vrot.slane %v1104_v53, 1  ;;  %v1116_v3 = vshll.u32 %v6023_v56, 16  ;;  %v1258_v61 = vrot.slane %v5974_v11, 1  ;;  %v5588_v39 = vld [vmem:[%s7121_s1 + $0x58] sm:$0xff]  }
  0x27   : > { %v1082_v24 = vrot.slane %v1080_v21, 1  ;;  %v1261_v21 = vrot.slane %v5991_v33, 1  ;;  %v1128_v27 = vshll.u32 %v6047_v9, 16 }
  0x28   : > { %5283 = vmatpush3.bf16.msra.mxu1 %v5547_v19  ;;  %4586 = vmatpush3.bf16.msra.mxu0 %v5547_v19  ;;  %v5979_v19 = vld [vmem:[%s5870_s8 + $0x38] ss:$0 sps:$4 sm:$0x11]  }
  0x29   : > { %5276 = vmatprep.subr.bf16.mxu1 %v5548_v23  ;;  %4587 = vmatprep.subr.bf16.mxu0 %v5548_v23  ;;  %v1076_v23 = vsel %vm523_vm0, %v1071_v15, %v1075_v8  ;;  %v1085_v25 = vshll.u32 %v5979_v19, 16  ;;  %v1121_v8 = vshll.u32 %v6033_v63, 16  ;;  %v1118_v15 = vrot.slane %v1116_v3, 1 }
  0x2a   : > { %v1259_v16 = vrot.slane %v5979_v19, 1  ;;  %v5582_v19 = vld [vmem:[%s7121_s1 + $0x50] sm:$0xff]  }
  0x2b   : > { %v1087_v32 = vrot.slane %v1085_v25, 1  ;;  %v1123_v25 = vrot.slane %v1121_v8, 1  ;;  %v1285_v8 = vrot.slane %v5882_v12, 1 }
  0x2c   : > { %5284 = vmatpush3.bf16.msra.mxu1 %v5549_v31  ;;  %4588 = vmatpush3.bf16.msra.mxu0 %v5549_v31  ;;  %v1083_v31 = vor.u32 %v1082_v24, %v1078_v20  ;;  %v5581_v20 = vld [vmem:[%s7121_s1 + $0x8] sm:$0xff]   ;;  %v1265_v24 = vrot.slane %v6015_v51, 1  ;;  %v1270_v51 = vrot.slane %v6047_v9, 1 }
  0x2d   : > { %5029 = vmatprep.subr.bf16.mxu1 %v5552_v41 }
  0x2e   : > { %v1088_v42 = vsel %vm523_vm0, %v1083_v31, %v1087_v32  ;;  %v6073_v31 = vld [vmem:[%s5870_s8 + $0x6c] sm:$0xff]   ;;  %v1267_v32 = vrot.slane %v6023_v56, 1 }
  0x2f   : > { %1635 = vmatmul.mubr.bf16.vlgmr.msra.gmra.mrb[0].mxu1 %v5882_v12  ;;  %1539 = vmatmul.mubr.bf16.vlgmr.msra.gmra.mrb[0].mxu0 %v5894_v18  ;;  %v1140_v53 = vshll.u32 %v6073_v31, 16  ;;  %v5605_v12 = vld [vmem:[%s7121_s1 + $0x28] sm:$0xff]  }
  0x30   : > { %5030 = vmatpush3.bf16.msra.mxu1 %v5552_v41  ;;  %1642 = vmatprep.mubr.bf16.mxu1 %v1208_v55  ;;  %v1097_v41 = vshll.u32 %v5994_v34, 16  ;;  %v1251_v55 = vsel %vm732_vm1, %v1249_v46, %v1250_v47  ;;  %v1130_v46 = vrot.slane %v1128_v27, 1 }
  0x31   : > { %5031 = vmatprep.subr.bf16.mxu1 %v5555_v49  ;;  %1546 = vmatprep.mubr.bf16.mxu0 %v1064_v59  ;;  %v1252_v59 = vrot.slane %v5922_v38, 1 }
  0x34   : > { %5032 = vmatpush3.bf16.msra.mxu1 %v5555_v49  ;;  %v1099_v49 = vrot.slane %v1097_v41, 1  ;;  %v1126_v41 = vshrl.u32 %v6047_v9, 16 }
  0x35   : > { %5033 = vmatprep.subr.bf16.mxu1 %v5558_v62 }
  0x36   : > { %v1100_v18 = vsel %vm523_vm0, %v1095_v50, %v1099_v49  ;;  %v6098_v49 = vld [vmem:[%s5870_s8 + $0x74] ss:$0 sps:$4 sm:$0x11]   ;;  %v5601_v50 = vld [vmem:[%s7121_s1 + $0x188] sm:$0xff]  }
  0x37   : > { %1643 = vmatmul.mubr.bf16.gmra.mrb[4].mxu1 %v5909_v28  ;;  %1547 = vmatmul.mubr.bf16.gmra.mrb[4].mxu0 %v5922_v38  ;;  %v1107_v38 = vor.u32 %v1106_v57, %v1102_v22  ;;  %v1273_v57 = vrot.slane %v6073_v31, 1 }
  0x38   : > { %5034 = vmatpush3.bf16.msra.mxu1 %v5558_v62  ;;  %1650 = vmatprep.mubr.bf16.mxu1 %v1220_v14  ;;  %v1253_v62 = vrot.slane %v5925_v40, 1  ;;  %v5577_v40 = vld [vmem:[%s7121_s1] sm:$0xff]   ;;  %v1114_v14 = vshrl.u32 %v6023_v56, 16 }
  0x39   : > { %5035 = vmatprep.subr.bf16.mxu1 %v5561_v6  ;;  %1554 = vmatprep.mubr.bf16.mxu0 %v1076_v23  ;;  %v1264_v23 = vrot.slane %v6005_v44, 1 }
  0x3a   : > { %v1254_v7 = vsel %vm732_vm1, %v1252_v59, %v1253_v62  ;;  %v1119_v29 = vor.u32 %v1118_v15, %v1114_v14  ;;  %v1138_v59 = vshrl.u32 %v6073_v31, 16  ;;  %v1145_v62 = vshll.u32 %v6098_v49, 16  ;;  %v5593_v14 = vld [vmem:[%s5870_s8 + $0x80] ss:$0 sps:$4 sm:$0x11]  }
  0x3b   : > { %v1288_v15 = vrot.slane %v5909_v28, 1 }
  0x3c   : > { %5036 = vmatpush3.bf16.msra.mxu1 %v5561_v6  ;;  %v1111_v6 = vrot.slane %v1109_v58, 1  ;;  %v6112_v58 = vld [vmem:[%s5870_s8 + $0x78] sm:$0xff]  }
  0x3d   : > { %5037 = vmatprep.subr.bf16.mxu1 %v5564_v26  ;;  %v1152_v3 = vshll.u32 %v6112_v58, 16 }
  0x3e   : > { %v1112_v17 = vsel %vm523_vm0, %v1107_v38, %v1111_v6  ;;  %v5606_v38 = vld [vmem:[%s7121_s1 + $0x1d0] sm:$0xff]  }
  0x3f   : > { %1651 = vmatmul.mubr.bf16.gmra.mrb[8].mxu1 %v5935_v48  ;;  %1555 = vmatmul.mubr.bf16.gmra.mrb[8].mxu0 %v5951_v60  ;;  %v1257_v60 = vsel %vm732_vm1, %v1255_v1, %v1256_v2  ;;  %v1266_v1 = vsel %vm732_vm1, %v1264_v23, %v1265_v24  ;;  %v5604_v2 = vld [vmem:[%s7121_s1 + $0x68] sm:$0xff]   ;;  %v5612_v24 = vld [vmem:[%s7121_s1 + $0x1e0] sm:$0xff]  }
  0x40   : > { %5038 = vmatpush3.bf16.msra.mxu1 %v5564_v26  ;;  %1658 = vmatprep.mubr.bf16.mxu1 %v1232_v37  ;;  %v6069_v26 = vld [vmem:[%s5870_s8 + $0x68] ss:$0 sps:$4 sm:$0x11]   ;;  %v1260_v37 = vsel %vm732_vm1, %v1258_v61, %v1259_v16  ;;  %v1286_v61 = vrot.slane %v5885_v13, 1  ;;  %v1289_v16 = vrot.slane %v5912_v30, 1  ;;  %v5610_v30 = vld [vmem:[%s7121_s1 + $0x70] sm:$0xff]  }
  0x41   : > { %5039 = vmatprep.subr.bf16.mxu1 %v5567_v36  ;;  %1562 = vmatprep.mubr.bf16.mxu0 %v1088_v42  ;;  %v5598_v42 = vld [vmem:[%s7121_s1 + $0x1c8] sm:$0xff]   ;;  %v1133_v47 = vshll.u32 %v6069_v26, 16 }
  0x42   : > { %v6149_v13 = vsel %vm732_vm1, %v1285_v8, %v1286_v61  ;;  %v6159_v28 = vsel %vm732_vm1, %v1288_v15, %v1289_v16  ;;  %v5600_v23 = vld [vmem:[%s5870_s8 + $0x8c] ss:$0 sps:$4 sm:$0x11]   ;;  %v5626_v15 = vld [vmem:[%s5870_s8 + $0x20] ss:$0 sps:$4 sm:$0x11]  }
  0x43   : > { %v1135_v22 = vrot.slane %v1133_v47, 1 }
  0x44   : > { %5040 = vmatpush3.bf16.msra.mxu1 %v5567_v36  ;;  %v5585_v36 = vld [vmem:[%s7121_s1 + $0x10] sm:$0xff]  }
  0x45   : > { %5041 = vmatprep.subr.bf16.mxu1 %v5570_v45 }
  0x47   : > { %1659 = vmatmul.mubr.bf16.gmra.mrb[12].mxu1 %v5963_v4  ;;  %1563 = vmatmul.mubr.bf16.gmra.mrb[12].mxu0 %v5974_v11  ;;  %v1262_v11 = vrot.slane %v5994_v34, 1  ;;  %v5596_v34 = vld [vmem:[%s7121_s1 + $0x1c0] sm:$0xff]  }
  0x48   : > { %5042 = vmatpush3.bf16.msra.mxu1 %v5570_v45  ;;  %5045 = vmatprep.mubr.bf16.mxu1 %v1251_v55  ;;  %v1124_v45 = vsel %vm523_vm0, %v1119_v29, %v1123_v25  ;;  %v5589_v55 = vld [vmem:[%s7121_s1 + $0x18] sm:$0xff]   ;;  %v1157_v25 = vshll.u32 %v5593_v14, 16  ;;  %v5613_v29 = vld [vmem:[%s7121_s1 + $0x1a0] sm:$0xff]  }
  0x49   : > { %5043 = vmatprep.subr.bf16.mxu1 %v5573_v54  ;;  %1570 = vmatprep.mubr.bf16.mxu0 %v1100_v18  ;;  %v1263_v43 = vsel %vm732_vm1, %v1261_v21, %v1262_v11  ;;  %v1131_v18 = vor.u32 %v1130_v46, %v1126_v41  ;;  %v6155_v21 = vld [vmem:[%s5870_s8 + $0x84] sm:$0xff]   ;;  %v1150_v11 = vshrl.u32 %v6112_v58, 16  ;;  %v1277_v41 = vrot.slane %v5593_v14, 1 }
  0x4a   : > { %4845 = vmatprep.subr.bf16.mxu0 %v5596_v34  ;;  %v1159_v46 = vrot.slane %v1157_v25, 1  ;;  %v1164_v47 = vshll.u32 %v6155_v21, 16  ;;  %v5622_v14 = vld [vmem:[%s5870_s8 + $0x8] ss:$0 sps:$4 sm:$0x11]  }
  0x4b   : > { %4846 = vmatpush3.bf16.msra.mxu0 %v5597_v35  ;;  %v5614_v35 = vld [vmem:[%s7121_s1 + $0x1e8] sm:$0xff]  }
  0x4c   : > { %5044 = vmatpush3.bf16.msra.mxu1 %v5573_v54  ;;  %4847 = vmatprep.subr.bf16.mxu0 %v5598_v42  ;;  %v1271_v54 = vrot.slane %v6069_v26, 1  ;;  %v5611_v26 = vld [vmem:[%s7121_s1 + $0x30] sm:$0xff]   ;;  %v1279_v42 = vrot.slane %v6155_v21, 1  ;;  %v6254_v25 = vld [vmem:[%s5870_s8 + $0x24] sm:$0xff]  }
  0x4d   : > { %4709 = vmatprep.subr.bf16.mxu1 %v5574_v0  ;;  %v5595_v0 = vld [vmem:[%s7121_s1 + $0x20] sm:$0xff]  }
  0x4e   : > { %v1272_v27 = vsel %vm732_vm1, %v1270_v51, %v1271_v54  ;;  %v5603_v51 = vld [vmem:[%s5870_s8 + $0x98] ss:$0 sps:$4 sm:$0x11]  }
  0x4f   : > { %5046 = vmatmul.mubr.bf16.vlgmr.msra.gmra.mrb[16].mxu1 %v1254_v7  ;;  %1571 = vmatmul.mubr.bf16.gmra.mrb[16].mxu0 %v5991_v33  ;;  %v1268_v33 = vrot.slane %v6033_v63, 1  ;;  %v1142_v63 = vrot.slane %v1140_v53, 1  ;;  %v5607_v7 = vld [vmem:[%s7121_s1 + $0x190] sm:$0xff]   ;;  %v1181_v61 = vshll.u32 %v5603_v51, 16 }
  0x50   : > { %4710 = vmatpush3.bf16.msra.mxu1 %v5577_v40  ;;  %5049 = vmatprep.mubr.bf16.mxu1 %v1257_v60  ;;  %v1136_v40 = vsel %vm523_vm0, %v1131_v18, %v1135_v22  ;;  %v5608_v60 = vld [vmem:[%s7121_s1 + $0x1d8] sm:$0xff]   ;;  %v1162_v22 = vshrl.u32 %v6155_v21, 16 }
  0x51   : > { %4711 = vmatprep.subr.bf16.mxu1 %v5578_v10  ;;  %1578 = vmatprep.mubr.bf16.mxu0 %v1112_v17  ;;  %v1269_v6 = vsel %vm732_vm1, %v1267_v32, %v1268_v33  ;;  %v1274_v10 = vrot.slane %v6098_v49, 1  ;;  %v1147_v17 = vrot.slane %v1145_v62, 1  ;;  %v1291_v32 = vrot.slane %v5935_v48, 1  ;;  %v5617_v49 = vld [vmem:[%s7121_s1 + $0x38] sm:$0xff]  }
  0x52   : > { %4848 = vmatpush3.bf16.msra.mxu0 %v5601_v50  ;;  %v1276_v48 = vrot.slane %v6112_v58, 1  ;;  %v5618_v50 = vld [vmem:[%s7121_s1 + $0x1f0] sm:$0xff]   ;;  %v5620_v62 = vld [vmem:[%s7121_s1 + $0x1f8] sm:$0xff]  }
  0x53   : > { %4849 = vmatprep.subr.bf16.mxu0 %v5606_v38  ;;  %v1275_v33 = vsel %vm732_vm1, %v1273_v57, %v1274_v10  ;;  %v1166_v57 = vrot.slane %v1164_v47, 1  ;;  %v6239_v10 = vld [vmem:[%s5870_s8 + $0x18] sm:$0xff]  }
  0x54   : > { %4712 = vmatpush3.bf16.msra.mxu1 %v5581_v20  ;;  %v1143_v20 = vor.u32 %v1142_v63, %v1138_v59  ;;  %v1278_v53 = vsel %vm732_vm1, %v1276_v48, %v1277_v41  ;;  %v5619_v59 = vld [vmem:[%s7121_s1 + $0x1b0] sm:$0xff]   ;;  %v6224_v63 = vld [vmem:[%s7121_s1 + $0x80] sm:$0xff]  }
  0x55   : > { %4713 = vmatprep.subr.bf16.mxu1 %v5582_v19  ;;  %v1154_v19 = vrot.slane %v1152_v3, 1 }
  0x56   : > { %4850 = vmatpush3.bf16.msra.mxu0 %v5607_v7  ;;  %v1148_v34 = vsel %vm523_vm0, %v1143_v20, %v1147_v17  ;;  %v1183_v17 = vrot.slane %v1181_v61, 1 }
  0x57   : > { %5050 = vmatmul.mubr.bf16.gmra.mrb[20].mxu1 %v1260_v37  ;;  %1579 = vmatmul.mubr.bf16.gmra.mrb[20].mxu0 %v6005_v44  ;;  %v5594_v44 = vld [vmem:[%s7121_s1 + $0x60] sm:$0xff]   ;;  %v1294_v37 = vrot.slane %v5963_v4, 1  ;;  %v1280_v4 = vrot.slane %v5600_v23, 1 }
  0x58   : > { %5053 = vmatprep.mubr.bf16.mxu1 %v1263_v43  ;;  %1586 = vmatprep.mubr.bf16.mxu0 %v1124_v45  ;;  %v1155_v45 = vor.u32 %v1154_v19, %v1150_v11 }
  0x59   : > { %4714 = vmatpush3.bf16.msra.mxu1 %v5585_v36  ;;  %4851 = vmatprep.subr.bf16.mxu0 %v5608_v60  ;;  %v1292_v36 = vrot.slane %v5941_v52, 1  ;;  %v5616_v52 = vld [vmem:[%s7121_s1 + $0x78] sm:$0xff]   ;;  %v1281_v54 = vsel %vm732_vm1, %v1279_v42, %v1280_v4 }
  0x5a   : > { %4715 = vmatprep.subr.bf16.mxu1 %v5588_v39  ;;  %v1295_v39 = vrot.slane %v5966_v5, 1  ;;  %v5615_v5 = vld [vmem:[%s7121_s1 + $0x1a8] sm:$0xff]   ;;  %v1160_v18 = vsel %vm523_vm0, %v1155_v45, %v1159_v46 }
  0x5b   : > { %v6188_v43 = vsel %vm732_vm1, %v1291_v32, %v1292_v36  ;;  %v2505_v36 = vshll.u32 %v6254_v25, 16 }
  0x5d   : > { %4716 = vmatpush3.bf16.msra.mxu1 %v5589_v55  ;;  %v6210_v55 = vld [vmem:[%s5870_s8 + $0x90] sm:$0xff]   ;;  %v2507_v4 = vrot.slane %v2505_v36, 1 }
  0x5e   : > { %4717 = vmatprep.subr.bf16.mxu1 %v5594_v44  ;;  %v1169_v44 = vshll.u32 %v5600_v23, 16  ;;  %v1176_v38 = vshll.u32 %v6210_v55, 16  ;;  %v1174_v8 = vshrl.u32 %v6210_v55, 16  ;;  %v2491_v23 = vshrl.u32 %v6239_v10, 16 }
  0x5f   : > { %5054 = vmatmul.mubr.bf16.gmra.mrb[24].mxu1 %v1266_v1  ;;  %1587 = vmatmul.mubr.bf16.gmra.mrb[24].mxu0 %v6023_v56  ;;  %v5609_v56 = vld [vmem:[%s7121_s1 + $0x198] sm:$0xff]   ;;  %v1283_v1 = vrot.slane %v5603_v51, 1 }
  0x60   : > { %5057 = vmatprep.mubr.bf16.mxu1 %v1269_v6  ;;  %1594 = vmatprep.mubr.bf16.mxu0 %v1136_v40  ;;  %v1171_v3 = vrot.slane %v1169_v44, 1  ;;  %v6234_v40 = vld [vmem:[%s5870_s8] sm:$0xff]   ;;  %v1178_v60 = vrot.slane %v1176_v38, 1  ;;  %v5635_v51 = vld [vmem:[%s5870_s8 + $0x38] ss:$0 sps:$4 sm:$0x11]  }
  0x61   : > { %4718 = vmatpush3.bf16.msra.mxu1 %v5595_v0  ;;  %4852 = vmatpush3.bf16.msra.mxu0 %v5609_v56  ;;  %v1282_v0 = vrot.slane %v6210_v55, 1  ;;  %v2493_v56 = vshll.u32 %v6239_v10, 16  ;;  %v525_v20 = vshrl.u32 %v6234_v40, 16  ;;  %v6288_v44 = vld [vmem:[%s5870_s8 + $0x24] sm:$0xff]  }
  0x62   : > { %4719 = vmatprep.subr.bf16.mxu1 %v5604_v2  ;;  %4853 = vmatprep.subr.bf16.mxu0 %v5612_v24  ;;  %v1167_v2 = vor.u32 %v1166_v57, %v1162_v22  ;;  %v1179_v16 = vor.u32 %v1178_v60, %v1174_v8  ;;  %v6251_v24 = vld [vmem:[%s5870_s8 + $0xc] sm:$0xff]   ;;  %v563_v38 = vshll.u32 %v6288_v44, 16 }
  0x63   : > { %v1284_v6 = vsel %vm732_vm1, %v1282_v0, %v1283_v1  ;;  %v6292_v0 = vld [vmem:[%s5870_s8 + $0x3c] sm:$0xff]  }
  0x64   : > { %v1172_v7 = vsel %vm523_vm0, %v1167_v2, %v1171_v3  ;;  %v1184_v19 = vsel %vm523_vm0, %v1179_v16, %v1183_v17  ;;  %v6296_v2 = vld [vmem:[%s5870_s8 + $0x2c] ss:$0 sps:$4 sm:$0x11]   ;;  %v2529_v60 = vshll.u32 %v6292_v0, 16  ;;  %v565_v61 = vrot.slane %v563_v38, 1 }
  0x65   : > { %4720 = vmatpush3.bf16.msra.mxu1 %v5605_v12  ;;  %4854 = vmatpush3.bf16.msra.mxu0 %v5613_v29  ;;  %v527_v12 = vshll.u32 %v6234_v40, 16 }
  0x66   : > { %4721 = vmatprep.subr.bf16.mxu1 %v5610_v30  ;;  %4855 = vmatprep.subr.bf16.mxu0 %v5614_v35  ;;  %v532_v30 = vshll.u32 %v5622_v14, 16  ;;  %v5630_v35 = vld [vmem:[%s5870_s8 + $0x2c] ss:$0 sps:$4 sm:$0x11]   ;;  %v2527_v14 = vshrl.u32 %v6292_v0, 16 }
  0x67   : > { %5058 = vmatmul.mubr.bf16.gmra.mrb[28].mxu1 %v1272_v27  ;;  %1595 = vmatmul.mubr.bf16.gmra.mrb[28].mxu0 %v6047_v9  ;;  %v6197_v9 = vsel %vm732_vm1, %v1294_v37, %v1295_v39  ;;  %v529_v11 = vrot.slane %v527_v12, 1  ;;  %v5628_v27 = vld [vmem:[%s5870_s8 + $0x14] ss:$0 sps:$4 sm:$0x11]   ;;  %v6264_v37 = vld [vmem:[%s5870_s8 + $0x18] sm:$0xff]  }
  0x68   : > { %5061 = vmatprep.mubr.bf16.mxu1 %v1275_v33  ;;  %1602 = vmatprep.mubr.bf16.mxu0 %v1148_v34  ;;  %v539_v34 = vshll.u32 %v6251_v24, 16  ;;  %v544_v39 = vshll.u32 %v5628_v27, 16  ;;  %v551_v45 = vshll.u32 %v6264_v37, 16  ;;  %v6311_v12 = vld [vmem:[%s5870_s8 + $0x30] sm:$0xff]  }
  0x69   : > { %4722 = vmatpush3.bf16.msra.mxu1 %v5611_v26  ;;  %4856 = vmatpush3.bf16.msra.mxu0 %v5615_v5  ;;  %v534_v26 = vrot.slane %v532_v30, 1  ;;  %v530_v29 = vor.u32 %v529_v11, %v525_v20  ;;  %v6276_v5 = vld [vmem:[%s5870_s8 + $0x20] ss:$0 sps:$4 sm:$0x11]   ;;  %v5651_v11 = vld [vmem:[%s7121_s1 + $0x98] sm:$0xff]  }
  0x6a   : > { %4723 = vmatprep.subr.bf16.mxu1 %v5616_v52  ;;  %4857 = vmatprep.subr.bf16.mxu0 %v5618_v50  ;;  %v541_v42 = vrot.slane %v539_v34, 1  ;;  %v2503_v52 = vshrl.u32 %v6254_v25, 16  ;;  %v6324_v30 = vld [vmem:[%s5870_s8 + $0x38] ss:$0 sps:$4 sm:$0x11]  }
  0x6b   : > { %v535_v48 = vsel %vm523_vm0, %v530_v29, %v534_v26  ;;  %v5644_v29 = vld [vmem:[%s5870_s8 + $0x50] ss:$0 sps:$4 sm:$0x11]   ;;  %v580_v34 = vshll.u32 %v6324_v30, 16 }
  0x6d   : > { %4724 = vmatpush3.bf16.msra.mxu1 %v5617_v49  ;;  %4858 = vmatpush3.bf16.msra.mxu0 %v5619_v59  ;;  %v546_v49 = vrot.slane %v544_v39, 1 }
  0x6e   : > { %5077 = vmatprep.subr.bf16.mxu1 %v6224_v63  ;;  %4859 = vmatprep.subr.bf16.mxu0 %v5620_v62  ;;  %v2522_v62 = vshll.u32 %v5635_v51, 16 }
  0x6f   : > { %5062 = vmatmul.mubr.bf16.gmra.mrb[32].mxu1 %v1278_v53  ;;  %1603 = vmatmul.mubr.bf16.gmra.mrb[32].mxu0 %v6073_v31  ;;  %v5623_v31 = vld [vmem:[%s7121_s1 + $0x1b8] sm:$0xff]   ;;  %v2508_v53 = vor.u32 %v2507_v4, %v2503_v52 }
  0x70   : > { %5065 = vmatprep.mubr.bf16.mxu1 %v1281_v54  ;;  %1610 = vmatprep.mubr.bf16.mxu0 %v1160_v18  ;;  %v553_v54 = vrot.slane %v551_v45, 1  ;;  %v556_v18 = vshll.u32 %v6276_v5, 16  ;;  %v2524_v8 = vrot.slane %v2522_v62, 1  ;;  %v5648_v4 = vld [vmem:[%s5870_s8 + $0x5c] ss:$0 sps:$4 sm:$0x11]  }
  0x71   : > { %4860 = vmatpush3.bf16.msra.mxu0 %v5623_v31  ;;  %v5639_v31 = vld [vmem:[%s5870_s8 + $0x44] ss:$0 sps:$4 sm:$0x11]   ;;  %v582_v45 = vrot.slane %v580_v34, 1  ;;  %v2558_v51 = vshll.u32 %v5648_v4, 16 }
  0x72   : > { %v2534_v20 = vshll.u32 %v5639_v31, 16  ;;  %v6368_v62 = vld [vmem:[%s5870_s8 + $0x50] ss:$0 sps:$4 sm:$0x11]  }
  0x74   : > { %v2536_v27 = vrot.slane %v2534_v20, 1 }
  0x77   : > { %5066 = vmatmul.mubr.bf16.gmra.mrb[36].mxu1 %v1284_v6  ;;  %1611 = vmatmul.mubr.bf16.gmra.mrb[36].mxu0 %v6112_v58  ;;  %v2498_v58 = vshll.u32 %v5626_v15, 16  ;;  %v558_v6 = vrot.slane %v556_v18, 1  ;;  %v6314_v15 = vld [vmem:[%s5870_s8 + $0x48] sm:$0xff]  }
  0x78   : > { %5069 = vmatprep.mubr.bf16.mxu1 %v6149_v13  ;;  %1618 = vmatprep.mubr.bf16.mxu0 %v1172_v7  ;;  %v2495_v13 = vrot.slane %v2493_v56, 1  ;;  %v2531_v56 = vrot.slane %v2529_v60, 1 }
  0x79   : > { %v2500_v33 = vrot.slane %v2498_v58, 1  ;;  %v2541_v58 = vshll.u32 %v6314_v15, 16 }
  0x7a   : > { %v2496_v32 = vor.u32 %v2495_v13, %v2491_v23  ;;  %v575_v23 = vshll.u32 %v6311_v12, 16  ;;  %v2532_v26 = vor.u32 %v2531_v56, %v2527_v14  ;;  %v6385_v56 = vld [vmem:[%s5870_s8 + $0x5c] ss:$0 sps:$4 sm:$0x11]  }
  0x7b   : > { %v2543_v36 = vrot.slane %v2541_v58, 1 }
  0x7c   : > { %v2501_v41 = vsel %vm523_vm0, %v2496_v32, %v2500_v33  ;;  %v6334_v32 = vld [vmem:[%s5870_s8 + $0x3c] sm:$0xff]   ;;  %v577_v33 = vrot.slane %v575_v23, 1  ;;  %v2537_v39 = vsel %vm523_vm0, %v2532_v26, %v2536_v27  ;;  %v5678_v23 = vld [vmem:[%s7121_s1 + $0xb0] sm:$0xff]  }
  0x7d   : > { %v587_v52 = vshll.u32 %v6334_v32, 16 }
  0x7f   : > { %5070 = vmatmul.mubr.bf16.gmra.mrb[40].mxu1 %v6159_v28  ;;  %1619 = vmatmul.mubr.bf16.gmra.mrb[40].mxu0 %v6155_v21  ;;  %v537_v28 = vshrl.u32 %v6251_v24, 16  ;;  %v6268_v21 = vld [vmem:[%s5870_s8 + $0x30] sm:$0xff]  }
  0x80   : > { %5073 = vmatprep.mubr.bf16.mxu1 %v6188_v43  ;;  %1626 = vmatprep.mubr.bf16.mxu0 %v1184_v19  ;;  %v2510_v43 = vshll.u32 %v5630_v35, 16  ;;  %v2517_v46 = vshll.u32 %v6268_v21, 16  ;;  %v2515_v22 = vshrl.u32 %v6268_v21, 16  ;;  %v2539_v35 = vshrl.u32 %v6314_v15, 16 }
  0x81   : > { %v542_v47 = vor.u32 %v541_v42, %v537_v28  ;;  %v6346_v42 = vld [vmem:[%s5870_s8 + $0x44] ss:$0 sps:$4 sm:$0x11]  }
  0x82   : > { %v2512_v50 = vrot.slane %v2510_v43, 1  ;;  %v2519_v57 = vrot.slane %v2517_v46, 1  ;;  %v2544_v46 = vor.u32 %v2543_v36, %v2539_v35 }
  0x83   : > { %v547_v59 = vsel %vm523_vm0, %v542_v47, %v546_v49 }
  0x84   : > { %v2513_v1 = vsel %vm523_vm0, %v2508_v53, %v2512_v50  ;;  %v2520_v7 = vor.u32 %v2519_v57, %v2515_v22  ;;  %v589_v50 = vrot.slane %v587_v52, 1  ;;  %v6354_v53 = vld [vmem:[%s5870_s8 + $0x48] sm:$0xff]   ;;  %v6360_v22 = vld [vmem:[%s5870_s8 + $0x60] sm:$0xff]  }
  0x85   : > { %v5669_v57 = vld [vmem:[%s7121_s1 + $0xa8] sm:$0xff]   ;;  %v6414_v52 = vld [vmem:[%s5870_s8 + $0x80] ss:$0 sps:$4 sm:$0x11]  }
  0x86   : > { %v2525_v17 = vsel %vm523_vm0, %v2520_v7, %v2524_v8  ;;  %v2565_v7 = vshll.u32 %v6360_v22, 16  ;;  %v6374_v8 = vld [vmem:[%s5870_s8 + $0x54] sm:$0xff]  }
  0x87   : > { %5074 = vmatmul.mubr.bf16.gmra.mrb[44].mxu1 %v6197_v9  ;;  %1627 = vmatmul.mubr.bf16.gmra.mrb[44].mxu0 %v6210_v55  ;;  %v549_v9 = vshrl.u32 %v6264_v37, 16  ;;  %v5633_v55 = vld [vmem:[%s7121_s1 + $0x88] sm:$0xff]   ;;  %v611_v20 = vshll.u32 %v6374_v8, 16 }
  0x88   : > { %2004 = vmatprep.mubr.bf16.mxu1 %v535_v48  ;;  %2987 = vmatprep.mubr.bf16.mxu0 %v2501_v41  ;;  %v2546_v48 = vshll.u32 %v5644_v29, 16  ;;  %v6341_v41 = vld [vmem:[%s5870_s8 + $0x54] sm:$0xff]   ;;  %v609_v29 = vshrl.u32 %v6374_v8, 16 }
  0x89   : > { %v554_v3 = vor.u32 %v553_v54, %v549_v9  ;;  %v2553_v49 = vshll.u32 %v6341_v41, 16  ;;  %v613_v34 = vrot.slane %v611_v20, 1 }
  0x8a   : > { %v2548_v47 = vrot.slane %v2546_v48, 1 }
  0x8b   : > { %v559_v16 = vsel %vm523_vm0, %v554_v3, %v558_v6  ;;  %v2555_v18 = vrot.slane %v2553_v49, 1  ;;  %v599_v3 = vshll.u32 %v6354_v53, 16  ;;  %v5653_v6 = vld [vmem:[%s5870_s8 + $0x68] ss:$0 sps:$4 sm:$0x11]  }
  0x8c   : > { %v2549_v54 = vsel %vm523_vm0, %v2544_v46, %v2548_v47 }
  0x8d   : > { %v601_v60 = vrot.slane %v599_v3, 1 }
  0x8f   : > { %2005 = vmatmul.mubr.bf16.vlgmr.msra.gmra.mrb[48].mxu1 %v6234_v40  ;;  %2988 = vmatmul.mubr.bf16.vlgmr.msra.gmra.mrb[48].mxu0 %v6239_v10  ;;  %v5642_v40 = vld [vmem:[%s7121_s1 + $0x90] sm:$0xff]   ;;  %v568_v10 = vshll.u32 %v6296_v2, 16 }
  0x90   : > { %5078 = vmatpush3.bf16.msra.mxu1 %v6224_v63  ;;  %2012 = vmatprep.mubr.bf16.mxu1 %v547_v59  ;;  %v561_v63 = vshrl.u32 %v6288_v44, 16 }
  0x91   : > { %2995 = vmatprep.mubr.bf16.mxu0 %v2513_v1  ;;  %5079 = vmatprep.subr.bf16.mxu1 %v5633_v55  ;;  %v570_v13 = vrot.slane %v568_v10, 1  ;;  %v2560_v1 = vrot.slane %v2558_v51, 1 }
  0x92   : > { %v566_v19 = vor.u32 %v565_v61, %v561_v63  ;;  %v2563_v63 = vshrl.u32 %v6360_v22, 16  ;;  %v6380_v61 = vld [vmem:[%s5870_s8 + $0x6c] sm:$0xff]  }
  0x93   : > { %v2577_v58 = vshll.u32 %v6380_v61, 16  ;;  %v2575_v35 = vshrl.u32 %v6380_v61, 16 }
  0x94   : > { %5080 = vmatpush3.bf16.msra.mxu1 %v5633_v55  ;;  %v571_v28 = vsel %vm523_vm0, %v566_v19, %v570_v13  ;;  %v2551_v55 = vshrl.u32 %v6341_v41, 16  ;;  %v6398_v19 = vld [vmem:[%s5870_s8 + $0x60] sm:$0xff]  }
  0x95   : > { %5081 = vmatprep.subr.bf16.mxu1 %v5642_v40  ;;  %v2579_v36 = vrot.slane %v2577_v58, 1  ;;  %v621_v49 = vshrl.u32 %v6398_v19, 16 }
  0x96   : > { %v2556_v31 = vor.u32 %v2555_v18, %v2551_v55  ;;  %v6429_v55 = vld [vmem:[%s5870_s8 + $0x74] ss:$0 sps:$4 sm:$0x11]  }
  0x97   : > { %2013 = vmatmul.mubr.bf16.gmra.mrb[52].mxu1 %v6251_v24  ;;  %2996 = vmatmul.mubr.bf16.gmra.mrb[52].mxu0 %v6254_v25  ;;  %v5660_v24 = vld [vmem:[%s7121_s1 + $0xa0] sm:$0xff]   ;;  %v573_v25 = vshrl.u32 %v6311_v12, 16 }
  0x98   : > { %2020 = vmatprep.mubr.bf16.mxu1 %v559_v16  ;;  %3003 = vmatprep.mubr.bf16.mxu0 %v2525_v17  ;;  %v2561_v14 = vsel %vm523_vm0, %v2556_v31, %v2560_v1  ;;  %v2567_v16 = vrot.slane %v2565_v7, 1  ;;  %v2570_v17 = vshll.u32 %v5653_v6, 16  ;;  %v6442_v31 = vld [vmem:[%s5870_s8 + $0x78] sm:$0xff]  }
  0x99   : > { %5082 = vmatpush3.bf16.msra.mxu1 %v5642_v40  ;;  %v578_v43 = vor.u32 %v577_v33, %v573_v25  ;;  %v604_v40 = vshll.u32 %v6368_v62, 16  ;;  %v616_v25 = vshll.u32 %v6385_v56, 16 }
  0x9a   : > { %5083 = vmatprep.subr.bf16.mxu1 %v5651_v11  ;;  %v2568_v27 = vor.u32 %v2567_v16, %v2563_v63  ;;  %v640_v63 = vshll.u32 %v6429_v55, 16  ;;  %v6452_v16 = vld [vmem:[%s5870_s8 + $0x90] sm:$0xff]  }
  0x9b   : > { %v583_v9 = vsel %vm523_vm0, %v578_v43, %v582_v45  ;;  %v606_v26 = vrot.slane %v604_v40, 1  ;;  %v6411_v43 = vld [vmem:[%s5870_s8 + $0x78] sm:$0xff]   ;;  %v6418_v45 = vld [vmem:[%s5870_s8 + $0x6c] sm:$0xff]   ;;  %v618_v46 = vrot.slane %v616_v25, 1 }
  0x9c   : > { %v2587_v6 = vshrl.u32 %v6411_v43, 16 }
  0x9d   : > { %5084 = vmatpush3.bf16.msra.mxu1 %v5651_v11  ;;  %v6391_v11 = vld [vmem:[%s5870_s8 + $0x74] ss:$0 sps:$4 sm:$0x11]  }
  0x9e   : > { %5085 = vmatprep.subr.bf16.mxu1 %v5660_v24  ;;  %v2582_v33 = vshll.u32 %v6391_v11, 16 }
  0x9f   : > { %2021 = vmatmul.mubr.bf16.gmra.mrb[56].mxu1 %v6264_v37  ;;  %3004 = vmatmul.mubr.bf16.gmra.mrb[56].mxu0 %v6268_v21  ;;  %v592_v37 = vshll.u32 %v6346_v42, 16  ;;  %v585_v21 = vshrl.u32 %v6334_v32, 16 }
  0xa0   : > { %2028 = vmatprep.mubr.bf16.mxu1 %v571_v28  ;;  %3011 = vmatprep.mubr.bf16.mxu0 %v2537_v39  ;;  %v623_v28 = vshll.u32 %v6398_v19, 16  ;;  %v2584_v47 = vrot.slane %v2582_v33, 1 }
  0xa1   : > { %5086 = vmatpush3.bf16.msra.mxu1 %v5660_v24  ;;  %v594_v59 = vrot.slane %v592_v37, 1  ;;  %v590_v38 = vor.u32 %v589_v50, %v585_v21  ;;  %v6402_v24 = vld [vmem:[%s5870_s8 + $0x68] ss:$0 sps:$4 sm:$0x11]   ;;  %v614_v21 = vor.u32 %v613_v34, %v609_v29  ;;  %v2580_v50 = vor.u32 %v2579_v36, %v2575_v35  ;;  %v6473_v36 = vld [vmem:[%s5870_s8 + $0x9c] sm:$0xff]  }
  0xa2   : > { %5087 = vmatprep.subr.bf16.mxu1 %v5669_v57  ;;  %v628_v4 = vshll.u32 %v6402_v24, 16  ;;  %v6424_v37 = vld [vmem:[%s5870_s8 + $0x84] sm:$0xff]   ;;  %v625_v51 = vrot.slane %v623_v28, 1  ;;  %v5673_v29 = vld [vmem:[%s5870_s8 + $0x8c] ss:$0 sps:$4 sm:$0x11]  }
  0xa3   : > { %v595_v10 = vsel %vm523_vm0, %v590_v38, %v594_v59  ;;  %v5687_v59 = vld [vmem:[%s7121_s1 + $0xb8] sm:$0xff]   ;;  %v619_v1 = vsel %vm523_vm0, %v614_v21, %v618_v46  ;;  %v2585_v3 = vsel %vm523_vm0, %v2580_v50, %v2584_v47  ;;  %v2601_v38 = vshll.u32 %v6424_v37, 16 }
  0xa4   : > { %v630_v18 = vrot.slane %v628_v4, 1  ;;  %v642_v34 = vrot.slane %v640_v63, 1  ;;  %v645_v35 = vshrl.u32 %v6442_v31, 16  ;;  %v2611_v47 = vshrl.u32 %v6452_v16, 16 }
  0xa5   : > { %5088 = vmatpush3.bf16.msra.mxu1 %v5669_v57  ;;  %v6433_v57 = vld [vmem:[%s5870_s8 + $0x8c] ss:$0 sps:$4 sm:$0x11]   ;;  %v2603_v20 = vrot.slane %v2601_v38, 1  ;;  %v754_v38 = vrot.slane %v6374_v8, 1 }
  0xa6   : > { %5089 = vmatprep.subr.bf16.mxu1 %v5678_v23 }
  0xa7   : > { %2029 = vmatmul.mubr.bf16.gmra.mrb[60].mxu1 %v6288_v44  ;;  %3012 = vmatmul.mubr.bf16.gmra.mrb[60].mxu0 %v6292_v0  ;;  %v597_v0 = vshrl.u32 %v6354_v53, 16 }
  0xa8   : > { %2036 = vmatprep.mubr.bf16.mxu1 %v583_v9  ;;  %3019 = vmatprep.mubr.bf16.mxu0 %v2549_v54  ;;  %v2589_v9 = vshll.u32 %v6411_v43, 16  ;;  %v2594_v54 = vshll.u32 %v6414_v52, 16 }
  0xa9   : > { %v602_v13 = vor.u32 %v601_v60, %v597_v0  ;;  %5090 = vmatpush3.bf16.msra.mxu1 %v5678_v23  ;;  %v633_v60 = vshrl.u32 %v6418_v45, 16  ;;  %v647_v23 = vshll.u32 %v6442_v31, 16 }
  0xaa   : > { %v2591_v7 = vrot.slane %v2589_v9, 1  ;;  %v2596_v0 = vrot.slane %v2594_v54, 1  ;;  %5091 = vmatprep.subr.bf16.mxu1 %v5687_v59  ;;  %v2625_v9 = vshll.u32 %v6473_v36, 16  ;;  %v748_v54 = vrot.slane %v6334_v32, 1 }
  0xab   : > { %v607_v39 = vsel %vm523_vm0, %v602_v13, %v606_v26  ;;  %v5668_v13 = vld [vmem:[%s5870_s8 + $0x80] ss:$0 sps:$4 sm:$0x11]   ;;  %v6462_v26 = vld [vmem:[%s5870_s8 + $0x98] ss:$0 sps:$4 sm:$0x11]  }
  0xac   : > { %v2592_v58 = vor.u32 %v2591_v7, %v2587_v6  ;;  %v649_v4 = vrot.slane %v647_v23, 1  ;;  %v652_v46 = vshll.u32 %v5668_v13, 16  ;;  %v2618_v21 = vshll.u32 %v6462_v26, 16 }
  0xad   : > { %5092 = vmatpush3.bf16.msra.mxu1 %v5687_v59  ;;  %v755_v7 = vrot.slane %v6385_v56, 1  ;;  %v764_v63 = vrot.slane %v5668_v13, 1 }
  0xae   : > { %v2597_v28 = vsel %vm523_vm0, %v2592_v58, %v2596_v0  ;;  %v650_v58 = vor.u32 %v649_v4, %v645_v35  ;;  %v2627_v35 = vrot.slane %v2625_v9, 1 }
  0xaf   : > { %2037 = vmatmul.mubr.bf16.gmra.mrb[64].mxu1 %v6311_v12  ;;  %3020 = vmatmul.mubr.bf16.gmra.mrb[64].mxu0 %v6314_v15  ;;  %v2572_v15 = vrot.slane %v2570_v17, 1  ;;  %v626_v17 = vor.u32 %v625_v51, %v621_v49  ;;  %v664_v51 = vshll.u32 %v5673_v29, 16 }
  0xb0   : > { %2044 = vmatprep.mubr.bf16.mxu1 %v595_v10  ;;  %3027 = vmatprep.mubr.bf16.mxu0 %v2561_v14  ;;  %v2599_v10 = vshrl.u32 %v6424_v37, 16  ;;  %v2606_v14 = vshll.u32 %v6433_v57, 16 }
  0xb1   : > { %v2573_v48 = vsel %vm523_vm0, %v2568_v27, %v2572_v15  ;;  %v6465_v27 = vld [vmem:[%s5870_s8 + $0x84] sm:$0xff]   ;;  %v2613_v15 = vshll.u32 %v6452_v16, 16  ;;  %v631_v25 = vsel %vm523_vm0, %v626_v17, %v630_v18  ;;  %v749_v18 = vrot.slane %v6346_v42, 1 }
  0xb2   : > { %v659_v50 = vshll.u32 %v6465_v27, 16  ;;  %v758_v42 = vrot.slane %v6402_v24, 1  ;;  %v766_v24 = vrot.slane %v6465_v27, 1 }
  0xb3   : > { %v2615_v49 = vrot.slane %v2613_v15, 1  ;;  %v6493_v6 = vsel %vm732_vm1, %v748_v54, %v749_v18  ;;  %v6539_v18 = vld [vmem:[%s5870_s8 + $0xa8] sm:$0xff]  }
  0xb7   : > { %2045 = vmatmul.mubr.bf16.gmra.mrb[68].mxu1 %v6334_v32  ;;  %3028 = vmatmul.mubr.bf16.gmra.mrb[68].mxu0 %v6341_v41  ;;  %v635_v41 = vshll.u32 %v6418_v45, 16  ;;  %v757_v32 = vrot.slane %v6398_v19, 1 }
  0xb8   : > { %2052 = vmatprep.mubr.bf16.mxu1 %v607_v39  ;;  %3035 = vmatprep.mubr.bf16.mxu0 %v2573_v48  ;;  %v2604_v39 = vor.u32 %v2603_v20, %v2599_v10  ;;  %v2608_v48 = vrot.slane %v2606_v14, 1  ;;  %v767_v14 = vrot.slane %v5673_v29, 1  ;;  %v654_v29 = vrot.slane %v652_v46, 1 }
  0xb9   : > { %v637_v40 = vrot.slane %v635_v41, 1  ;;  %v751_v41 = vrot.slane %v6354_v53, 1  ;;  %v6511_v56 = vsel %vm732_vm1, %v757_v32, %v758_v42  ;;  %v6558_v42 = vld [vmem:[%s5870_s8 + $0xb4] sm:$0xff]  }
  0xba   : > { %v6528_v13 = vsel %vm732_vm1, %v766_v24, %v767_v14  ;;  %v655_v46 = vsel %vm523_vm0, %v650_v58, %v654_v29  ;;  %v6567_v14 = vld [vmem:[%s5870_s8 + $0xbc] ss:$0 sps:$4 sm:$0x11]  }
  0xbb   : > { %v638_v33 = vor.u32 %v637_v40, %v633_v60  ;;  %v760_v60 = vrot.slane %v6418_v45, 1  ;;  %v6508_v40 = vsel %vm732_vm1, %v754_v38, %v755_v7  ;;  %v2635_v38 = vshrl.u32 %v6539_v18, 16 }
  0xbd   : > { %v643_v59 = vsel %vm523_vm0, %v638_v33, %v642_v34  ;;  %v2620_v33 = vrot.slane %v2618_v21, 1  ;;  %v657_v34 = vshrl.u32 %v6465_v27, 16 }
  0xbf   : > { %2053 = vmatmul.mubr.bf16.gmra.mrb[72].mxu1 %v6354_v53  ;;  %3036 = vmatmul.mubr.bf16.gmra.mrb[72].mxu0 %v6360_v22  ;;  %v6459_v22 = vld [vmem:[%s7121_s1 + $0x200] sm:$0xff]   ;;  %v6499_v53 = vld [vmem:[%s5870_s8 + $0x90] sm:$0xff]  }
  0xc0   : > { %2060 = vmatprep.mubr.bf16.mxu1 %v619_v1  ;;  %3043 = vmatprep.mubr.bf16.mxu0 %v2585_v3  ;;  %v6488_v1 = vld [vmem:[%s5870_s8 + $0x98] ss:$0 sps:$4 sm:$0x11]   ;;  %v752_v3 = vrot.slane %v6368_v62, 1  ;;  %v761_v62 = vrot.slane %v6429_v55, 1  ;;  %v769_v17 = vrot.slane %v6499_v53, 1 }
  0xc1   : > { %5125 = vmatprep.subr.bf16.mxu1 %v6459_v22  ;;  %v770_v20 = vrot.slane %v6488_v1, 1  ;;  %v6520_v55 = vld [vmem:[%s5870_s8 + $0xa4] ss:$0 sps:$4 sm:$0x11]   ;;  %v669_v4 = vshrl.u32 %v6499_v53, 16  ;;  %v671_v54 = vshll.u32 %v6499_v53, 16 }
  0xc2   : > { %v6502_v0 = vsel %vm732_vm1, %v751_v41, %v752_v3  ;;  %v6515_v10 = vsel %vm732_vm1, %v760_v60, %v761_v62  ;;  %v676_v9 = vshll.u32 %v6488_v1, 16  ;;  %v2637_v41 = vshll.u32 %v6539_v18, 16  ;;  %v6563_v62 = vld [vmem:[%s5870_s8 + $0xa4] ss:$0 sps:$4 sm:$0x11]  }
  0xc3   : > { %v6531_v15 = vsel %vm732_vm1, %v769_v17, %v770_v20  ;;  %v673_v21 = vrot.slane %v671_v54, 1  ;;  %v2649_v17 = vshll.u32 %v6558_v42, 16  ;;  %v688_v29 = vshll.u32 %v6563_v62, 16 }
  0xc4   : > { %v2639_v7 = vrot.slane %v2637_v41, 1  ;;  %v678_v60 = vrot.slane %v676_v9, 1 }
  0xc5   : > { %v674_v1 = vor.u32 %v673_v21, %v669_v4  ;;  %v6585_v4 = vld [vmem:[%s5870_s8 + $0xb0] ss:$0 sps:$4 sm:$0x11]  }
  0xc6   : > { %v700_v41 = vshll.u32 %v6585_v4, 16 }
  0xc7   : > { %2061 = vmatmul.mubr.bf16.gmra.mrb[76].mxu1 %v6374_v8  ;;  %3044 = vmatmul.mubr.bf16.gmra.mrb[76].mxu0 %v6380_v61  ;;  %v2609_v61 = vsel %vm523_vm0, %v2604_v39, %v2608_v48  ;;  %v763_v8 = vrot.slane %v6442_v31, 1  ;;  %v2623_v39 = vshrl.u32 %v6473_v36, 16  ;;  %v2630_v48 = vshll.u32 %v6520_v55, 16 }
  0xc8   : > { %2068 = vmatprep.mubr.bf16.mxu1 %v631_v25  ;;  %3051 = vmatprep.mubr.bf16.mxu0 %v2597_v28  ;;  %v2616_v25 = vor.u32 %v2615_v49, %v2611_v47  ;;  %v661_v28 = vrot.slane %v659_v50, 1  ;;  %v6546_v50 = vld [vmem:[%s5870_s8 + $0xb0] ss:$0 sps:$4 sm:$0x11]  }
  0xc9   : > { %v6523_v23 = vsel %vm732_vm1, %v763_v8, %v764_v63  ;;  %v2632_v49 = vrot.slane %v2630_v48, 1  ;;  %v2642_v32 = vshll.u32 %v6546_v50, 16  ;;  %v2640_v63 = vor.u32 %v2639_v7, %v2635_v38 }
  0xca   : > { %v2621_v47 = vsel %vm523_vm0, %v2616_v25, %v2620_v33  ;;  %v6574_v25 = vld [vmem:[%s5870_s8 + $0xa8] sm:$0xff]   ;;  %v690_v48 = vrot.slane %v688_v29, 1 }
  0xcb   : > { %v2644_v24 = vrot.slane %v2642_v32, 1  ;;  %v695_v54 = vshll.u32 %v6574_v25, 16  ;;  %v6602_v32 = vld [vmem:[%s5870_s8 + $0xcc] sm:$0xff]  }
  0xcd   : > { %v2645_v33 = vsel %vm523_vm0, %v2640_v63, %v2644_v24  ;;  %v697_v9 = vrot.slane %v695_v54, 1 }
  0xcf   : > { %2069 = vmatmul.mubr.bf16.gmra.mrb[80].mxu1 %v6398_v19  ;;  %3052 = vmatmul.mubr.bf16.gmra.mrb[80].mxu0 %v6411_v43  ;;  %v666_v19 = vrot.slane %v664_v51, 1  ;;  %v662_v51 = vor.u32 %v661_v28, %v657_v34  ;;  %v2647_v34 = vshrl.u32 %v6558_v42, 16  ;;  %v2651_v28 = vrot.slane %v2649_v17, 1 }
  0xd0   : > { %2076 = vmatprep.mubr.bf16.mxu1 %v643_v59  ;;  %3059 = vmatprep.mubr.bf16.mxu0 %v2609_v61  ;;  %v2628_v59 = vor.u32 %v2627_v35, %v2623_v39  ;;  %v6551_v61 = vld [vmem:[%s5870_s8 + $0x9c] sm:$0xff]  }
  0xd1   : > { %v683_v8 = vshll.u32 %v6551_v61, 16  ;;  %v681_v20 = vshrl.u32 %v6551_v61, 16  ;;  %v6580_v39 = vld [vmem:[%s5870_s8 + $0xc0] sm:$0xff]  }
  0xd2   : > { %v2633_v3 = vsel %vm523_vm0, %v2628_v59, %v2632_v49  ;;  %v6589_v49 = vld [vmem:[%s5870_s8 + $0xc8] ss:$0 sps:$4 sm:$0x11]   ;;  %v2661_v21 = vshll.u32 %v6580_v39, 16  ;;  %v6596_v59 = vld [vmem:[%s5870_s8 + $0xb4] sm:$0xff]  }
  0xd3   : > { %v685_v58 = vrot.slane %v683_v8, 1  ;;  %v2666_v7 = vshll.u32 %v6589_v49, 16  ;;  %v6607_v8 = vld [vmem:[%s5870_s8 + $0xbc] ss:$0 sps:$4 sm:$0x11]   ;;  %v707_v63 = vshll.u32 %v6596_v59, 16 }
  0xd4   : > { %v2663_v38 = vrot.slane %v2661_v21, 1 }
  0xd5   : > { %v686_v35 = vor.u32 %v685_v58, %v681_v20  ;;  %v2668_v17 = vrot.slane %v2666_v7, 1  ;;  %v2673_v20 = vshll.u32 %v6602_v32, 16  ;;  %v709_v29 = vrot.slane %v707_v63, 1 }
  0xd7   : > { %2077 = vmatmul.mubr.bf16.gmra.mrb[84].mxu1 %v6418_v45  ;;  %3060 = vmatmul.mubr.bf16.gmra.mrb[84].mxu0 %v6424_v37  ;;  %v667_v45 = vsel %vm523_vm0, %v662_v51, %v666_v19  ;;  %v2654_v19 = vshll.u32 %v6567_v14, 16  ;;  %v693_v51 = vshrl.u32 %v6574_v25, 16 }
  0xd8   : > { %2084 = vmatprep.mubr.bf16.mxu1 %v655_v46  ;;  %3067 = vmatprep.mubr.bf16.mxu0 %v2621_v47  ;;  %v2652_v46 = vor.u32 %v2651_v28, %v2647_v34  ;;  %v2671_v28 = vshrl.u32 %v6602_v32, 16 }
  0xd9   : > { %v2656_v47 = vrot.slane %v2654_v19, 1  ;;  %v2675_v19 = vrot.slane %v2673_v20, 1 }
  0xdf   : > { %2085 = vmatmul.mubr.bf16.gmra.mrb[88].mxu1 %v6442_v31  ;;  %3068 = vmatmul.mubr.bf16.gmra.mrb[88].mxu0 %v6452_v16  ;;  %v679_v31 = vsel %vm523_vm0, %v674_v1, %v678_v60  ;;  %v698_v1 = vor.u32 %v697_v9, %v693_v51  ;;  %v702_v60 = vrot.slane %v700_v41, 1  ;;  %v5734_v51 = vld [vmem:[%s5870_s8] sm:$0xff]   ;;  %v5735_v41 = vld [vmem:[%s5870_s8 + $0x8] ss:$0 sps:$4 sm:$0x11]  }
  0xe0   : > { %2092 = vmatprep.mubr.bf16.mxu1 %v667_v45  ;;  %3075 = vmatprep.mubr.bf16.mxu0 %v2633_v3  ;;  %v2657_v45 = vsel %vm523_vm0, %v2652_v46, %v2656_v47  ;;  %v2659_v3 = vshrl.u32 %v6580_v39, 16  ;;  %v2676_v46 = vor.u32 %v2675_v19, %v2671_v28  ;;  %v733_v9 = vrot.slane %v5734_v51, 1  ;;  %v5737_v19 = vld [vmem:[%s5870_s8 + $0x14] ss:$0 sps:$4 sm:$0x11]  }
  0xe1   : > { %v703_v58 = vsel %vm523_vm0, %v698_v1, %v702_v60 }
  0xe2   : > { %v2664_v24 = vor.u32 %v2663_v38, %v2659_v3 }
  0xe4   : > { %v2669_v34 = vsel %vm523_vm0, %v2664_v24, %v2668_v17 }
  0xe7   : > { %2093 = vmatmul.mubr.bf16.gmra.mrb[92].mxu1 %v6465_v27  ;;  %3076 = vmatmul.mubr.bf16.gmra.mrb[92].mxu0 %v6473_v36  ;;  %v691_v27 = vsel %vm523_vm0, %v686_v35, %v690_v48 }
  0xe8   : > { %2100 = vmatprep.mubr.bf16.mxu1 %v679_v31  ;;  %3083 = vmatprep.mubr.bf16.mxu0 %v2645_v33  ;;  %v6611_v31 = vld [vmem:[%s5870_s8 + $0xd4] ss:$0 sps:$4 sm:$0x11]   ;;  %v712_v33 = vshll.u32 %v6607_v8, 16 }
  0xe9   : > { %v2678_v35 = vshll.u32 %v6611_v31, 16 }
  0xea   : > { %v714_v54 = vrot.slane %v712_v33, 1 }
  0xeb   : > { %v2680_v47 = vrot.slane %v2678_v35, 1  ;;  %v737_v35 = vrot.slane %v5737_v19, 1  ;;  %v5696_v19 = vld [vmem:[%s7121_s1 + $0x210] sm:$0xff]  }
  0xef   : > { %2101 = vmatmul.mubr.bf16.gmra.mrb[96].mxu1 %v6499_v53  ;;  %3084 = vmatmul.mubr.bf16.gmra.mrb[96].mxu0 %v6539_v18  ;;  %v705_v53 = vshrl.u32 %v6596_v59, 16 }
  0xf0   : > { %2108 = vmatprep.mubr.bf16.mxu1 %v691_v27  ;;  %3091 = vmatprep.mubr.bf16.mxu0 %v2657_v45  ;;  %v2681_v27 = vsel %vm523_vm0, %v2676_v46, %v2680_v47  ;;  %v734_v45 = vrot.slane %v5735_v41, 1  ;;  %v740_v46 = vrot.slane %v6276_v5, 1 }
  0xf1   : > { %v710_v48 = vor.u32 %v709_v29, %v705_v53 }
  0xf3   : > { %v715_v21 = vsel %vm523_vm0, %v710_v48, %v714_v54  ;;  %v5738_v48 = vld [vmem:[%s5870_s8 + $0x18] sm:$0xff]  }
  0xf4   : > { %v739_v54 = vrot.slane %v5738_v48, 1 }
  0xf7   : > { %2109 = vmatmul.mubr.bf16.gmra.mrb[100].mxu1 %v6551_v61  ;;  %3092 = vmatmul.mubr.bf16.gmra.mrb[100].mxu0 %v6558_v42 }
  0xf8   : > { %2116 = vmatprep.mubr.bf16.mxu1 %v703_v58  ;;  %3099 = vmatprep.mubr.bf16.mxu0 %v2669_v34  ;;  %v735_v58 = vsel %vm732_vm1, %v733_v9, %v734_v45  ;;  %v5736_v34 = vld [vmem:[%s5870_s8 + $0xc] sm:$0xff]  }
  0xf9   : > { %v736_v28 = vrot.slane %v5736_v34, 1  ;;  %v745_v34 = vrot.slane %v6311_v12, 1 }
  0xfb   : > { %v738_v45 = vsel %vm732_vm1, %v736_v28, %v737_v35  ;;  %v746_v28 = vrot.slane %v6324_v30, 1 }
  0xfd   : > { %v747_v30 = vsel %vm732_vm1, %v745_v34, %v746_v28 }
  0xff   : > { %2117 = vmatmul.mubr.bf16.gmra.mrb[104].mxu1 %v6574_v25  ;;  %3100 = vmatmul.mubr.bf16.gmra.mrb[104].mxu0 %v6580_v39 }
 0x100   : > { %2124 = vmatprep.mubr.bf16.mxu1 %v715_v21  ;;  %3107 = vmatprep.mubr.bf16.mxu0 %v2681_v27 }
 0x102   : > { %v4661_v3 = vpop.f32.mrb[0].mxu1  ;;  %v4589_v38 = vpop.f32.mrb[0].mxu0 }
 0x103   : > { %v4662_v7 = vpop.f32.mrb[1].mxu1  ;;  %v4590_v1 = vpop.f32.mrb[1].mxu0 }
 0x104   : > { %v6628_v60 = vadd.f32 %v4662_v7, %v4661_v3  ;;  %v4664_v63 = vpop.f32.mrb[2].mxu1  ;;  %v6630_v24 = vadd.f32 %v4590_v1, %v4589_v38  ;;  %v4592_v17 = vpop.f32.mrb[2].mxu0  ;;  %v741_v1 = vsel %vm732_vm1, %v739_v54, %v740_v46 }
 0x105   : > { %v4665_v20 = vpop.f32.mrb[3].mxu1  ;;  %v4593_v53 = vpop.f32.mrb[3].mxu0 }
 0x106   : > { %v6633_v29 = vadd.f32 %v4665_v20, %v4664_v63  ;;  %v6635_v33 = vadd.f32 %v4593_v53, %v4592_v17  ;;  %v5695_v63 = vld [vmem:[%s7121_s1 + $0x208] sm:$0xff]   ;;  %v743_v53 = vrot.slane %v6296_v2, 1 }
 0x107   : > { %2125 = vmatmul.mubr.bf16.gmra.mrb[108].mxu1 %v6596_v59  ;;  %3108 = vmatmul.mubr.bf16.gmra.mrb[108].mxu0 %v6602_v32 }
 0x108   : > { %5093 = vmatprep.mubr.bf16.mxu1 %v735_v58  ;;  %v742_v58 = vrot.slane %v6288_v44, 1 }
 0x10a   : > { %v4667_v47 = vpop.f32.mrb[4].mxu1  ;;  %v4595_v21 = vpop.f32.mrb[4].mxu0  ;;  %v744_v44 = vsel %vm732_vm1, %v742_v58, %v743_v53 }
 0x10b   : > { %v4668_v27 = vpop.f32.mrb[5].mxu1  ;;  %v4596_v51 = vpop.f32.mrb[5].mxu0 }
 0x10c   : > { %v6643_v9 = vadd.f32 %v4668_v27, %v4667_v47  ;;  %v4670_v41 = vpop.f32.mrb[6].mxu1  ;;  %v6646_v3 = vadd.f32 %v4596_v51, %v4595_v21  ;;  %v4598_v38 = vpop.f32.mrb[6].mxu0  ;;  %v5697_v27 = vld [vmem:[%s7121_s1 + $0x218] sm:$0xff]  }
 0x10d   : > { %v4671_v7 = vpop.f32.mrb[7].mxu1  ;;  %v4599_v5 = vpop.f32.mrb[7].mxu0 }
 0x10e   : > { %v6652_v17 = vadd.f32 %v4671_v7, %v4670_v41  ;;  %v6654_v20 = vadd.f32 %v4599_v5, %v4598_v38  ;;  %v5698_v38 = vld [vmem:[%s7121_s1 + $0x220] sm:$0xff]  }
 0x10f   : > { %5094 = vmatmul.mubr.bf16.vlgmr.msra.gmra.mrb[16].mxu1 %v738_v45 }
 0x110   : > { %5126 = vmatpush3.bf16.msra.mxu1 %v6459_v22  ;;  %5097 = vmatprep.mubr.bf16.mxu1 %v741_v1 }
 0x111   : > { %5127 = vmatprep.subr.bf16.mxu1 %v5695_v63 }
 0x112   : > { %v4673_v35 = vpop.f32.mrb[8].mxu1  ;;  %v4601_v48 = vpop.f32.mrb[8].mxu0 }
 0x113   : > { %v4674_v54 = vpop.f32.mrb[9].mxu1  ;;  %v4602_v46 = vpop.f32.mrb[9].mxu0 }
 0x114   : > { %v6664_v47 = vadd.f32 %v4674_v54, %v4673_v35  ;;  %v4676_v22 = vpop.f32.mrb[10].mxu1  ;;  %5128 = vmatpush3.bf16.msra.mxu1 %v5695_v63  ;;  %v6667_v2 = vadd.f32 %v4602_v46, %v4601_v48  ;;  %v4604_v21 = vpop.f32.mrb[10].mxu0 }
 0x115   : > { %v4677_v12 = vpop.f32.mrb[11].mxu1  ;;  %5129 = vmatprep.subr.bf16.mxu1 %v5696_v19  ;;  %v4605_v51 = vpop.f32.mrb[11].mxu0 }
 0x116   : > { %7128 = vst [vmem:[#allocation2_spill] sm:$0xff] %v6664_v47  ;;  %v6673_v41 = vadd.f32 %v4677_v12, %v4676_v22  ;;  %v6675_v45 = vadd.f32 %v4605_v51, %v4604_v21  ;;  %v5700_v22 = vld [vmem:[%s7121_s1 + $0x230] sm:$0xff]  }
 0x117   : > { %5098 = vmatmul.mubr.bf16.gmra.mrb[20].mxu1 %v744_v44 }
 0x118   : > { %7129 = vst [vmem:[#allocation3_spill] sm:$0xff] %v6673_v41  ;;  %5101 = vmatprep.mubr.bf16.mxu1 %v747_v30  ;;  %5130 = vmatpush3.bf16.msra.mxu1 %v5696_v19  ;;  %v5699_v19 = vld [vmem:[%s7121_s1 + $0x228] sm:$0xff]  }
 0x119   : > { %5131 = vmatprep.subr.bf16.mxu1 %v5697_v27 }
 0x11a   : > { %v4679_v7 = vpop.f32.mrb[12].mxu1  ;;  %v4607_v1 = vpop.f32.mrb[12].mxu0 }
 0x11b   : > { %v4680_v63 = vpop.f32.mrb[13].mxu1  ;;  %v4608_v5 = vpop.f32.mrb[13].mxu0 }
 0x11c   : > { %v6680_v58 = vadd.f32 %v4680_v63, %v4679_v7  ;;  %v4682_v53 = vpop.f32.mrb[14].mxu1  ;;  %5132 = vmatpush3.bf16.msra.mxu1 %v5697_v27  ;;  %v6682_v34 = vadd.f32 %v4608_v5, %v4607_v1  ;;  %v4610_v28 = vpop.f32.mrb[14].mxu0 }
 0x11d   : > { %v4683_v35 = vpop.f32.mrb[15].mxu1  ;;  %5133 = vmatprep.subr.bf16.mxu1 %v5698_v38  ;;  %v4611_v48 = vpop.f32.mrb[15].mxu0 }
 0x11e   : > { %7130 = vst [vmem:[#allocation4_spill] sm:$0xff] %v6680_v58  ;;  %v6687_v54 = vadd.f32 %v4683_v35, %v4682_v53  ;;  %v6689_v46 = vadd.f32 %v4611_v48, %v4610_v28 }
 0x11f   : > { %5102 = vmatmul.mubr.bf16.gmra.mrb[24].mxu1 %v6493_v6  ;;  %v5701_v6 = vld [vmem:[%s7121_s1 + $0x238] sm:$0xff]  }
 0x120   : > { %7131 = vst [vmem:[#allocation5_spill] sm:$0xff] %v6687_v54  ;;  %5105 = vmatprep.mubr.bf16.mxu1 %v6502_v0  ;;  %5134 = vmatpush3.bf16.msra.mxu1 %v5698_v38 }
 0x121   : > { %5135 = vmatprep.subr.bf16.mxu1 %v5699_v19 }
 0x122   : > { %v4613_v44 = vpop.f32.mrb[16].mxu0 }
 0x123   : > { %v4614_v21 = vpop.f32.mrb[17].mxu0 }
 0x124   : > { %5136 = vmatpush3.bf16.msra.mxu1 %v5699_v19  ;;  %v6696_v12 = vadd.f32 %v4614_v21, %v4613_v44  ;;  %v4616_v30 = vpop.f32.mrb[18].mxu0  ;;  %v776_v44 = vrot.slane %v6585_v4, 1  ;;  %v5739_v4 = vld [vmem:[%s5870_s8 + $0x18] sm:$0xff]  }
 0x125   : > { %5137 = vmatprep.subr.bf16.mxu1 %v5700_v22  ;;  %v4617_v27 = vpop.f32.mrb[19].mxu0 }
 0x126   : > { %v6701_v51 = vadd.f32 %v4617_v27, %v4616_v30 }
 0x127   : > { %5106 = vmatmul.mubr.bf16.gmra.mrb[28].mxu1 %v6508_v40  ;;  %v5702_v40 = vld [vmem:[%s7123_s3] sm:$0xff]  }
 0x128   : > { %5109 = vmatprep.mubr.bf16.mxu1 %v6511_v56  ;;  %5138 = vmatpush3.bf16.msra.mxu1 %v5700_v22  ;;  %v775_v22 = vrot.slane %v6574_v25, 1  ;;  %v5703_v25 = vld [vmem:[%s7123_s3 + $0x8] sm:$0xff]  }
 0x129   : > { %5139 = vmatprep.subr.bf16.mxu1 %v5701_v6  ;;  %5173 = vmatprep.subr.bf16.mxu0 %v5702_v40 }
 0x12a   : > { %v4619_v0 = vpop.f32.mrb[20].mxu0  ;;  %5174 = vmatpush3.bf16.msra.mxu0 %v5702_v40 }
 0x12b   : > { %v4620_v38 = vpop.f32.mrb[21].mxu0  ;;  %5175 = vmatprep.subr.bf16.mxu0 %v5703_v25 }
 0x12c   : > { %5140 = vmatpush3.bf16.msra.mxu1 %v5701_v6  ;;  %v6705_v7 = vadd.f32 %v4620_v38, %v4619_v0  ;;  %v4622_v1 = vpop.f32.mrb[22].mxu0 }
 0x12d   : > { %v4623_v63 = vpop.f32.mrb[23].mxu0 }
 0x12e   : > { %v6707_v5 = vadd.f32 %v4623_v63, %v4622_v1  ;;  %v2698_v1 = vrot.slane %v5739_v4, 1  ;;  %v5740_v63 = vld [vmem:[%s5870_s8 + $0x20] ss:$0 sps:$4 sm:$0x11]   ;;  %5176 = vmatpush3.bf16.msra.mxu0 %v5703_v25 }
 0x12f   : > { %5110 = vmatmul.mubr.bf16.gmra.mrb[32].mxu1 %v6515_v10  ;;  %v772_v10 = vrot.slane %v6551_v61, 1  ;;  %v778_v61 = vrot.slane %v6596_v59, 1  ;;  %v2699_v40 = vrot.slane %v5740_v63, 1 }
 0x130   : > { %5113 = vmatprep.mubr.bf16.mxu1 %v6523_v23  ;;  %v773_v23 = vrot.slane %v6563_v62, 1  ;;  %v779_v62 = vrot.slane %v6607_v8, 1 }
 0x132   : > { %v4625_v56 = vpop.f32.mrb[24].mxu0  ;;  %v774_v27 = vsel %vm732_vm1, %v772_v10, %v773_v23  ;;  %v780_v59 = vsel %vm732_vm1, %v778_v61, %v779_v62 }
 0x133   : > { %v4626_v53 = vpop.f32.mrb[25].mxu0 }
 0x134   : > { %v6714_v28 = vadd.f32 %v4626_v53, %v4625_v56  ;;  %v4628_v35 = vpop.f32.mrb[26].mxu0 }
 0x135   : > { %v4629_v19 = vpop.f32.mrb[27].mxu0 }
 0x136   : > { %v6716_v48 = vadd.f32 %v4629_v19, %v4628_v35  ;;  %v2700_v19 = vsel %vm732_vm1, %v2698_v1, %v2699_v40 }
 0x137   : > { %5114 = vmatmul.mubr.bf16.gmra.mrb[36].mxu1 %v6528_v13  ;;  %v777_v13 = vsel %vm732_vm1, %v775_v22, %v776_v44  ;;  %v5741_v22 = vld [vmem:[%s5870_s8 + $0x24] sm:$0xff]  }
 0x138   : > { %5117 = vmatprep.mubr.bf16.mxu1 %v6531_v15  ;;  %v2701_v44 = vrot.slane %v5741_v22, 1  ;;  %v5747_v22 = vld [vmem:[%s5870_s8 + $0x48] sm:$0xff]  }
 0x13a   : > { %v4631_v21 = vpop.f32.mrb[28].mxu0 }
 0x13b   : > { %v4632_v30 = vpop.f32.mrb[29].mxu0 }
 0x13c   : > { %v6725_v6 = vadd.f32 %v4632_v30, %v4631_v21  ;;  %v4634_v0 = vpop.f32.mrb[30].mxu0  ;;  %v5742_v21 = vld [vmem:[%s5870_s8 + $0x2c] ss:$0 sps:$4 sm:$0x11]  }
 0x13d   : > { %v4635_v15 = vpop.f32.mrb[31].mxu0  ;;  %v2702_v30 = vrot.slane %v5742_v21, 1  ;;  %v5748_v21 = vld [vmem:[%s5870_s8 + $0x50] ss:$0 sps:$4 sm:$0x11]  }
 0x13e   : > { %v6728_v38 = vadd.f32 %v4635_v15, %v4634_v0 }
 0x13f   : > { %5118 = vmatmul.mubr.bf16.gmra.mrb[40].mxu1 %v774_v27  ;;  %v5743_v27 = vld [vmem:[%s5870_s8 + $0x30] sm:$0xff]   ;;  %v2703_v25 = vsel %vm732_vm1, %v2701_v44, %v2702_v30  ;;  %v2710_v44 = vrot.slane %v5747_v22, 1  ;;  %v2711_v30 = vrot.slane %v5748_v21, 1  ;;  %v5751_v22 = vld [vmem:[%s5870_s8 + $0x60] sm:$0xff]  }
 0x140   : > { %5121 = vmatprep.mubr.bf16.mxu1 %v777_v13  ;;  %v2704_v0 = vrot.slane %v5743_v27, 1  ;;  %v5744_v13 = vld [vmem:[%s5870_s8 + $0x38] ss:$0 sps:$4 sm:$0x11]   ;;  %v2716_v21 = vrot.slane %v5751_v22, 1 }
 0x141   : > { %v2705_v15 = vrot.slane %v5744_v13, 1 }
 0x142   : > { %v4637_v56 = vpop.f32.mrb[32].mxu0 }
 0x143   : > { %v4638_v53 = vpop.f32.mrb[33].mxu0  ;;  %v2706_v63 = vsel %vm732_vm1, %v2704_v0, %v2705_v15 }
 0x144   : > { %v6738_v35 = vadd.f32 %v4638_v53, %v4637_v56  ;;  %v4640_v8 = vpop.f32.mrb[34].mxu0  ;;  %v5745_v53 = vld [vmem:[%s5870_s8 + $0x3c] sm:$0xff]  }
 0x145   : > { %v4641_v10 = vpop.f32.mrb[35].mxu0 }
 0x146   : > { %v6741_v23 = vadd.f32 %v4641_v10, %v4640_v8  ;;  %v5746_v8 = vld [vmem:[%s5870_s8 + $0x44] ss:$0 sps:$4 sm:$0x11]   ;;  %v5704_v10 = vld [vmem:[%s7123_s3 + $0x10] sm:$0xff]  }
 0x147   : > { %5122 = vmatmul.mubr.bf16.gmra.mrb[44].mxu1 %v780_v59  ;;  %v2707_v59 = vrot.slane %v5745_v53, 1  ;;  %5177 = vmatprep.subr.bf16.mxu0 %v5704_v10  ;;  %v5750_v53 = vld [vmem:[%s5870_s8 + $0x5c] ss:$0 sps:$4 sm:$0x11]  }
 0x148   : > { %5141 = vmatprep.mubr.bf16.mxu1 %v2700_v19  ;;  %v2708_v19 = vrot.slane %v5746_v8, 1  ;;  %5178 = vmatpush3.bf16.msra.mxu0 %v5704_v10  ;;  %v2714_v8 = vrot.slane %v5750_v53, 1  ;;  %v5752_v10 = vld [vmem:[%s5870_s8 + $0x68] ss:$0 sps:$4 sm:$0x11]   ;;  %v5705_v53 = vld [vmem:[%s7123_s3 + $0x18] sm:$0xff]  }
 0x149   : > { %v2717_v54 = vrot.slane %v5752_v10, 1  ;;  %5179 = vmatprep.subr.bf16.mxu0 %v5705_v53 }
 0x14a   : > { %v4643_v61 = vpop.f32.mrb[36].mxu0  ;;  %v2709_v13 = vsel %vm732_vm1, %v2707_v59, %v2708_v19 }
 0x14b   : > { %v4644_v62 = vpop.f32.mrb[37].mxu0 }
 0x14c   : > { %v6748_v4 = vadd.f32 %v4644_v62, %v4643_v61  ;;  %v4646_v1 = vpop.f32.mrb[38].mxu0  ;;  %v2712_v62 = vsel %vm732_vm1, %v2710_v44, %v2711_v30  ;;  %5180 = vmatpush3.bf16.msra.mxu0 %v5705_v53 }
 0x14d   : > { %v4647_v40 = vpop.f32.mrb[39].mxu0 }
 0x14e   : > { %v6751_v56 = vadd.f32 %v4647_v40, %v4646_v1 }
 0x14f   : > { %5142 = vmatmul.mubr.bf16.vlgmr.msra.gmra.mrb[16].mxu1 %v2703_v25 }
 0x150   : > { %5145 = vmatprep.mubr.bf16.mxu1 %v2706_v63  ;;  %v5749_v63 = vld [vmem:[%s5870_s8 + $0x54] sm:$0xff]  }
 0x151   : > { %v2713_v40 = vrot.slane %v5749_v63, 1  ;;  %v2720_v63 = vrot.slane %v6391_v11, 1 }
 0x152   : > { %v4649_v27 = vpop.f32.mrb[40].mxu0 }
 0x153   : > { %v4650_v0 = vpop.f32.mrb[41].mxu0 }
 0x154   : > { %v6761_v15 = vadd.f32 %v4650_v0, %v4649_v27  ;;  %v4652_v61 = vpop.f32.mrb[42].mxu0  ;;  %v2715_v27 = vsel %vm732_vm1, %v2713_v40, %v2714_v8  ;;  %v5706_v40 = vld [vmem:[%s7123_s3 + $0x20] sm:$0xff]   ;;  %v2722_v8 = vrot.slane %v6411_v43, 1 }
 0x155   : > { %v4653_v25 = vpop.f32.mrb[43].mxu0  ;;  %5181 = vmatprep.subr.bf16.mxu0 %v5706_v40 }
 0x156   : > { %v6764_v1 = vadd.f32 %v4653_v25, %v4652_v61  ;;  %5182 = vmatpush3.bf16.msra.mxu0 %v5706_v40 }
 0x157   : > { %5146 = vmatmul.mubr.bf16.gmra.mrb[20].mxu1 %v2709_v13  ;;  %v2718_v13 = vsel %vm732_vm1, %v2716_v21, %v2717_v54  ;;  %v2723_v54 = vrot.slane %v6414_v52, 1 }
 0x158   : > { %5149 = vmatprep.mubr.bf16.mxu1 %v2712_v62  ;;  %v5753_v62 = vld [vmem:[%s5870_s8 + $0x6c] sm:$0xff]  }
 0x159   : > { %v2719_v25 = vrot.slane %v5753_v62, 1  ;;  %v2724_v52 = vsel %vm732_vm1, %v2722_v8, %v2723_v54  ;;  %v2729_v8 = vrot.slane %v6462_v26, 1 }
 0x15a   : > { %v4655_v59 = vpop.f32.mrb[44].mxu0 }
 0x15b   : > { %v4656_v19 = vpop.f32.mrb[45].mxu0 }
 0x15c   : > { %v6771_v0 = vadd.f32 %v4656_v19, %v4655_v59  ;;  %v4658_v44 = vpop.f32.mrb[46].mxu0 }
 0x15d   : > { %v4659_v30 = vpop.f32.mrb[47].mxu0 }
 0x15e   : > { %v6774_v61 = vadd.f32 %v4659_v30, %v4658_v44  ;;  %v2721_v30 = vsel %vm732_vm1, %v2719_v25, %v2720_v63  ;;  %v2725_v25 = vrot.slane %v6424_v37, 1  ;;  %v2726_v63 = vrot.slane %v6433_v57, 1 }
 0x15f   : > { %5150 = vmatmul.mubr.bf16.gmra.mrb[24].mxu1 %v2715_v27 }
 0x160   : > { %5153 = vmatprep.mubr.bf16.mxu1 %v2718_v13  ;;  %v5707_v13 = vld [vmem:[%s7123_s3 + $0x28] sm:$0xff]  }
 0x161   : > { %5183 = vmatprep.subr.bf16.mxu0 %v5707_v13 }
 0x162   : > { %v4725_v22 = vpop.f32.mrb[48].mxu1  ;;  %v4861_v21 = vpop.f32.mrb[48].mxu0  ;;  %5184 = vmatpush3.bf16.msra.mxu0 %v5707_v13 }
 0x163   : > { %v4726_v10 = vpop.f32.mrb[49].mxu1  ;;  %v4862_v59 = vpop.f32.mrb[49].mxu0 }
 0x164   : > { %v4727_v19 = vadd.f32 %v4726_v10, %v4725_v22  ;;  %v4728_v11 = vpop.f32.mrb[50].mxu1  ;;  %v4863_v27 = vadd.f32 %v4862_v59, %v4861_v21  ;;  %v4864_v44 = vpop.f32.mrb[50].mxu0  ;;  %v5708_v22 = vld [vmem:[%s7123_s3 + $0x30] sm:$0xff]  }
 0x165   : > { %v4729_v43 = vpop.f32.mrb[51].mxu1  ;;  %v4865_v62 = vpop.f32.mrb[51].mxu0  ;;  %5185 = vmatprep.subr.bf16.mxu0 %v5708_v22 }
 0x166   : > { %v5288_v58 = vadd.f32 %v4727_v19, %v6630_v24  ;;  %v4730_v41 = vadd.f32 %v4729_v43, %v4728_v11  ;;  %v4866_v47 = vadd.f32 %v4865_v62, %v4864_v44  ;;  %v2728_v24 = vrot.slane %v6452_v16, 1  ;;  %v5709_v16 = vld [vmem:[%s7123_s3 + $0x38] sm:$0xff]   ;;  %5186 = vmatpush3.bf16.msra.mxu0 %v5708_v22 }
 0x167   : > { %5154 = vmatmul.mubr.bf16.gmra.mrb[28].mxu1 %v2721_v30  ;;  %v2727_v11 = vsel %vm732_vm1, %v2725_v25, %v2726_v63  ;;  %v2731_v43 = vrot.slane %v6473_v36, 1  ;;  %v2732_v62 = vrot.slane %v6520_v55, 1  ;;  %5187 = vmatprep.subr.bf16.mxu0 %v5709_v16  ;;  %v2735_v25 = vrot.slane %v6546_v50, 1 }
 0x168   : > { %v5294_v53 = vadd.f32 %v4730_v41, %v6635_v33  ;;  %5157 = vmatprep.mubr.bf16.mxu1 %v2724_v52  ;;  %v6798_v21 = vadd.f32 %v5288_v58, %v4863_v27  ;;  %v2730_v27 = vsel %vm732_vm1, %v2728_v24, %v2729_v8 }
 0x169   : > { %v2733_v55 = vsel %vm732_vm1, %v2731_v43, %v2732_v62 }
 0x16a   : > { %v4731_v54 = vpop.f32.mrb[52].mxu1  ;;  %v4867_v40 = vpop.f32.mrb[52].mxu0  ;;  %v6802_v10 = vadd.f32 %v5294_v53, %v4866_v47  ;;  %v2734_v53 = vrot.slane %v6539_v18, 1  ;;  %5188 = vmatpush3.bf16.msra.mxu0 %v5709_v16 }
 0x16b   : > { %v4732_v33 = vpop.f32.mrb[53].mxu1  ;;  %v4868_v41 = vpop.f32.mrb[53].mxu0 }
 0x16c   : > { %v4733_v37 = vadd.f32 %v4732_v33, %v4731_v54  ;;  %v4734_v57 = vpop.f32.mrb[54].mxu1  ;;  %v4869_v59 = vadd.f32 %v4868_v41, %v4867_v40  ;;  %v4870_v19 = vpop.f32.mrb[54].mxu0 }
 0x16d   : > { %v4735_v58 = vpop.f32.mrb[55].mxu1  ;;  %v4871_v26 = vpop.f32.mrb[55].mxu0 }
 0x16e   : > { %v5285_v47 = vadd.f32 %v4733_v37, %v6646_v3  ;;  %v4736_v44 = vadd.f32 %v4735_v58, %v4734_v57  ;;  %v4872_v30 = vadd.f32 %v4871_v26, %v4870_v19  ;;  %v2736_v37 = vsel %vm732_vm1, %v2734_v53, %v2735_v25 }
 0x16f   : > { %5158 = vmatmul.mubr.bf16.gmra.mrb[32].mxu1 %v2727_v11  ;;  %v2737_v19 = vrot.slane %v6558_v42, 1  ;;  %v2738_v11 = vrot.slane %v6567_v14, 1  ;;  %v2740_v58 = vrot.slane %v6580_v39, 1  ;;  %v2741_v26 = vrot.slane %v6589_v49, 1 }
 0x170   : > { %v5291_v13 = vadd.f32 %v4736_v44, %v6654_v20  ;;  %5161 = vmatprep.mubr.bf16.mxu1 %v2730_v27  ;;  %v6813_v52 = vadd.f32 %v5285_v47, %v4869_v59 }
 0x171   : > { %v2739_v42 = vsel %vm732_vm1, %v2737_v19, %v2738_v11  ;;  %v2742_v25 = vsel %vm732_vm1, %v2740_v58, %v2741_v26 }
 0x172   : > { %v4737_v63 = vpop.f32.mrb[56].mxu1  ;;  %v4873_v3 = vpop.f32.mrb[56].mxu0  ;;  %v6817_v24 = vadd.f32 %v5291_v13, %v4872_v30 }
 0x173   : > { %v4738_v8 = vpop.f32.mrb[57].mxu1  ;;  %v4874_v22 = vpop.f32.mrb[57].mxu0 }
 0x174   : > { %v4739_v20 = vadd.f32 %v4738_v8, %v4737_v63  ;;  %v4740_v54 = vpop.f32.mrb[58].mxu1  ;;  %v4875_v40 = vadd.f32 %v4874_v22, %v4873_v3  ;;  %v4876_v36 = vpop.f32.mrb[58].mxu0  ;;  %v2743_v8 = vrot.slane %v6602_v32, 1  ;;  %v2744_v22 = vrot.slane %v6611_v31, 1 }
 0x175   : > { %v4741_v33 = vpop.f32.mrb[59].mxu1  ;;  %v4877_v41 = vpop.f32.mrb[59].mxu0 }
 0x176   : > { %v5300_v18 = vadd.f32 %v4739_v20, %v6667_v2  ;;  %v4742_v50 = vadd.f32 %v4741_v33, %v4740_v54  ;;  %v4878_v57 = vadd.f32 %v4877_v41, %v4876_v36 }
 0x177   : > { %5162 = vmatmul.mubr.bf16.gmra.mrb[36].mxu1 %v2733_v55 }
 0x178   : > { %v5306_v59 = vadd.f32 %v4742_v50, %v6675_v45  ;;  %5165 = vmatprep.mubr.bf16.mxu1 %v2736_v37  ;;  %v6825_v16 = vadd.f32 %v5300_v18, %v4875_v40  ;;  %v2745_v50 = vsel %vm732_vm1, %v2743_v8, %v2744_v22 }
 0x17a   : > { %v4743_v27 = vpop.f32.mrb[60].mxu1  ;;  %v4879_v47 = vpop.f32.mrb[60].mxu0  ;;  %v6829_v44 = vadd.f32 %v5306_v59, %v4878_v57 }
 0x17b   : > { %v4744_v2 = vpop.f32.mrb[61].mxu1  ;;  %v4880_v30 = vpop.f32.mrb[61].mxu0 }
 0x17c   : > { %v4745_v13 = vadd.f32 %v4744_v2, %v4743_v27  ;;  %v4746_v43 = vpop.f32.mrb[62].mxu1  ;;  %v4881_v45 = vadd.f32 %v4880_v30, %v4879_v47  ;;  %v4882_v62 = vpop.f32.mrb[62].mxu0 }
 0x17d   : > { %v4747_v53 = vpop.f32.mrb[63].mxu1  ;;  %v4883_v14 = vpop.f32.mrb[63].mxu0 }
 0x17e   : > { %v5297_v39 = vadd.f32 %v4745_v13, %v6682_v34  ;;  %v4748_v63 = vadd.f32 %v4747_v53, %v4746_v43  ;;  %v4884_v49 = vadd.f32 %v4883_v14, %v4882_v62 }
 0x17f   : > { %5166 = vmatmul.mubr.bf16.gmra.mrb[40].mxu1 %v2739_v42 }
 0x180   : > { %v5303_v3 = vadd.f32 %v4748_v63, %v6689_v46  ;;  %5169 = vmatprep.mubr.bf16.mxu1 %v2742_v25  ;;  %v6837_v20 = vadd.f32 %v5297_v39, %v4881_v45 }
 0x182   : > { %v4749_v54 = vpop.f32.mrb[64].mxu1  ;;  %v4885_v40 = vpop.f32.mrb[64].mxu0  ;;  %v6839_v36 = vadd.f32 %v5303_v3, %v4884_v49 }
 0x183   : > { %v4750_v55 = vpop.f32.mrb[65].mxu1  ;;  %v4886_v33 = vpop.f32.mrb[65].mxu0 }
 0x184   : > { %v4751_v41 = vadd.f32 %v4750_v55, %v4749_v54  ;;  %v4752_v34 = vpop.f32.mrb[66].mxu1  ;;  %v4887_v37 = vadd.f32 %v4886_v33, %v4885_v40  ;;  %v4888_v18 = vpop.f32.mrb[66].mxu0 }
 0x185   : > { %v4753_v46 = vpop.f32.mrb[67].mxu1  ;;  %v4889_v57 = vpop.f32.mrb[67].mxu0 }
 0x186   : > { %v5312_v32 = vadd.f32 %v4751_v41, %v6696_v12  ;;  %v4754_v59 = vadd.f32 %v4753_v46, %v4752_v34  ;;  %v4890_v31 = vadd.f32 %v4889_v57, %v4888_v18 }
 0x187   : > { %5170 = vmatmul.mubr.bf16.gmra.mrb[44].mxu1 %v2745_v50 }
 0x188   : > { %v5318_v19 = vadd.f32 %v4754_v59, %v6701_v51  ;;  %v6844_v11 = vadd.f32 %v5312_v32, %v4887_v37 }
 0x18a   : > { %v4755_v58 = vpop.f32.mrb[68].mxu1  ;;  %v4891_v26 = vpop.f32.mrb[68].mxu0  ;;  %v6846_v27 = vadd.f32 %v5318_v19, %v4890_v31 }
 0x18b   : > { %v4756_v47 = vpop.f32.mrb[69].mxu1  ;;  %v4892_v2 = vpop.f32.mrb[69].mxu0 }
 0x18c   : > { %v4757_v30 = vadd.f32 %v4756_v47, %v4755_v58  ;;  %v4758_v13 = vpop.f32.mrb[70].mxu1  ;;  %v4893_v43 = vadd.f32 %v4892_v2, %v4891_v26  ;;  %v4894_v45 = vpop.f32.mrb[70].mxu0 }
 0x18d   : > { %v4759_v62 = vpop.f32.mrb[71].mxu1  ;;  %v4895_v42 = vpop.f32.mrb[71].mxu0 }
 0x18e   : > { %v5309_v12 = vadd.f32 %v4757_v30, %v6705_v7  ;;  %v4760_v53 = vadd.f32 %v4759_v62, %v4758_v13  ;;  %v4896_v14 = vadd.f32 %v4895_v42, %v4894_v45 }
 0x190   : > { %v5315_v51 = vadd.f32 %v4760_v53, %v6707_v5  ;;  %v6850_v25 = vadd.f32 %v5309_v12, %v4893_v43 }
 0x192   : > { %v4761_v39 = vpop.f32.mrb[72].mxu1  ;;  %v4897_v63 = vpop.f32.mrb[72].mxu0  ;;  %v6852_v49 = vadd.f32 %v5315_v51, %v4896_v14 }
 0x193   : > { %v4762_v3 = vpop.f32.mrb[73].mxu1  ;;  %v4898_v8 = vpop.f32.mrb[73].mxu0 }
 0x194   : > { %v4763_v22 = vadd.f32 %v4762_v3, %v4761_v39  ;;  %v4764_v54 = vpop.f32.mrb[74].mxu1  ;;  %v4899_v40 = vadd.f32 %v4898_v8, %v4897_v63  ;;  %v4900_v55 = vpop.f32.mrb[74].mxu0 }
 0x195   : > { %v4765_v33 = vpop.f32.mrb[75].mxu1  ;;  %v4901_v41 = vpop.f32.mrb[75].mxu0 }
 0x196   : > { %v5324_v7 = vadd.f32 %v4763_v22, %v6714_v28  ;;  %v4766_v34 = vadd.f32 %v4765_v33, %v4764_v54  ;;  %v4902_v37 = vadd.f32 %v4901_v41, %v4900_v55 }
 0x198   : > { %v5330_v5 = vadd.f32 %v4766_v34, %v6716_v48  ;;  %v6856_v18 = vadd.f32 %v5324_v7, %v4899_v40 }
 0x19a   : > { %v4767_v50 = vpop.f32.mrb[76].mxu1  ;;  %v4903_v46 = vpop.f32.mrb[76].mxu0  ;;  %v6858_v57 = vadd.f32 %v5330_v5, %v4902_v37 }
 0x19b   : > { %v4768_v32 = vpop.f32.mrb[77].mxu1  ;;  %v4904_v59 = vpop.f32.mrb[77].mxu0 }
 0x19c   : > { %v4769_v31 = vadd.f32 %v4768_v32, %v4767_v50  ;;  %v4770_v19 = vpop.f32.mrb[78].mxu1  ;;  %v4905_v58 = vadd.f32 %v4904_v59, %v4903_v46  ;;  %v4906_v26 = vpop.f32.mrb[78].mxu0 }
 0x19d   : > { %v4771_v47 = vpop.f32.mrb[79].mxu1  ;;  %v4907_v2 = vpop.f32.mrb[79].mxu0 }
 0x19e   : > { %v5321_v28 = vadd.f32 %v4769_v31, %v6725_v6  ;;  %v4772_v30 = vadd.f32 %v4771_v47, %v4770_v19  ;;  %v4908_v13 = vadd.f32 %v4907_v2, %v4906_v26  ;;  %v6879_v2 = vld [vmem:[%s7126_s6] sm:$0xff]  }
 0x19f   : > { %5221 = vmatprep.subr.bf16.mxu0 %v6879_v2 }
 0x1a0   : > { %v5327_v48 = vadd.f32 %v4772_v30, %v6728_v38  ;;  %v6862_v43 = vadd.f32 %v5321_v28, %v4905_v58 }
 0x1a2   : > { %v4773_v45 = vpop.f32.mrb[80].mxu1  ;;  %v4909_v62 = vpop.f32.mrb[80].mxu0  ;;  %v6864_v42 = vadd.f32 %v5327_v48, %v4908_v13 }
 0x1a3   : > { %v4774_v12 = vpop.f32.mrb[81].mxu1  ;;  %v4910_v53 = vpop.f32.mrb[81].mxu0 }
 0x1a4   : > { %v4775_v14 = vadd.f32 %v4774_v12, %v4773_v45  ;;  %v4776_v51 = vpop.f32.mrb[82].mxu1  ;;  %v4911_v39 = vadd.f32 %v4910_v53, %v4909_v62  ;;  %v4912_v63 = vpop.f32.mrb[82].mxu0 }
 0x1a5   : > { %v4777_v3 = vpop.f32.mrb[83].mxu1  ;;  %v4913_v8 = vpop.f32.mrb[83].mxu0 }
 0x1a6   : > { %v5336_v6 = vadd.f32 %v4775_v14, %v6738_v35  ;;  %v4778_v22 = vadd.f32 %v4777_v3, %v4776_v51  ;;  %v4914_v54 = vadd.f32 %v4913_v8, %v4912_v63 }
 0x1a8   : > { %v5342_v38 = vadd.f32 %v4778_v22, %v6741_v23  ;;  %v6868_v40 = vadd.f32 %v5336_v6, %v4911_v39 }
 0x1aa   : > { %v4779_v55 = vpop.f32.mrb[84].mxu1  ;;  %v4915_v33 = vpop.f32.mrb[84].mxu0  ;;  %v6870_v41 = vadd.f32 %v5342_v38, %v4914_v54 }
 0x1ab   : > { %v4780_v7 = vpop.f32.mrb[85].mxu1  ;;  %v4916_v34 = vpop.f32.mrb[85].mxu0 }
 0x1ac   : > { %v4781_v37 = vadd.f32 %v4780_v7, %v4779_v55  ;;  %v4782_v5 = vpop.f32.mrb[86].mxu1  ;;  %v4917_v50 = vadd.f32 %v4916_v34, %v4915_v33  ;;  %v4918_v46 = vpop.f32.mrb[86].mxu0 }
 0x1ad   : > { %v4783_v32 = vpop.f32.mrb[87].mxu1  ;;  %v4919_v59 = vpop.f32.mrb[87].mxu0 }
 0x1ae   : > { %v5333_v35 = vadd.f32 %v4781_v37, %v6748_v4  ;;  %v4784_v31 = vadd.f32 %v4783_v32, %v4782_v5  ;;  %v4920_v19 = vadd.f32 %v4919_v59, %v4918_v46 }
 0x1b0   : > { %v5339_v23 = vadd.f32 %v4784_v31, %v6751_v56  ;;  %v6874_v58 = vadd.f32 %v5333_v35, %v4917_v50 }
 0x1b2   : > { %v4785_v26 = vpop.f32.mrb[88].mxu1  ;;  %v4921_v47 = vpop.f32.mrb[88].mxu0  ;;  %v6881_v28 = vadd.f32 %v5339_v23, %v4920_v19 }
 0x1b3   : > { %v4786_v30 = vpop.f32.mrb[89].mxu1  ;;  %v4922_v13 = vpop.f32.mrb[89].mxu0 }
 0x1b4   : > { %v4787_v48 = vadd.f32 %v4786_v30, %v4785_v26  ;;  %v4788_v45 = vpop.f32.mrb[90].mxu1  ;;  %v4923_v4 = vadd.f32 %v4922_v13, %v4921_v47  ;;  %v4924_v62 = vpop.f32.mrb[90].mxu0 }
 0x1b5   : > { %v4789_v56 = vpop.f32.mrb[91].mxu1  ;;  %v4925_v12 = vpop.f32.mrb[91].mxu0 }
 0x1b6   : > { %v5348_v53 = vadd.f32 %v4787_v48, %v6761_v15  ;;  %v4790_v14 = vadd.f32 %v4789_v56, %v4788_v45  ;;  %v4926_v51 = vadd.f32 %v4925_v12, %v4924_v62 }
 0x1b8   : > { %v5354_v39 = vadd.f32 %v4790_v14, %v6764_v1  ;;  %v6886_v63 = vadd.f32 %v5348_v53, %v4923_v4 }
 0x1ba   : > { %v4791_v3 = vpop.f32.mrb[92].mxu1  ;;  %v4927_v8 = vpop.f32.mrb[92].mxu0  ;;  %v6888_v6 = vadd.f32 %v5354_v39, %v4926_v51 }
 0x1bb   : > { %v4792_v22 = vpop.f32.mrb[93].mxu1  ;;  %v4928_v54 = vpop.f32.mrb[93].mxu0 }
 0x1bc   : > { %v4793_v38 = vadd.f32 %v4792_v22, %v4791_v3  ;;  %v4794_v55 = vpop.f32.mrb[94].mxu1  ;;  %v4929_v33 = vadd.f32 %v4928_v54, %v4927_v8  ;;  %v4930_v7 = vpop.f32.mrb[94].mxu0 }
 0x1bd   : > { %v4795_v34 = vpop.f32.mrb[95].mxu1  ;;  %v4931_v37 = vpop.f32.mrb[95].mxu0 }
 0x1be   : > { %v5345_v15 = vadd.f32 %v4793_v38, %v6771_v0  ;;  %v4796_v5 = vadd.f32 %v4795_v34, %v4794_v55  ;;  %v4932_v50 = vadd.f32 %v4931_v37, %v4930_v7 }
 0x1c0   : > { %v5351_v1 = vadd.f32 %v4796_v5, %v6774_v61  ;;  %v6892_v46 = vadd.f32 %v5345_v15, %v4929_v33 }
 0x1c2   : > { %v4797_v32 = vpop.f32.mrb[96].mxu1  ;;  %v4933_v59 = vpop.f32.mrb[96].mxu0  ;;  %v6894_v35 = vadd.f32 %v5351_v1, %v4932_v50 }
 0x1c3   : > { %v4798_v31 = vpop.f32.mrb[97].mxu1  ;;  %v4934_v19 = vpop.f32.mrb[97].mxu0 }
 0x1c4   : > { %v4799_v23 = vadd.f32 %v4798_v31, %v4797_v32  ;;  %v4800_v26 = vpop.f32.mrb[98].mxu1  ;;  %v4935_v47 = vadd.f32 %v4934_v19, %v4933_v59  ;;  %v4936_v30 = vpop.f32.mrb[98].mxu0 }
 0x1c5   : > { %v4801_v13 = vpop.f32.mrb[99].mxu1  ;;  %v4937_v48 = vpop.f32.mrb[99].mxu0 }
 0x1c6   : > { %v5360_v0 = vadd.f32 %v4799_v23, %v6628_v60  ;;  %v4802_v45 = vadd.f32 %v4801_v13, %v4800_v26  ;;  %v4938_v4 = vadd.f32 %v4937_v48, %v4936_v30  ;;  %v7132_v26 = vld [vmem:[#allocation2_spill] sm:$0xff]  ;;  %v7133_v13 = vld [vmem:[#allocation3_spill] sm:$0xff] }
 0x1c8   : > { %v5366_v61 = vadd.f32 %v4802_v45, %v6633_v29  ;;  %v6898_v62 = vadd.f32 %v5360_v0, %v4935_v47 }
 0x1ca   : > { %v4803_v56 = vpop.f32.mrb[100].mxu1  ;;  %v4939_v12 = vpop.f32.mrb[100].mxu0  ;;  %v6900_v53 = vadd.f32 %v5366_v61, %v4938_v4 }
 0x1cb   : > { %v4804_v14 = vpop.f32.mrb[101].mxu1  ;;  %v4940_v51 = vpop.f32.mrb[101].mxu0 }
 0x1cc   : > { %v4805_v39 = vadd.f32 %v4804_v14, %v4803_v56  ;;  %v4806_v3 = vpop.f32.mrb[102].mxu1  ;;  %v4941_v8 = vadd.f32 %v4940_v51, %v4939_v12  ;;  %v4942_v22 = vpop.f32.mrb[102].mxu0 }
 0x1cd   : > { %v4807_v54 = vpop.f32.mrb[103].mxu1  ;;  %v4943_v38 = vpop.f32.mrb[103].mxu0 }
 0x1ce   : > { %v5357_v60 = vadd.f32 %v4805_v39, %v6643_v9  ;;  %v4808_v55 = vadd.f32 %v4807_v54, %v4806_v3  ;;  %v4944_v33 = vadd.f32 %v4943_v38, %v4942_v22  ;;  %v7134_v22 = vld [vmem:[#allocation4_spill] sm:$0xff] }
 0x1d0   : > { %v5363_v29 = vadd.f32 %v4808_v55, %v6652_v17  ;;  %v6904_v7 = vadd.f32 %v5357_v60, %v4941_v8  ;;  %v7135_v55 = vld [vmem:[#allocation5_spill] sm:$0xff] }
 0x1d2   : > { %v4809_v34 = vpop.f32.mrb[104].mxu1  ;;  %v4945_v37 = vpop.f32.mrb[104].mxu0  ;;  %v6906_v15 = vadd.f32 %v5363_v29, %v4944_v33 }
 0x1d3   : > { %v4810_v5 = vpop.f32.mrb[105].mxu1  ;;  %v4946_v50 = vpop.f32.mrb[105].mxu0 }
 0x1d4   : > { %v4811_v1 = vadd.f32 %v4810_v5, %v4809_v34  ;;  %v4812_v32 = vpop.f32.mrb[106].mxu1  ;;  %v4947_v59 = vadd.f32 %v4946_v50, %v4945_v37  ;;  %v4948_v31 = vpop.f32.mrb[106].mxu0  ;;  %v6932_v5 = vld [vmem:[%s7122_s2] ss:$0 sm:$0xff] }
 0x1d5   : > { %v4813_v19 = vpop.f32.mrb[107].mxu1  ;;  %v4949_v23 = vpop.f32.mrb[107].mxu0 }
 0x1d6   : > { %v5372_v9 = vadd.f32 %v4811_v1, %v7132_v26  ;;  %v4814_v47 = vadd.f32 %v4813_v19, %v4812_v32  ;;  %v4950_v30 = vadd.f32 %v4949_v23, %v4948_v31 }
 0x1d8   : > { %v5378_v17 = vadd.f32 %v4814_v47, %v7133_v13  ;;  %v6910_v48 = vadd.f32 %v5372_v9, %v4947_v59 }
 0x1da   : > { %v4815_v0 = vpop.f32.mrb[108].mxu1  ;;  %v4951_v45 = vpop.f32.mrb[108].mxu0  ;;  %v6912_v4 = vadd.f32 %v5378_v17, %v4950_v30 }
 0x1db   : > { %v4816_v61 = vpop.f32.mrb[109].mxu1  ;;  %v4952_v56 = vpop.f32.mrb[109].mxu0 }
 0x1dc   : > { %v4817_v12 = vadd.f32 %v4816_v61, %v4815_v0  ;;  %v4818_v14 = vpop.f32.mrb[110].mxu1  ;;  %v4953_v51 = vadd.f32 %v4952_v56, %v4951_v45  ;;  %v4954_v39 = vpop.f32.mrb[110].mxu0 }
 0x1dd   : > { %v4819_v3 = vpop.f32.mrb[111].mxu1  ;;  %v4955_v8 = vpop.f32.mrb[111].mxu0 }
 0x1de   : > { %v5369_v54 = vadd.f32 %v4817_v12, %v7134_v22  ;;  %v4820_v38 = vadd.f32 %v4819_v3, %v4818_v14  ;;  %v4956_v60 = vadd.f32 %v4955_v8, %v4954_v39  ;;  %v5711_v3 = vld [vmem:[%s7126_s6 + $0x8] sm:$0xff]  }
 0x1e0   : > { %v5375_v33 = vadd.f32 %v4820_v38, %v7135_v55  ;;  %v6916_v29 = vadd.f32 %v5369_v54, %v4953_v51 }
 0x1e2   : > { %v6918_v34 = vadd.f32 %v5375_v33, %v4956_v60 }
 0x222   : > { %v5143_v37 = vpop.f32.mrb[16].mxu1 }
 0x223   : > { %v5287_v50 = vadd.f32 %v6813_v52, %v5143_v37  ;;  %v3150_v1 = vpop.f32.mrb[17].mxu1 }
 0x224   : > { %v5290_v32 = vadd.f32 %v6798_v21, %v3150_v1  ;;  %v5144_v59 = vpop.f32.mrb[18].mxu1 }
 0x225   : > { %v3318_v31 = vadd.f32 %v5287_v50, %v6932_v5  ;;  %v5293_v19 = vadd.f32 %v6817_v24, %v5144_v59  ;;  %v3153_v23 = vpop.f32.mrb[19].mxu1 }
 0x226   : > { %v3316_v26 = vadd.f32 %v5290_v32, %v6932_v5  ;;  %v5296_v9 = vadd.f32 %v6802_v10, %v3153_v23  ;;  %v5713_v23 = vld [vmem:[%s7126_s6 + $0x18] sm:$0xff]  }
 0x227   : > { %v3319_v47 = vadd.f32 %v5293_v19, %v6932_v5  ;;  %v3350_v13 = vmax.f32 %v3318_v31, 0.0 }
 0x228   : > { %v3317_v30 = vadd.f32 %v5296_v9, %v6932_v5  ;;  %v3348_v52 = vmax.f32 %v3316_v26, 0.0 }
 0x229   : > { %v3351_v17 = vmax.f32 %v3319_v47, 0.0 }
 0x22a   : > { %v3349_v0 = vmax.f32 %v3317_v30, 0.0  ;;  %v5147_v45 = vpop.f32.mrb[20].mxu1 }
 0x22b   : > { %v3381_v21 = vpack.c.bf16 %v3351_v17, %v3350_v13  ;;  %v5299_v61 = vadd.f32 %v6837_v20, %v5147_v45  ;;  %v3166_v56 = vpop.f32.mrb[21].mxu1 }
 0x22c   : > { %v5302_v24 = vadd.f32 %v6825_v16, %v3166_v56  ;;  %v5148_v12 = vpop.f32.mrb[22].mxu1  ;;  %v3380_v14 = vpack.c.bf16 %v3349_v0, %v3348_v52 }
 0x22d   : > { %v3322_v51 = vadd.f32 %v5299_v61, %v6932_v5  ;;  %v5305_v10 = vadd.f32 %v6839_v36, %v5148_v12  ;;  %v3169_v39 = vpop.f32.mrb[23].mxu1  ;;  %v5712_v36 = vld [vmem:[%s7126_s6 + $0x10] sm:$0xff]  }
 0x22e   : > { %v3320_v8 = vadd.f32 %v5302_v24, %v6932_v5  ;;  %v5308_v22 = vadd.f32 %v6829_v44, %v3169_v39  ;;  %5189 = vmatprep.mubr.bf16.mxu0 %v3380_v14 }
 0x22f   : > { %v3323_v20 = vadd.f32 %v5305_v10, %v6932_v5  ;;  %5190 = vmatmul.mubr.bf16.vlgmr.msra.gmra.mrb[112].mxu0 %v3381_v21  ;;  %v3354_v54 = vmax.f32 %v3322_v51, 0.0  ;;  %v5715_v51 = vld [vmem:[%s7126_s6 + $0x28] sm:$0xff]  }
 0x230   : > { %v3321_v16 = vadd.f32 %v5308_v22, %v6932_v5  ;;  %5222 = vmatpush3.bf16.msra.mxu0 %v6879_v2  ;;  %v3352_v60 = vmax.f32 %v3320_v8, 0.0 }
 0x231   : > { %v3355_v38 = vmax.f32 %v3323_v20, 0.0  ;;  %5223 = vmatprep.subr.bf16.mxu0 %v5711_v3 }
 0x232   : > { %v3353_v55 = vmax.f32 %v3321_v16, 0.0  ;;  %v5151_v33 = vpop.f32.mrb[24].mxu1 }
 0x233   : > { %v5311_v44 = vadd.f32 %v6850_v25, %v5151_v33  ;;  %v3182_v37 = vpop.f32.mrb[25].mxu1  ;;  %v3383_v50 = vpack.c.bf16 %v3355_v38, %v3354_v54 }
 0x234   : > { %v5314_v1 = vadd.f32 %v6844_v11, %v3182_v37  ;;  %v5152_v32 = vpop.f32.mrb[26].mxu1  ;;  %v3382_v59 = vpack.c.bf16 %v3353_v55, %v3352_v60  ;;  %5224 = vmatpush3.bf16.msra.mxu0 %v5711_v3 }
 0x235   : > { %v3326_v2 = vadd.f32 %v5311_v44, %v6932_v5  ;;  %v5317_v31 = vadd.f32 %v6852_v49, %v5152_v32  ;;  %v3185_v19 = vpop.f32.mrb[27].mxu1  ;;  %5225 = vmatprep.subr.bf16.mxu0 %v5712_v36  ;;  %v5714_v49 = vld [vmem:[%s7126_s6 + $0x20] sm:$0xff]  }
 0x236   : > { %v3324_v26 = vadd.f32 %v5314_v1, %v6932_v5  ;;  %v5320_v25 = vadd.f32 %v6846_v27, %v3185_v19  ;;  %5193 = vmatprep.mubr.bf16.mxu0 %v3382_v59 }
 0x237   : > { %v3327_v11 = vadd.f32 %v5317_v31, %v6932_v5  ;;  %5194 = vmatmul.mubr.bf16.gmra.mrb[116].mxu0 %v3383_v50  ;;  %v3358_v47 = vmax.f32 %v3326_v2, 0.0  ;;  %v5717_v50 = vld [vmem:[%s7126_s6 + $0x38] sm:$0xff]  }
 0x238   : > { %v3325_v9 = vadd.f32 %v5320_v25, %v6932_v5  ;;  %5226 = vmatpush3.bf16.msra.mxu0 %v5712_v36  ;;  %v3356_v13 = vmax.f32 %v3324_v26, 0.0 }
 0x239   : > { %v3359_v30 = vmax.f32 %v3327_v11, 0.0  ;;  %5227 = vmatprep.subr.bf16.mxu0 %v5713_v23 }
 0x23a   : > { %v3357_v17 = vmax.f32 %v3325_v9, 0.0  ;;  %v5155_v52 = vpop.f32.mrb[28].mxu1 }
 0x23b   : > { %v5323_v0 = vadd.f32 %v6862_v43, %v5155_v52  ;;  %v3198_v27 = vpop.f32.mrb[29].mxu1  ;;  %v3385_v45 = vpack.c.bf16 %v3359_v30, %v3358_v47 }
 0x23c   : > { %v5326_v21 = vadd.f32 %v6856_v18, %v3198_v27  ;;  %v5156_v61 = vpop.f32.mrb[30].mxu1  ;;  %v3384_v56 = vpack.c.bf16 %v3357_v17, %v3356_v13  ;;  %5228 = vmatpush3.bf16.msra.mxu0 %v5713_v23 }
 0x23d   : > { %v3330_v24 = vadd.f32 %v5323_v0, %v6932_v5  ;;  %v5329_v12 = vadd.f32 %v6864_v42, %v5156_v61  ;;  %v3201_v14 = vpop.f32.mrb[31].mxu1  ;;  %5229 = vmatprep.subr.bf16.mxu0 %v5714_v49  ;;  %v5716_v42 = vld [vmem:[%s7126_s6 + $0x30] sm:$0xff]  }
 0x23e   : > { %v3328_v10 = vadd.f32 %v5326_v21, %v6932_v5  ;;  %v5332_v43 = vadd.f32 %v6858_v57, %v3201_v14  ;;  %5197 = vmatprep.mubr.bf16.mxu0 %v3384_v56 }
 0x23f   : > { %v3331_v18 = vadd.f32 %v5329_v12, %v6932_v5  ;;  %5198 = vmatmul.mubr.bf16.gmra.mrb[120].mxu0 %v3385_v45  ;;  %v3362_v3 = vmax.f32 %v3330_v24, 0.0 }
 0x240   : > { %v3329_v39 = vadd.f32 %v5332_v43, %v6932_v5  ;;  %5230 = vmatpush3.bf16.msra.mxu0 %v5714_v49  ;;  %v3360_v22 = vmax.f32 %v3328_v10, 0.0 }
 0x241   : > { %v3363_v8 = vmax.f32 %v3331_v18, 0.0  ;;  %5231 = vmatprep.subr.bf16.mxu0 %v5715_v51 }
 0x242   : > { %v3361_v20 = vmax.f32 %v3329_v39, 0.0  ;;  %v5159_v16 = vpop.f32.mrb[32].mxu1 }
 0x243   : > { %v5335_v54 = vadd.f32 %v6874_v58, %v5159_v16  ;;  %v3214_v57 = vpop.f32.mrb[33].mxu1  ;;  %v3387_v38 = vpack.c.bf16 %v3363_v8, %v3362_v3 }
 0x244   : > { %v5338_v36 = vadd.f32 %v6868_v40, %v3214_v57  ;;  %v5160_v60 = vpop.f32.mrb[34].mxu1  ;;  %v3386_v55 = vpack.c.bf16 %v3361_v20, %v3360_v22  ;;  %5232 = vmatpush3.bf16.msra.mxu0 %v5715_v51 }
 0x245   : > { %v3334_v33 = vadd.f32 %v5335_v54, %v6932_v5  ;;  %v5341_v44 = vadd.f32 %v6881_v28, %v5160_v60  ;;  %v3217_v37 = vpop.f32.mrb[35].mxu1  ;;  %5233 = vmatprep.subr.bf16.mxu0 %v5716_v42 }
 0x246   : > { %v3332_v1 = vadd.f32 %v5338_v36, %v6932_v5  ;;  %v5344_v58 = vadd.f32 %v6870_v41, %v3217_v37  ;;  %5201 = vmatprep.mubr.bf16.mxu0 %v3386_v55 }
 0x247   : > { %v3335_v40 = vadd.f32 %v5341_v44, %v6932_v5  ;;  %5202 = vmatmul.mubr.bf16.gmra.mrb[124].mxu0 %v3387_v38  ;;  %v3366_v59 = vmax.f32 %v3334_v33, 0.0 }
 0x248   : > { %v3333_v32 = vadd.f32 %v5344_v58, %v6932_v5  ;;  %5234 = vmatpush3.bf16.msra.mxu0 %v5716_v42  ;;  %v3364_v28 = vmax.f32 %v3332_v1, 0.0 }
 0x249   : > { %v3367_v2 = vmax.f32 %v3335_v40, 0.0  ;;  %5235 = vmatprep.subr.bf16.mxu0 %v5717_v50  ;;  %v5718_v40 = vld [vmem:[%s6927_s12] sm:$0xff]  }
 0x24a   : > { %v3365_v31 = vmax.f32 %v3333_v32, 0.0  ;;  %v5163_v19 = vpop.f32.mrb[36].mxu1  ;;  %v5720_v32 = vld [vmem:[%s6927_s12 + $0x10] sm:$0xff]  }
 0x24b   : > { %v5347_v23 = vadd.f32 %v6892_v46, %v5163_v19  ;;  %v3230_v26 = vpop.f32.mrb[37].mxu1  ;;  %v3389_v25 = vpack.c.bf16 %v3367_v2, %v3366_v59  ;;  %v5722_v59 = vld [vmem:[%s6927_s12 + $0x20] sm:$0xff]   ;;  %v5723_v2 = vld [vmem:[%s6927_s12 + $0x28] sm:$0xff]  }
 0x24c   : > { %v5350_v11 = vadd.f32 %v6886_v63, %v3230_v26  ;;  %v5164_v41 = vpop.f32.mrb[38].mxu1  ;;  %v3388_v9 = vpack.c.bf16 %v3365_v31, %v3364_v28  ;;  %5236 = vmatpush3.bf16.msra.mxu0 %v5717_v50  ;;  %v5724_v28 = vld [vmem:[%s6927_s12 + $0x30] sm:$0xff]   ;;  %v5725_v31 = vld [vmem:[%s6927_s12 + $0x38] sm:$0xff]   ;;  %v5726_v19 = vld [vmem:[%s6927_s12 + $0x40] sm:$0xff]  }
 0x24d   : > { %v3338_v47 = vadd.f32 %v5347_v23, %v6932_v5  ;;  %v5353_v30 = vadd.f32 %v6894_v35, %v5164_v41  ;;  %v3233_v49 = vpop.f32.mrb[39].mxu1  ;;  %v5727_v23 = vld [vmem:[%s6927_s12 + $0x48] sm:$0xff]   ;;  %v5728_v26 = vld [vmem:[%s6927_s12 + $0x50] sm:$0xff]  }
 0x24e   : > { %v3336_v13 = vadd.f32 %v5350_v11, %v6932_v5  ;;  %v5356_v17 = vadd.f32 %v6888_v6, %v3233_v49  ;;  %5205 = vmatprep.mubr.bf16.mxu0 %v3388_v9  ;;  %v5730_v11 = vld [vmem:[%s6927_s12 + $0x60] sm:$0xff]   ;;  %v5731_v41 = vld [vmem:[%s6927_s12 + $0x68] sm:$0xff]   ;;  %v5732_v9 = vld [vmem:[%s6927_s12 + $0x70] sm:$0xff]  }
 0x24f   : > { %v3339_v52 = vadd.f32 %v5353_v30, %v6932_v5  ;;  %5206 = vmatmul.mubr.bf16.gmra.mrb[128].mxu0 %v3389_v25  ;;  %v3370_v0 = vmax.f32 %v3338_v47, 0.0  ;;  %v5729_v25 = vld [vmem:[%s6927_s12 + $0x58] sm:$0xff]   ;;  %v7039_v30 = vld [vmem:[%s7124_s4] ss:$0 sm:$0xff] }
 0x250   : > { %v3337_v46 = vadd.f32 %v5356_v17, %v6932_v5  ;;  %v3368_v27 = vmax.f32 %v3336_v13, 0.0  ;;  %v5733_v47 = vld [vmem:[%s6927_s12 + $0x78] sm:$0xff]  }
 0x251   : > { %v3371_v63 = vmax.f32 %v3339_v52, 0.0 }
 0x252   : > { %v3369_v45 = vmax.f32 %v3337_v46, 0.0  ;;  %v5167_v21 = vpop.f32.mrb[40].mxu1 }
 0x253   : > { %v5359_v61 = vadd.f32 %v6904_v7, %v5167_v21  ;;  %v3246_v56 = vpop.f32.mrb[41].mxu1  ;;  %v3391_v35 = vpack.c.bf16 %v3371_v63, %v3370_v0 }
 0x254   : > { %v5362_v24 = vadd.f32 %v6898_v62, %v3246_v56  ;;  %v5168_v12 = vpop.f32.mrb[42].mxu1  ;;  %v3390_v14 = vpack.c.bf16 %v3369_v45, %v3368_v27 }
 0x255   : > { %v3342_v6 = vadd.f32 %v5359_v61, %v6932_v5  ;;  %v5365_v51 = vadd.f32 %v6906_v15, %v5168_v12  ;;  %v3249_v10 = vpop.f32.mrb[43].mxu1 }
 0x256   : > { %v3340_v43 = vadd.f32 %v5362_v24, %v6932_v5  ;;  %v5368_v18 = vadd.f32 %v6900_v53, %v3249_v10  ;;  %5209 = vmatprep.mubr.bf16.mxu0 %v3390_v14 }
 0x257   : > { %v3343_v39 = vadd.f32 %v5365_v51, %v6932_v5  ;;  %5210 = vmatmul.mubr.bf16.gmra.mrb[132].mxu0 %v3391_v35  ;;  %v3374_v3 = vmax.f32 %v3342_v6, 0.0 }
 0x258   : > { %v3341_v7 = vadd.f32 %v5368_v18, %v6932_v5  ;;  %v3372_v62 = vmax.f32 %v3340_v43, 0.0 }
 0x259   : > { %v3375_v8 = vmax.f32 %v3343_v39, 0.0 }
 0x25a   : > { %v3373_v42 = vmax.f32 %v3341_v7, 0.0  ;;  %v5171_v22 = vpop.f32.mrb[44].mxu1 }
 0x25b   : > { %v5371_v20 = vadd.f32 %v6916_v29, %v5171_v22  ;;  %v3262_v16 = vpop.f32.mrb[45].mxu1  ;;  %v3393_v15 = vpack.c.bf16 %v3375_v8, %v3374_v3 }
 0x25c   : > { %v5374_v54 = vadd.f32 %v6910_v48, %v3262_v16  ;;  %v5172_v57 = vpop.f32.mrb[46].mxu1  ;;  %v3392_v38 = vpack.c.bf16 %v3373_v42, %v3372_v62 }
 0x25d   : > { %v3346_v53 = vadd.f32 %v5371_v20, %v6932_v5  ;;  %v5377_v36 = vadd.f32 %v6918_v34, %v5172_v57  ;;  %v3265_v60 = vpop.f32.mrb[47].mxu1 }
 0x25e   : > { %v3344_v55 = vadd.f32 %v5374_v54, %v6932_v5  ;;  %v5380_v33 = vadd.f32 %v6912_v4, %v3265_v60  ;;  %5213 = vmatprep.mubr.bf16.mxu0 %v3392_v38  ;;  %v5719_v4 = vld [vmem:[%s6927_s12 + $0x8] sm:$0xff]  }
 0x25f   : > { %v3347_v29 = vadd.f32 %v5377_v36, %v6932_v5  ;;  %5214 = vmatmul.mubr.bf16.gmra.mrb[136].mxu0 %v3393_v15  ;;  %v3378_v44 = vmax.f32 %v3346_v53, 0.0 }
 0x260   : > { %v3345_v48 = vadd.f32 %v5380_v33, %v6932_v5  ;;  %v3376_v50 = vmax.f32 %v3344_v55, 0.0  ;;  %v5721_v5 = vld [vmem:[%s6927_s12 + $0x18] sm:$0xff]  }
 0x261   : > { %v3379_v37 = vmax.f32 %v3347_v29, 0.0 }
 0x262   : > { %v3377_v34 = vmax.f32 %v3345_v48, 0.0 }
 0x263   : > { %v3395_v1 = vpack.c.bf16 %v3379_v37, %v3378_v44 }
 0x264   : > { %v3394_v58 = vpack.c.bf16 %v3377_v34, %v3376_v50 }
 0x266   : > { %5217 = vmatprep.mubr.bf16.mxu0 %v3394_v58 }
 0x267   : > { %5218 = vmatmul.mubr.bf16.gmra.mrb[140].mxu0 %v3395_v1 }
 0x268   : > { %5237 = vmatprep.mubr.bf16.mxu0 %v5718_v40 }
 0x26f   : > { %5238 = vmatmul.mubr.bf16.vlgmr.msra.gmra.mrb[112].mxu0 %v5719_v4 }
 0x270   : > { %5241 = vmatprep.mubr.bf16.mxu0 %v5720_v32 }
 0x277   : > { %5242 = vmatmul.mubr.bf16.gmra.mrb[116].mxu0 %v5721_v5 }
 0x278   : > { %5245 = vmatprep.mubr.bf16.mxu0 %v5722_v59 }
 0x27f   : > { %5246 = vmatmul.mubr.bf16.gmra.mrb[120].mxu0 %v5723_v2 }
 0x280   : > { %5249 = vmatprep.mubr.bf16.mxu0 %v5724_v28 }
 0x287   : > { %5250 = vmatmul.mubr.bf16.gmra.mrb[124].mxu0 %v5725_v31 }
 0x288   : > { %5253 = vmatprep.mubr.bf16.mxu0 %v5726_v19 }
 0x28f   : > { %5254 = vmatmul.mubr.bf16.gmra.mrb[128].mxu0 %v5727_v23 }
 0x290   : > { %5257 = vmatprep.mubr.bf16.mxu0 %v5728_v26 }
 0x297   : > { %5258 = vmatmul.mubr.bf16.gmra.mrb[132].mxu0 %v5729_v25 }
 0x298   : > { %5261 = vmatprep.mubr.bf16.mxu0 %v5730_v11 }
 0x29f   : > { %5262 = vmatmul.mubr.bf16.gmra.mrb[136].mxu0 %v5731_v41 }
 0x2a0   : > { %5265 = vmatprep.mubr.bf16.mxu0 %v5732_v9 }
 0x2a7   : > { %5266 = vmatmul.mubr.bf16.gmra.mrb[140].mxu0 %v5733_v47 }
 0x342   : > { %v5239_v49 = vpop.f32.mrb[112].mxu0 }
 0x343   : > { %v5381_v13 = vadd.f32 %v5239_v49, %v7039_v30  ;;  %v3854_v17 = vpop.f32.mrb[113].mxu0 }
 0x344   : > { %v5382_v52 = vadd.f32 %v7039_v30, %v3854_v17  ;;  %v5240_v46 = vpop.f32.mrb[114].mxu0 }
 0x345   : > { %v4015_v0 = vmax.f32 %v5381_v13, 0.0  ;;  %v5383_v63 = vadd.f32 %v5240_v46, %v7039_v30  ;;  %v3857_v27 = vpop.f32.mrb[115].mxu0 }
 0x346   : > { %v4013_v45 = vmax.f32 %v5382_v52, 0.0  ;;  %v5384_v21 = vadd.f32 %v7039_v30, %v3857_v27 }
 0x347   : > { %4047 = vst [vmem:[%s7046_s15 + $0x10] sm:$0xff] %v4015_v0  ;;  %v4016_v61 = vmax.f32 %v5383_v63, 0.0 }
 0x348   : > { %4045 = vst [vmem:[%s7046_s15] sm:$0xff] %v4013_v45  ;;  %v4014_v56 = vmax.f32 %v5384_v21, 0.0 }
 0x349   : > { %4048 = vst [vmem:[%s7046_s15 + $0x18] sm:$0xff] %v4016_v61 }
 0x34a   : > { %4046 = vst [vmem:[%s7046_s15 + $0x8] sm:$0xff] %v4014_v56  ;;  %v5243_v35 = vpop.f32.mrb[116].mxu0 }
 0x34b   : > { %v5385_v24 = vadd.f32 %v5243_v35, %v7039_v30  ;;  %v3870_v12 = vpop.f32.mrb[117].mxu0 }
 0x34c   : > { %v5386_v14 = vadd.f32 %v7039_v30, %v3870_v12  ;;  %v5244_v6 = vpop.f32.mrb[118].mxu0 }
 0x34d   : > { %v4019_v51 = vmax.f32 %v5385_v24, 0.0  ;;  %v5387_v10 = vadd.f32 %v5244_v6, %v7039_v30  ;;  %v3873_v43 = vpop.f32.mrb[119].mxu0 }
 0x34e   : > { %v4017_v18 = vmax.f32 %v5386_v14, 0.0  ;;  %v5388_v39 = vadd.f32 %v7039_v30, %v3873_v43 }
 0x34f   : > { %4051 = vst [vmem:[%s7046_s15 + $0x30] sm:$0xff] %v4019_v51  ;;  %v4020_v7 = vmax.f32 %v5387_v10, 0.0 }
 0x350   : > { %4049 = vst [vmem:[%s7046_s15 + $0x20] sm:$0xff] %v4017_v18  ;;  %v4018_v3 = vmax.f32 %v5388_v39, 0.0 }
 0x351   : > { %4052 = vst [vmem:[%s7046_s15 + $0x38] sm:$0xff] %v4020_v7 }
 0x352   : > { %4050 = vst [vmem:[%s7046_s15 + $0x28] sm:$0xff] %v4018_v3  ;;  %v5247_v8 = vpop.f32.mrb[120].mxu0 }
 0x353   : > { %v5389_v62 = vadd.f32 %v5247_v8, %v7039_v30  ;;  %v3886_v42 = vpop.f32.mrb[121].mxu0 }
 0x354   : > { %v5390_v22 = vadd.f32 %v7039_v30, %v3886_v42  ;;  %v5248_v20 = vpop.f32.mrb[122].mxu0 }
 0x355   : > { %v4023_v16 = vmax.f32 %v5389_v62, 0.0  ;;  %v5391_v15 = vadd.f32 %v5248_v20, %v7039_v30  ;;  %v3889_v54 = vpop.f32.mrb[123].mxu0 }
 0x356   : > { %v4021_v57 = vmax.f32 %v5390_v22, 0.0  ;;  %v5392_v38 = vadd.f32 %v7039_v30, %v3889_v54 }
 0x357   : > { %4055 = vst [vmem:[%s7046_s15 + $0x50] sm:$0xff] %v4023_v16  ;;  %v4024_v53 = vmax.f32 %v5391_v15, 0.0 }
 0x358   : > { %4053 = vst [vmem:[%s7046_s15 + $0x40] sm:$0xff] %v4021_v57  ;;  %v4022_v36 = vmax.f32 %v5392_v38, 0.0 }
 0x359   : > { %4056 = vst [vmem:[%s7046_s15 + $0x58] sm:$0xff] %v4024_v53 }
 0x35a   : > { %4054 = vst [vmem:[%s7046_s15 + $0x48] sm:$0xff] %v4022_v36  ;;  %v5251_v60 = vpop.f32.mrb[124].mxu0 }
 0x35b   : > { %v5393_v55 = vadd.f32 %v5251_v60, %v7039_v30  ;;  %v3902_v33 = vpop.f32.mrb[125].mxu0 }
 0x35c   : > { %v5394_v29 = vadd.f32 %v7039_v30, %v3902_v33  ;;  %v5252_v48 = vpop.f32.mrb[126].mxu0 }
 0x35d   : > { %v4027_v44 = vmax.f32 %v5393_v55, 0.0  ;;  %v5395_v37 = vadd.f32 %v5252_v48, %v7039_v30  ;;  %v3905_v50 = vpop.f32.mrb[127].mxu0 }
 0x35e   : > { %v4025_v34 = vmax.f32 %v5394_v29, 0.0  ;;  %v5396_v1 = vadd.f32 %v7039_v30, %v3905_v50 }
 0x35f   : > { %4059 = vst [vmem:[%s7046_s15 + $0x70] sm:$0xff] %v4027_v44  ;;  %v4028_v58 = vmax.f32 %v5395_v37, 0.0 }
 0x360   : > { %4057 = vst [vmem:[%s7046_s15 + $0x60] sm:$0xff] %v4025_v34  ;;  %v4026_v40 = vmax.f32 %v5396_v1, 0.0 }
 0x361   : > { %4060 = vst [vmem:[%s7046_s15 + $0x78] sm:$0xff] %v4028_v58 }
 0x362   : > { %4058 = vst [vmem:[%s7046_s15 + $0x68] sm:$0xff] %v4026_v40  ;;  %v5255_v4 = vpop.f32.mrb[128].mxu0 }
 0x363   : > { %v5397_v32 = vadd.f32 %v5255_v4, %v7039_v30  ;;  %v3918_v5 = vpop.f32.mrb[129].mxu0 }
 0x364   : > { %v5398_v59 = vadd.f32 %v7039_v30, %v3918_v5  ;;  %v5256_v2 = vpop.f32.mrb[130].mxu0 }
 0x365   : > { %v4031_v28 = vmax.f32 %v5397_v32, 0.0  ;;  %v5399_v31 = vadd.f32 %v5256_v2, %v7039_v30  ;;  %v3921_v19 = vpop.f32.mrb[131].mxu0 }
 0x366   : > { %v4029_v23 = vmax.f32 %v5398_v59, 0.0  ;;  %v5400_v26 = vadd.f32 %v7039_v30, %v3921_v19 }
 0x367   : > { %4063 = vst [vmem:[%s7046_s15 + $0x90] sm:$0xff] %v4031_v28  ;;  %v4032_v25 = vmax.f32 %v5399_v31, 0.0 }
 0x368   : > { %4061 = vst [vmem:[%s7046_s15 + $0x80] sm:$0xff] %v4029_v23  ;;  %v4030_v11 = vmax.f32 %v5400_v26, 0.0 }
 0x369   : > { %4064 = vst [vmem:[%s7046_s15 + $0x98] sm:$0xff] %v4032_v25 }
 0x36a   : > { %4062 = vst [vmem:[%s7046_s15 + $0x88] sm:$0xff] %v4030_v11  ;;  %v5259_v41 = vpop.f32.mrb[132].mxu0 }
 0x36b   : > { %v5401_v9 = vadd.f32 %v5259_v41, %v7039_v30  ;;  %v3934_v47 = vpop.f32.mrb[133].mxu0 }
 0x36c   : > { %v5402_v49 = vadd.f32 %v7039_v30, %v3934_v47  ;;  %v5260_v13 = vpop.f32.mrb[134].mxu0 }
 0x36d   : > { %v4035_v17 = vmax.f32 %v5401_v9, 0.0  ;;  %v5403_v52 = vadd.f32 %v5260_v13, %v7039_v30  ;;  %v3937_v46 = vpop.f32.mrb[135].mxu0 }
 0x36e   : > { %v4033_v0 = vmax.f32 %v5402_v49, 0.0  ;;  %v5404_v63 = vadd.f32 %v7039_v30, %v3937_v46 }
 0x36f   : > { %4067 = vst [vmem:[%s7046_s15 + $0xb0] sm:$0xff] %v4035_v17  ;;  %v4036_v27 = vmax.f32 %v5403_v52, 0.0 }
 0x370   : > { %4065 = vst [vmem:[%s7046_s15 + $0xa0] sm:$0xff] %v4033_v0  ;;  %v4034_v45 = vmax.f32 %v5404_v63, 0.0 }
 0x371   : > { %4068 = vst [vmem:[%s7046_s15 + $0xb8] sm:$0xff] %v4036_v27 }
 0x372   : > { %4066 = vst [vmem:[%s7046_s15 + $0xa8] sm:$0xff] %v4034_v45  ;;  %v5263_v21 = vpop.f32.mrb[136].mxu0 }
 0x373   : > { %v5405_v61 = vadd.f32 %v5263_v21, %v7039_v30  ;;  %v3950_v56 = vpop.f32.mrb[137].mxu0 }
 0x374   : > { %v5406_v35 = vadd.f32 %v7039_v30, %v3950_v56  ;;  %v5264_v24 = vpop.f32.mrb[138].mxu0 }
 0x375   : > { %v4039_v12 = vmax.f32 %v5405_v61, 0.0  ;;  %v5407_v14 = vadd.f32 %v5264_v24, %v7039_v30  ;;  %v3953_v6 = vpop.f32.mrb[139].mxu0 }
 0x376   : > { %v4037_v51 = vmax.f32 %v5406_v35, 0.0  ;;  %v5408_v10 = vadd.f32 %v7039_v30, %v3953_v6 }
 0x377   : > { %4071 = vst [vmem:[%s7046_s15 + $0xd0] sm:$0xff] %v4039_v12  ;;  %v4040_v43 = vmax.f32 %v5407_v14, 0.0 }
 0x378   : > { %4069 = vst [vmem:[%s7046_s15 + $0xc0] sm:$0xff] %v4037_v51  ;;  %v4038_v18 = vmax.f32 %v5408_v10, 0.0 }
 0x379   : > { %4072 = vst [vmem:[%s7046_s15 + $0xd8] sm:$0xff] %v4040_v43 }
 0x37a   : > { %4070 = vst [vmem:[%s7046_s15 + $0xc8] sm:$0xff] %v4038_v18  ;;  %v5267_v39 = vpop.f32.mrb[140].mxu0 }
 0x37b   : > { %v5409_v7 = vadd.f32 %v5267_v39, %v7039_v30  ;;  %v3966_v3 = vpop.f32.mrb[141].mxu0 }
 0x37c   : > { %v5410_v8 = vadd.f32 %v7039_v30, %v3966_v3  ;;  %v5268_v62 = vpop.f32.mrb[142].mxu0 }
 0x37d   : > { %v4043_v42 = vmax.f32 %v5409_v7, 0.0  ;;  %v5411_v22 = vadd.f32 %v5268_v62, %v7039_v30  ;;  %v3969_v20 = vpop.f32.mrb[143].mxu0 }
 0x37e   : > { %v4041_v16 = vmax.f32 %v5410_v8, 0.0  ;;  %v5412_v15 = vadd.f32 %v7039_v30, %v3969_v20 }
 0x37f   : > { %4075 = vst [vmem:[%s7046_s15 + $0xf0] sm:$0xff] %v4043_v42  ;;  %v4044_v54 = vmax.f32 %v5411_v22, 0.0 }
 0x380   : > { %4073 = vst [vmem:[%s7046_s15 + $0xe0] sm:$0xff] %v4041_v16  ;;  %v4042_v57 = vmax.f32 %v5412_v15, 0.0 }
 0x381   : > { %4076 = vst [vmem:[%s7046_s15 + $0xf8] sm:$0xff] %v4044_v54 }
 0x382   : > { %4074 = vst [vmem:[%s7046_s15 + $0xe8] sm:$0xff] %v4042_v57 }
 0x383 PF: > { %s17_s26 = sadd.s32 1, %s5776_s26   ;;  %s7136_s24 = smov %s5772_s25 }
 0x384   : > { %p14_p6 = scmp.ge.s32.totalorder %s17_s26, 4   ;;  %s7137_s25 = smov %s7139_s27 }
 0x386   :  { %16 = sbr.rel (!%p14_p6) target bundleno = 2 (0x2), region = 86 }

</bundles_post_ra>
